<compile_context>
chip_gen: v7x
topology: tpu7x:2x2x1
jax: 0.10.0
libtpu: 0.0.40
codegen_flags: <defaults>
</compile_context>

<pallas_src>
import functools

import jax
import jax.numpy as jnp
from jax.experimental import pallas as pl
from jax.experimental.pallas import tpu as pltpu


_K0, _S0, _PAD = 5, 3, 1          # stage-0 conv geometry; later stages are k=3/s=1/p=1


# ------------------------------- fused kernel --------------------------------

def _fused_lightconv_kernel(*refs, num_stages, S, W, cp, ln_counts, eps):
    """One grid step == S stacked batch samples; the whole network runs in VMEM.

    refs layout (positional):
      x_ref                                   (S*W, 3*C_in) bf16, grouped layout
      per LN stage i < last: w_i (3*K_i, cp) bf16, b_i (1, cp) f32,
                             g_i (W, cp) bf16,    bt_i (W, cp) bf16
      last stage:            w_last (3*cp, cp) bf16     (bias folded into proj_b)
      proj_w (cp, P) bf16,   proj_b (1, P) f32
      o_ref                                   (S, W, P) f32
      buf_a, buf_b                            (S*W, cp) bf16 ping-pong scratch
    """
    it = iter(refs)
    x_ref = next(it)
    stage_params = []
    for i in range(num_stages):
        w = next(it)
        if i < num_stages - 1:
            b, g, bt = next(it), next(it), next(it)
        else:
            b = g = bt = None
        stage_params.append((w, b, g, bt))
    pw_ref = next(it)
    pb_ref = next(it)
    o_ref = next(it)
    buf_a = next(it)
    buf_b = next(it)
    bufs = (buf_a, buf_b)

    SW = S * W
    # 0/1 row masks that zero the cross-sample rows of the rolled partial
    # results; this implements the conv's zero padding at every sample boundary.
    # rolled-by-+1 row r holds y[r-1]   -> invalid when r % W == 0
    # rolled-by-(SW-1) row r holds y[r+1] -> invalid when r % W == W-1
    pos = jax.lax.broadcasted_iota(jnp.int32, (SW, 1), 0) % W
    m_top = (pos != 0).astype(jnp.float32)
    m_bot = (pos != W - 1).astype(jnp.float32)

    def conv3(src, w_ref):
        # k=3 / stride=1 / pad=1 conv over the stacked (SW, K) operand:
        #   out[j] = src[j-1] @ w0 + src[j] @ w1 + src[j+1] @ w2
        # computed as three matmuls of the SAME unshifted bf16 operand, with the
        # +-1 row offsets applied to the f32 results via XLU rolls + row masks.
        # pltpu.roll matches jnp.roll: roll(y, s)[r] = y[(r - s) % SW].
        k_in = w_ref.shape[0] // 3
        acc = jnp.dot(src, w_ref[k_in:2 * k_in, :],
                      preferred_element_type=jnp.float32)
        y0 = jnp.dot(src, w_ref[0:k_in, :], preferred_element_type=jnp.float32)
        acc = acc + pltpu.roll(y0, shift=1, axis=0) * m_top
        y2 = jnp.dot(src, w_ref[2 * k_in:3 * k_in, :],
                     preferred_element_type=jnp.float32)
        acc = acc + pltpu.roll(y2, shift=SW - 1, axis=0) * m_bot
        return acc

    src = x_ref[...]                                     # bf16 (SW, K)
    acc = None
    for i, (w_ref, b_ref, g_ref, bt_ref) in enumerate(stage_params):
        acc = conv3(src, w_ref)
        if g_ref is not None:
            acc = acc + b_ref[...]
            # Per-sample LayerNorm over the (W, C_real) plane.  Padded output
            # channels of acc are exactly zero (zero-padded weight columns and
            # bias), so whole-plane sums equal real-plane sums.  Variance uses
            # the two-pass form with an exact correction for the padded columns
            # (which hold -mean after centering).
            g = g_ref[...]                               # bf16, promoted at use
            bt = bt_ref[...]
            n = float(W * ln_counts[i])
            pad_elems = float(W * (cp - ln_counts[i]))
            dst = bufs[i % 2]
            for s in range(S):
                blk = acc[s * W:(s + 1) * W, :]
                mean = jnp.sum(blk) * (1.0 / n)
                d = blk - mean
                var = (jnp.sum(d * d) - pad_elems * mean * mean) * (1.0 / n)
                inv = jax.lax.rsqrt(var + eps)
                dst[s * W:(s + 1) * W, :] = (d * inv * g + bt).astype(dst.dtype)
            src = dst[...]

    # Final projection; the last conv bias is pre-folded into proj_b.
    out = jnp.dot(acc.astype(pw_ref.dtype), pw_ref[...],
                  preferred_element_type=jnp.float32)
    out = out + pb_ref[...]
    for s in range(S):
        o_ref[s] = out[s * W:(s + 1) * W, :].astype(o_ref.dtype)


# ------------------------------ forward wrapper -------------------------------

def lightconv_forward(x_ncl, packed, *, dims, proj_dim, w_out, cp, eps=1e-6):
    """x_ncl: (B, C_in, L) exactly as the PyTorch module receives it."""
    B, c_in, L = x_ncl.shape
    num_stages = len(dims)
    W = w_out
    assert L % _S0 == 0 and _S0 * W == L, "stage-0 stride must tile L exactly"
    assert W % 8 == 0, "W must be sublane aligned"

    # Number of samples stacked along the sublane axis per grid step.
    S = 1
    for cand in (8, 4, 2):
        if B % cand == 0:
            S = cand
            break

    # Grouped channels-last layout: row j holds input positions 3j, 3j+1, 3j+2,
    # turning the k=5/s=3/p=1 stage-0 conv into a k=3/s=1/p=1 conv.  Width
    # padding is supplied by the in-kernel boundary masks (no halo rows).
    g_in = _S0 * c_in
    x = jnp.transpose(x_ncl, (0, 2, 1)).reshape(B * W, g_in).astype(jnp.bfloat16)

    inputs = [x]
    in_specs = [pl.BlockSpec((S * W, g_in), lambda b: (b, 0))]

    def _resident(arr):
        nd = arr.ndim
        return pl.BlockSpec(arr.shape, lambda b, _nd=nd: (0,) * _nd)

    for i in range(num_stages):
        names = ("w", "b", "g", "bt") if i < num_stages - 1 else ("w",)
        for name in names:
            arr = packed[f"s{i}_{name}"]
            inputs.append(arr)
            in_specs.append(_resident(arr))
    for name in ("proj_w", "proj_b"):
        inputs.append(packed[name])
        in_specs.append(_resident(packed[name]))

    kernel = functools.partial(
        _fused_lightconv_kernel,
        num_stages=num_stages, S=S, W=W, cp=cp, ln_counts=tuple(dims), eps=eps)

    return pl.pallas_call(
        kernel,
        out_shape=jax.ShapeDtypeStruct((B, W, proj_dim), jnp.float32),
        grid=(B // S,),
        in_specs=in_specs,
        out_specs=pl.BlockSpec((S, W, proj_dim), lambda b: (b, 0, 0)),
        scratch_shapes=[pltpu.VMEM((S * W, cp), jnp.bfloat16),
                        pltpu.VMEM((S * W, cp), jnp.bfloat16)],
        compiler_params=pltpu.CompilerParams(
            dimension_semantics=("parallel",)),
    )(*inputs)


# -------------------------- parameter init / packing --------------------------

def init_raw_params(key, in_chans, dims, proj_dim, w_out):
    """Deterministic synthetic parameters in the PyTorch module's shapes."""
    ks = (_K0,) + (3,) * (len(dims) - 1)
    chans = [in_chans] + list(dims)
    raw = {}
    keys = jax.random.split(key, 3 * len(dims) + 1)
    ki = 0
    for i in range(len(dims)):
        cin, cout, k = chans[i], chans[i + 1], ks[i]
        raw[f"conv{i}_w"] = 0.02 * jax.random.normal(
            keys[ki], (cout, cin, 1, k), jnp.float32); ki += 1
        raw[f"conv{i}_b"] = jnp.zeros((cout,), jnp.float32)
        if i < len(dims) - 1:
            raw[f"ln{i}_g"] = 1.0 + 0.01 * jax.random.normal(
                keys[ki], (cout, 1, w_out), jnp.float32); ki += 1
            raw[f"ln{i}_b"] = 0.01 * jax.random.normal(
                keys[ki], (cout, 1, w_out), jnp.float32); ki += 1
    raw["proj_w"] = 0.02 * jax.random.normal(
        keys[ki], (proj_dim, dims[-1]), jnp.float32)
    return raw


def pack_params(raw, *, in_chans, dims, proj_dim, w_out, cp,
                compute_dtype=jnp.bfloat16):
    """Pack PyTorch-shaped params into the lane-padded fused-kernel layout."""
    assert max(dims) <= cp
    num_stages = len(dims)
    packed = {}

    # Stage 0: fold the k=5/stride=3 conv into a k=3/stride=1 conv over the
    # grouped (3*in_chans)-channel layout.  Original tap tau hits input position
    # stride*j - pad + tau = stride*(j-1+t) + grp  =>  stride*t + grp = tau + 2.
    c0 = dims[0]
    g_in = _S0 * in_chans
    w0 = raw["conv0_w"][:, :, 0, :]                       # (c0, in_chans, 5)
    wv = jnp.zeros((3 * g_in, cp), jnp.float32)
    for tau in range(_K0):
        t, grp = divmod(tau + _S0 - _PAD, _S0)
        blk = jnp.transpose(w0[:, :, tau])                # (in_chans, c0)
        row = t * g_in + grp * in_chans
        wv = wv.at[row:row + in_chans, :c0].set(blk)
    packed["s0_w"] = wv.astype(compute_dtype)

    # Stages 1..n-1: plain k=3 convs, channel-padded to cp on both sides.
    for i in range(1, num_stages):
        ci, cim1 = dims[i], dims[i - 1]
        wi = raw[f"conv{i}_w"][:, :, 0, :]                # (ci, cim1, 3)
        wpk = jnp.zeros((3 * cp, cp), jnp.float32)
        for t in range(3):
            wpk = wpk.at[t * cp:t * cp + cim1, :ci].set(jnp.transpose(wi[:, :, t]))
        packed[f"s{i}_w"] = wpk.astype(compute_dtype)

    # Conv bias + LayerNorm affine params for the LN stages (the bias of the
    # last, LN-free stage is folded into the projection bias below).
    for i in range(num_stages - 1):
        b = jnp.zeros((1, cp), jnp.float32).at[0, :dims[i]].set(raw[f"conv{i}_b"])
        packed[f"s{i}_b"] = b
        g = jnp.zeros((w_out, cp), jnp.float32)
        bt = jnp.zeros((w_out, cp), jnp.float32)
        g = g.at[:, :dims[i]].set(jnp.transpose(raw[f"ln{i}_g"][:, 0, :]))
        bt = bt.at[:, :dims[i]].set(jnp.transpose(raw[f"ln{i}_b"][:, 0, :]))
        packed[f"s{i}_g"] = g.astype(compute_dtype)
        packed[f"s{i}_bt"] = bt.astype(compute_dtype)

    # Projection (cp, proj_dim) + folded last-stage conv bias row (1, proj_dim).
    pw = jnp.zeros((cp, proj_dim), jnp.float32)
    pw = pw.at[:dims[-1], :].set(jnp.transpose(raw["proj_w"]))
    packed["proj_w"] = pw.astype(compute_dtype)
    packed["proj_b"] = (raw[f"conv{num_stages - 1}_b"][None, :]
                        @ jnp.transpose(raw["proj_w"]))    # (1, proj_dim) f32

    # The fused per-sample LayerNorm statistics rely on every padded output
    # channel (weight columns, bias, gamma, beta) being exactly zero; assert it
    # so a future non-zero-padded parameter can't silently corrupt them.
    for i in range(num_stages):
        assert not bool(jnp.any(packed[f"s{i}_w"][:, dims[i]:] != 0))
        if i < num_stages - 1:
            assert not bool(jnp.any(packed[f"s{i}_b"][:, dims[i]:] != 0))
            assert not bool(jnp.any(packed[f"s{i}_g"][:, dims[i]:] != 0))
            assert not bool(jnp.any(packed[f"s{i}_bt"][:, dims[i]:] != 0))
    return packed


# ---------------------------- pure-JAX reference ------------------------------

def _reference_forward(x_ncl, raw, dims):
    ks = (_K0,) + (3,) * (len(dims) - 1)
    strides = (_S0,) + (1,) * (len(dims) - 1)
    x = x_ncl[:, :, None, :]                              # NCHW with H=1
    for i in range(len(dims)):
        y = jax.lax.conv_general_dilated(
            x, raw[f"conv{i}_w"], window_strides=(1, strides[i]),
            padding=((0, 0), (_PAD, _PAD)),
            dimension_numbers=("NCHW", "OIHW", "NCHW"))
        y = y + raw[f"conv{i}_b"][None, :, None, None]
        if f"ln{i}_g" in raw:
            mean = jnp.mean(y, axis=(1, 2, 3), keepdims=True)
            var = jnp.mean((y - mean) ** 2, axis=(1, 2, 3), keepdims=True)
            y = (y - mean) * jax.lax.rsqrt(var + 1e-6)
            y = y * raw[f"ln{i}_g"][None] + raw[f"ln{i}_b"][None]
        x = y
    xr = jnp.transpose(x[:, :, 0, :], (0, 2, 1))          # b (st ft) ch
    return xr @ jnp.transpose(raw["proj_w"])


# ----------------------------------- main -------------------------------------

if __name__ == "__main__":
    # Small but structurally faithful config:
    #   stage-0 conv (1,5)/stride(1,3)/pad(0,1) turns L=384 into W=128.
    B, C_IN, L = 2, 64, 384
    DIMS = (32, 64, 96, 128)
    PROJ_DIM = 64
    W_OUT = (L + 2 * _PAD - _K0) // _S0 + 1               # 128
    CP = 128 * (-(-max(DIMS) // 128))                     # lane-padded channel width

    key = jax.random.PRNGKey(0)
    kx, kp = jax.random.split(key)
    x = jax.random.normal(kx, (B, C_IN, L), jnp.float32)
    raw = init_raw_params(kp, C_IN, DIMS, PROJ_DIM, W_OUT)
    packed = pack_params(raw, in_chans=C_IN, dims=DIMS, proj_dim=PROJ_DIM,
                         w_out=W_OUT, cp=CP)

    fwd = jax.jit(functools.partial(lightconv_forward, dims=DIMS,
                                    proj_dim=PROJ_DIM, w_out=W_OUT, cp=CP))
    out = jax.block_until_ready(fwd(x, packed))

    assert out.shape == (B, W_OUT, PROJ_DIM), out.shape
    assert bool(jnp.all(jnp.isfinite(out)))

    ref = jax.block_until_ready(_reference_forward(x, raw, DIMS))
    max_err = float(jnp.max(jnp.abs(out - ref)))
    assert max_err < 2e-2, f"mismatch vs reference: {max_err}"

    print("KERNEL_OK")
</pallas_src>

<mosaic_0001>
module attributes {stable_mosaic.version = 11 : i64} {
  func.func @_fused_lightconv_kernel(%arg0: i32, %arg1: memref<256x192xbf16, #tpu.memory_space<vmem>>, %arg2: memref<576x128xbf16, #tpu.memory_space<vmem>>, %arg3: memref<1x128xf32, #tpu.memory_space<vmem>>, %arg4: memref<128x128xbf16, #tpu.memory_space<vmem>>, %arg5: memref<128x128xbf16, #tpu.memory_space<vmem>>, %arg6: memref<384x128xbf16, #tpu.memory_space<vmem>>, %arg7: memref<1x128xf32, #tpu.memory_space<vmem>>, %arg8: memref<128x128xbf16, #tpu.memory_space<vmem>>, %arg9: memref<128x128xbf16, #tpu.memory_space<vmem>>, %arg10: memref<384x128xbf16, #tpu.memory_space<vmem>>, %arg11: memref<1x128xf32, #tpu.memory_space<vmem>>, %arg12: memref<128x128xbf16, #tpu.memory_space<vmem>>, %arg13: memref<128x128xbf16, #tpu.memory_space<vmem>>, %arg14: memref<384x128xbf16, #tpu.memory_space<vmem>>, %arg15: memref<128x64xbf16, #tpu.memory_space<vmem>>, %arg16: memref<1x64xf32, #tpu.memory_space<vmem>>, %arg17: memref<2x128x64xf32, #tpu.memory_space<vmem>>, %arg18: memref<256x128xbf16, #tpu.memory_space<vmem>>, %arg19: memref<256x128xbf16, #tpu.memory_space<vmem>>) attributes {dimension_semantics = [#tpu.dimension_semantics<parallel>], iteration_bounds = array<i64: 1>, scalar_prefetch = 0 : i64, scratch_operands = 2 : i64, tpu.core_type = #tpu.core_type<tc>, window_params = [{transform_indices = @transform_0, window_bounds = array<i64: 256, 192>}, {pipeline_mode = #tpu.pipeline_mode<synchronous>, transform_indices = @transform_1, window_bounds = array<i64: 576, 128>}, {pipeline_mode = #tpu.pipeline_mode<synchronous>, transform_indices = @transform_2, window_bounds = array<i64: 1, 128>}, {pipeline_mode = #tpu.pipeline_mode<synchronous>, transform_indices = @transform_3, window_bounds = array<i64: 128, 128>}, {pipeline_mode = #tpu.pipeline_mode<synchronous>, transform_indices = @transform_4, window_bounds = array<i64: 128, 128>}, {pipeline_mode = #tpu.pipeline_mode<synchronous>, transform_indices = @transform_5, window_bounds = array<i64: 384, 128>}, {pipeline_mode = #tpu.pipeline_mode<synchronous>, transform_indices = @transform_6, window_bounds = array<i64: 1, 128>}, {pipeline_mode = #tpu.pipeline_mode<synchronous>, transform_indices = @transform_7, window_bounds = array<i64: 128, 128>}, {pipeline_mode = #tpu.pipeline_mode<synchronous>, transform_indices = @transform_8, window_bounds = array<i64: 128, 128>}, {pipeline_mode = #tpu.pipeline_mode<synchronous>, transform_indices = @transform_9, window_bounds = array<i64: 384, 128>}, {pipeline_mode = #tpu.pipeline_mode<synchronous>, transform_indices = @transform_10, window_bounds = array<i64: 1, 128>}, {pipeline_mode = #tpu.pipeline_mode<synchronous>, transform_indices = @transform_11, window_bounds = array<i64: 128, 128>}, {pipeline_mode = #tpu.pipeline_mode<synchronous>, transform_indices = @transform_12, window_bounds = array<i64: 128, 128>}, {pipeline_mode = #tpu.pipeline_mode<synchronous>, transform_indices = @transform_13, window_bounds = array<i64: 384, 128>}, {pipeline_mode = #tpu.pipeline_mode<synchronous>, transform_indices = @transform_14, window_bounds = array<i64: 128, 64>}, {pipeline_mode = #tpu.pipeline_mode<synchronous>, transform_indices = @transform_15, window_bounds = array<i64: 1, 64>}, {transform_indices = @transform_16, window_bounds = array<i64: 2, 128, 64>}]} {
    %0 = tpu.iota {dimensions = array<i32: 0>} : vector<256x1xi32>
    %c128_i32 = arith.constant 128 : i32
    %c0_i32 = arith.constant 0 : i32
    %1 = arith.cmpi eq, %c128_i32, %c0_i32 : i32
    %c1_i32 = arith.constant 1 : i32
    %2 = arith.select %1, %c1_i32, %c128_i32 : i32
    %3 = vector.broadcast %2 : i32 to vector<256x1xi32>
    %4 = arith.remsi %0, %3 : vector<256x1xi32>
    %c0_i32_0 = arith.constant 0 : i32
    %5 = vector.broadcast %c0_i32_0 : i32 to vector<256x1xi32>
    %6 = arith.cmpi ne, %4, %5 : vector<256x1xi32>
    %c0_i32_1 = arith.constant 0 : i32
    %7 = vector.broadcast %c0_i32_1 : i32 to vector<256x1xi32>
    %8 = arith.cmpi slt, %4, %7 : vector<256x1xi32>
    %c0_i32_2 = arith.constant 0 : i32
    %9 = arith.cmpi slt, %2, %c0_i32_2 : i32
    %10 = vector.broadcast %9 : i1 to vector<256x1xi1>
    %11 = vector.broadcast %10 : vector<256x1xi1> to vector<256x1xi1>
    %12 = arith.xori %8, %11 : vector<256x1xi1>
    %13 = arith.andi %12, %6 : vector<256x1xi1>
    %14 = vector.broadcast %2 : i32 to vector<256x1xi32>
    %15 = arith.addi %4, %14 : vector<256x1xi32>
    %16 = arith.select %13, %15, %4 : vector<256x1xi1>, vector<256x1xi32>
    %c0_i32_3 = arith.constant 0 : i32
    %17 = vector.broadcast %c0_i32_3 : i32 to vector<256x1xi32>
    %18 = arith.cmpi ne, %16, %17 : vector<256x1xi32>
    %19 = arith.extui %18 : vector<256x1xi1> to vector<256x1xi32>
    %20 = arith.sitofp %19 : vector<256x1xi32> to vector<256x1xf32>
    %c127_i32 = arith.constant 127 : i32
    %21 = vector.broadcast %c127_i32 : i32 to vector<256x1xi32>
    %22 = arith.cmpi ne, %16, %21 : vector<256x1xi32>
    %23 = arith.extui %22 : vector<256x1xi1> to vector<256x1xi32>
    %24 = arith.sitofp %23 : vector<256x1xi32> to vector<256x1xf32>
    %c0 = arith.constant 0 : index
    %c0_4 = arith.constant 0 : index
    %25 = vector.load %arg1[%c0, %c0_4] : memref<256x192xbf16, #tpu.memory_space<vmem>>, vector<256x192xbf16>
    %c192 = arith.constant 192 : index
    %c0_5 = arith.constant 0 : index
    %26 = vector.load %arg2[%c192, %c0_5] : memref<576x128xbf16, #tpu.memory_space<vmem>>, vector<192x128xbf16>
    %cst = arith.constant dense<0.000000e+00> : vector<256x128xf32>
    %27 = tpu.matmul %25, %26, %cst {dimension_numbers = #tpu.dot_dimension_numbers<[1], [0], [0], [1], [0, 0, 1, 1], [], []>} : vector<256x192xbf16>, vector<192x128xbf16>, vector<256x128xf32> -> vector<256x128xf32>
    %c0_6 = arith.constant 0 : index
    %c0_7 = arith.constant 0 : index
    %28 = vector.load %arg2[%c0_6, %c0_7] : memref<576x128xbf16, #tpu.memory_space<vmem>>, vector<192x128xbf16>
    %cst_8 = arith.constant dense<0.000000e+00> : vector<256x128xf32>
    %29 = tpu.matmul %25, %28, %cst_8 {dimension_numbers = #tpu.dot_dimension_numbers<[1], [0], [0], [1], [0, 0, 1, 1], [], []>} : vector<256x192xbf16>, vector<192x128xbf16>, vector<256x128xf32> -> vector<256x128xf32>
    %c1_i32_9 = arith.constant 1 : i32
    %30 = tpu.dynamic_rotate %29 by %c1_i32_9 dim 0 : vector<256x128xf32>, i32 -> vector<256x128xf32>
    %31 = vector.broadcast %20 : vector<256x1xf32> to vector<256x128xf32>
    %32 = arith.mulf %30, %31 : vector<256x128xf32>
    %33 = arith.addf %27, %32 : vector<256x128xf32>
    %c384 = arith.constant 384 : index
    %c0_10 = arith.constant 0 : index
    %34 = vector.load %arg2[%c384, %c0_10] : memref<576x128xbf16, #tpu.memory_space<vmem>>, vector<192x128xbf16>
    %cst_11 = arith.constant dense<0.000000e+00> : vector<256x128xf32>
    %35 = tpu.matmul %25, %34, %cst_11 {dimension_numbers = #tpu.dot_dimension_numbers<[1], [0], [0], [1], [0, 0, 1, 1], [], []>} : vector<256x192xbf16>, vector<192x128xbf16>, vector<256x128xf32> -> vector<256x128xf32>
    %c255_i32 = arith.constant 255 : i32
    %36 = tpu.dynamic_rotate %35 by %c255_i32 dim 0 : vector<256x128xf32>, i32 -> vector<256x128xf32>
    %37 = vector.broadcast %24 : vector<256x1xf32> to vector<256x128xf32>
    %38 = arith.mulf %36, %37 : vector<256x128xf32>
    %39 = arith.addf %33, %38 : vector<256x128xf32>
    %c0_12 = arith.constant 0 : index
    %c0_13 = arith.constant 0 : index
    %40 = vector.load %arg3[%c0_12, %c0_13] : memref<1x128xf32, #tpu.memory_space<vmem>>, vector<1x128xf32>
    %41 = vector.broadcast %40 : vector<1x128xf32> to vector<256x128xf32>
    %42 = arith.addf %39, %41 : vector<256x128xf32>
    %c0_14 = arith.constant 0 : index
    %c0_15 = arith.constant 0 : index
    %43 = vector.load %arg4[%c0_14, %c0_15] : memref<128x128xbf16, #tpu.memory_space<vmem>>, vector<128x128xbf16>
    %c0_16 = arith.constant 0 : index
    %c0_17 = arith.constant 0 : index
    %44 = vector.load %arg5[%c0_16, %c0_17] : memref<128x128xbf16, #tpu.memory_space<vmem>>, vector<128x128xbf16>
    %45 = vector.extract_strided_slice %42 {offsets = [0, 0], sizes = [128, 128], strides = [1, 1]} : vector<256x128xf32> to vector<128x128xf32>
    %46 = vector.shape_cast %45 : vector<128x128xf32> to vector<1x128x128xf32>
    %cst_18 = arith.constant dense<0.000000e+00> : vector<1xf32>
    %47 = vector.multi_reduction <add>, %46, %cst_18 [1, 2] : vector<1x128x128xf32> to vector<1xf32>
    %48 = vector.shape_cast %47 : vector<1xf32> to vector<1x1x1xf32>
    %49 = vector.extract %48[0, 0, 0] : f32 from vector<1x1x1xf32>
    %cst_19 = arith.constant 2.44140625E-4 : f32
    %50 = arith.mulf %49, %cst_19 : f32
    %51 = vector.broadcast %50 : f32 to vector<128x128xf32>
    %52 = arith.subf %45, %51 : vector<128x128xf32>
    %53 = arith.mulf %52, %52 : vector<128x128xf32>
    %54 = vector.shape_cast %53 : vector<128x128xf32> to vector<1x128x128xf32>
    %cst_20 = arith.constant dense<0.000000e+00> : vector<1xf32>
    %55 = vector.multi_reduction <add>, %54, %cst_20 [1, 2] : vector<1x128x128xf32> to vector<1xf32>
    %56 = vector.shape_cast %55 : vector<1xf32> to vector<1x1x1xf32>
    %57 = vector.extract %56[0, 0, 0] : f32 from vector<1x1x1xf32>
    %cst_21 = arith.constant 1.228800e+04 : f32
    %58 = arith.mulf %cst_21, %50 : f32
    %59 = arith.mulf %58, %50 : f32
    %60 = arith.subf %57, %59 : f32
    %cst_22 = arith.constant 2.44140625E-4 : f32
    %61 = arith.mulf %60, %cst_22 : f32
    %cst_23 = arith.constant 9.99999997E-7 : f32
    %62 = arith.addf %61, %cst_23 : f32
    %63 = math.rsqrt %62 : f32
    %64 = vector.broadcast %63 : f32 to vector<128x128xf32>
    %65 = arith.mulf %52, %64 : vector<128x128xf32>
    %66 = arith.extf %43 : vector<128x128xbf16> to vector<128x128xf32>
    %67 = arith.mulf %65, %66 : vector<128x128xf32>
    %68 = arith.extf %44 : vector<128x128xbf16> to vector<128x128xf32>
    %69 = arith.addf %67, %68 : vector<128x128xf32>
    %70 = arith.truncf %69 : vector<128x128xf32> to vector<128x128xbf16>
    %c0_24 = arith.constant 0 : index
    %c0_25 = arith.constant 0 : index
    %71 = vector.load %arg18[%c0_24, %c0_25] : memref<256x128xbf16, #tpu.memory_space<vmem>>, vector<128x128xbf16>
    tpu.vector_store %arg18[%c0_24, %c0_25], %70 {strides = array<i32>} : memref<256x128xbf16, #tpu.memory_space<vmem>>, vector<128x128xbf16>,
    %72 = vector.extract_strided_slice %42 {offsets = [128, 0], sizes = [128, 128], strides = [1, 1]} : vector<256x128xf32> to vector<128x128xf32>
    %73 = vector.shape_cast %72 : vector<128x128xf32> to vector<1x128x128xf32>
    %cst_26 = arith.constant dense<0.000000e+00> : vector<1xf32>
    %74 = vector.multi_reduction <add>, %73, %cst_26 [1, 2] : vector<1x128x128xf32> to vector<1xf32>
    %75 = vector.shape_cast %74 : vector<1xf32> to vector<1x1x1xf32>
    %76 = vector.extract %75[0, 0, 0] : f32 from vector<1x1x1xf32>
    %cst_27 = arith.constant 2.44140625E-4 : f32
    %77 = arith.mulf %76, %cst_27 : f32
    %78 = vector.broadcast %77 : f32 to vector<128x128xf32>
    %79 = arith.subf %72, %78 : vector<128x128xf32>
    %80 = arith.mulf %79, %79 : vector<128x128xf32>
    %81 = vector.shape_cast %80 : vector<128x128xf32> to vector<1x128x128xf32>
    %cst_28 = arith.constant dense<0.000000e+00> : vector<1xf32>
    %82 = vector.multi_reduction <add>, %81, %cst_28 [1, 2] : vector<1x128x128xf32> to vector<1xf32>
    %83 = vector.shape_cast %82 : vector<1xf32> to vector<1x1x1xf32>
    %84 = vector.extract %83[0, 0, 0] : f32 from vector<1x1x1xf32>
    %cst_29 = arith.constant 1.228800e+04 : f32
    %85 = arith.mulf %cst_29, %77 : f32
    %86 = arith.mulf %85, %77 : f32
    %87 = arith.subf %84, %86 : f32
    %cst_30 = arith.constant 2.44140625E-4 : f32
    %88 = arith.mulf %87, %cst_30 : f32
    %cst_31 = arith.constant 9.99999997E-7 : f32
    %89 = arith.addf %88, %cst_31 : f32
    %90 = math.rsqrt %89 : f32
    %91 = vector.broadcast %90 : f32 to vector<128x128xf32>
    %92 = arith.mulf %79, %91 : vector<128x128xf32>
    %93 = arith.extf %43 : vector<128x128xbf16> to vector<128x128xf32>
    %94 = arith.mulf %92, %93 : vector<128x128xf32>
    %95 = arith.extf %44 : vector<128x128xbf16> to vector<128x128xf32>
    %96 = arith.addf %94, %95 : vector<128x128xf32>
    %97 = arith.truncf %96 : vector<128x128xf32> to vector<128x128xbf16>
    %c128 = arith.constant 128 : index
    %c0_32 = arith.constant 0 : index
    %98 = vector.load %arg18[%c128, %c0_32] : memref<256x128xbf16, #tpu.memory_space<vmem>>, vector<128x128xbf16>
    tpu.vector_store %arg18[%c128, %c0_32], %97 {strides = array<i32>} : memref<256x128xbf16, #tpu.memory_space<vmem>>, vector<128x128xbf16>,
    %c0_33 = arith.constant 0 : index
    %c0_34 = arith.constant 0 : index
    %99 = vector.load %arg18[%c0_33, %c0_34] : memref<256x128xbf16, #tpu.memory_space<vmem>>, vector<256x128xbf16>
    %c128_35 = arith.constant 128 : index
    %c0_36 = arith.constant 0 : index
    %100 = vector.load %arg6[%c128_35, %c0_36] : memref<384x128xbf16, #tpu.memory_space<vmem>>, vector<128x128xbf16>
    %cst_37 = arith.constant dense<0.000000e+00> : vector<256x128xf32>
    %101 = tpu.matmul %99, %100, %cst_37 {dimension_numbers = #tpu.dot_dimension_numbers<[1], [0], [0], [1], [0, 0, 1, 1], [], []>} : vector<256x128xbf16>, vector<128x128xbf16>, vector<256x128xf32> -> vector<256x128xf32>
    %c0_38 = arith.constant 0 : index
    %c0_39 = arith.constant 0 : index
    %102 = vector.load %arg6[%c0_38, %c0_39] : memref<384x128xbf16, #tpu.memory_space<vmem>>, vector<128x128xbf16>
    %cst_40 = arith.constant dense<0.000000e+00> : vector<256x128xf32>
    %103 = tpu.matmul %99, %102, %cst_40 {dimension_numbers = #tpu.dot_dimension_numbers<[1], [0], [0], [1], [0, 0, 1, 1], [], []>} : vector<256x128xbf16>, vector<128x128xbf16>, vector<256x128xf32> -> vector<256x128xf32>
    %c1_i32_41 = arith.constant 1 : i32
    %104 = tpu.dynamic_rotate %103 by %c1_i32_41 dim 0 : vector<256x128xf32>, i32 -> vector<256x128xf32>
    %105 = vector.broadcast %20 : vector<256x1xf32> to vector<256x128xf32>
    %106 = arith.mulf %104, %105 : vector<256x128xf32>
    %107 = arith.addf %101, %106 : vector<256x128xf32>
    %c256 = arith.constant 256 : index
    %c0_42 = arith.constant 0 : index
    %108 = vector.load %arg6[%c256, %c0_42] : memref<384x128xbf16, #tpu.memory_space<vmem>>, vector<128x128xbf16>
    %cst_43 = arith.constant dense<0.000000e+00> : vector<256x128xf32>
    %109 = tpu.matmul %99, %108, %cst_43 {dimension_numbers = #tpu.dot_dimension_numbers<[1], [0], [0], [1], [0, 0, 1, 1], [], []>} : vector<256x128xbf16>, vector<128x128xbf16>, vector<256x128xf32> -> vector<256x128xf32>
    %c255_i32_44 = arith.constant 255 : i32
    %110 = tpu.dynamic_rotate %109 by %c255_i32_44 dim 0 : vector<256x128xf32>, i32 -> vector<256x128xf32>
    %111 = vector.broadcast %24 : vector<256x1xf32> to vector<256x128xf32>
    %112 = arith.mulf %110, %111 : vector<256x128xf32>
    %113 = arith.addf %107, %112 : vector<256x128xf32>
    %c0_45 = arith.constant 0 : index
    %c0_46 = arith.constant 0 : index
    %114 = vector.load %arg7[%c0_45, %c0_46] : memref<1x128xf32, #tpu.memory_space<vmem>>, vector<1x128xf32>
    %115 = vector.broadcast %114 : vector<1x128xf32> to vector<256x128xf32>
    %116 = arith.addf %113, %115 : vector<256x128xf32>
    %c0_47 = arith.constant 0 : index
    %c0_48 = arith.constant 0 : index
    %117 = vector.load %arg8[%c0_47, %c0_48] : memref<128x128xbf16, #tpu.memory_space<vmem>>, vector<128x128xbf16>
    %c0_49 = arith.constant 0 : index
    %c0_50 = arith.constant 0 : index
    %118 = vector.load %arg9[%c0_49, %c0_50] : memref<128x128xbf16, #tpu.memory_space<vmem>>, vector<128x128xbf16>
    %119 = vector.extract_strided_slice %116 {offsets = [0, 0], sizes = [128, 128], strides = [1, 1]} : vector<256x128xf32> to vector<128x128xf32>
    %120 = vector.shape_cast %119 : vector<128x128xf32> to vector<1x128x128xf32>
    %cst_51 = arith.constant dense<0.000000e+00> : vector<1xf32>
    %121 = vector.multi_reduction <add>, %120, %cst_51 [1, 2] : vector<1x128x128xf32> to vector<1xf32>
    %122 = vector.shape_cast %121 : vector<1xf32> to vector<1x1x1xf32>
    %123 = vector.extract %122[0, 0, 0] : f32 from vector<1x1x1xf32>
    %cst_52 = arith.constant 1.22070313E-4 : f32
    %124 = arith.mulf %123, %cst_52 : f32
    %125 = vector.broadcast %124 : f32 to vector<128x128xf32>
    %126 = arith.subf %119, %125 : vector<128x128xf32>
    %127 = arith.mulf %126, %126 : vector<128x128xf32>
    %128 = vector.shape_cast %127 : vector<128x128xf32> to vector<1x128x128xf32>
    %cst_53 = arith.constant dense<0.000000e+00> : vector<1xf32>
    %129 = vector.multi_reduction <add>, %128, %cst_53 [1, 2] : vector<1x128x128xf32> to vector<1xf32>
    %130 = vector.shape_cast %129 : vector<1xf32> to vector<1x1x1xf32>
    %131 = vector.extract %130[0, 0, 0] : f32 from vector<1x1x1xf32>
    %cst_54 = arith.constant 8.192000e+03 : f32
    %132 = arith.mulf %cst_54, %124 : f32
    %133 = arith.mulf %132, %124 : f32
    %134 = arith.subf %131, %133 : f32
    %cst_55 = arith.constant 1.22070313E-4 : f32
    %135 = arith.mulf %134, %cst_55 : f32
    %cst_56 = arith.constant 9.99999997E-7 : f32
    %136 = arith.addf %135, %cst_56 : f32
    %137 = math.rsqrt %136 : f32
    %138 = vector.broadcast %137 : f32 to vector<128x128xf32>
    %139 = arith.mulf %126, %138 : vector<128x128xf32>
    %140 = arith.extf %117 : vector<128x128xbf16> to vector<128x128xf32>
    %141 = arith.mulf %139, %140 : vector<128x128xf32>
    %142 = arith.extf %118 : vector<128x128xbf16> to vector<128x128xf32>
    %143 = arith.addf %141, %142 : vector<128x128xf32>
    %144 = arith.truncf %143 : vector<128x128xf32> to vector<128x128xbf16>
    %c0_57 = arith.constant 0 : index
    %c0_58 = arith.constant 0 : index
    %145 = vector.load %arg19[%c0_57, %c0_58] : memref<256x128xbf16, #tpu.memory_space<vmem>>, vector<128x128xbf16>
    tpu.vector_store %arg19[%c0_57, %c0_58], %144 {strides = array<i32>} : memref<256x128xbf16, #tpu.memory_space<vmem>>, vector<128x128xbf16>,
    %146 = vector.extract_strided_slice %116 {offsets = [128, 0], sizes = [128, 128], strides = [1, 1]} : vector<256x128xf32> to vector<128x128xf32>
    %147 = vector.shape_cast %146 : vector<128x128xf32> to vector<1x128x128xf32>
    %cst_59 = arith.constant dense<0.000000e+00> : vector<1xf32>
    %148 = vector.multi_reduction <add>, %147, %cst_59 [1, 2] : vector<1x128x128xf32> to vector<1xf32>
    %149 = vector.shape_cast %148 : vector<1xf32> to vector<1x1x1xf32>
    %150 = vector.extract %149[0, 0, 0] : f32 from vector<1x1x1xf32>
    %cst_60 = arith.constant 1.22070313E-4 : f32
    %151 = arith.mulf %150, %cst_60 : f32
    %152 = vector.broadcast %151 : f32 to vector<128x128xf32>
    %153 = arith.subf %146, %152 : vector<128x128xf32>
    %154 = arith.mulf %153, %153 : vector<128x128xf32>
    %155 = vector.shape_cast %154 : vector<128x128xf32> to vector<1x128x128xf32>
    %cst_61 = arith.constant dense<0.000000e+00> : vector<1xf32>
    %156 = vector.multi_reduction <add>, %155, %cst_61 [1, 2] : vector<1x128x128xf32> to vector<1xf32>
    %157 = vector.shape_cast %156 : vector<1xf32> to vector<1x1x1xf32>
    %158 = vector.extract %157[0, 0, 0] : f32 from vector<1x1x1xf32>
    %cst_62 = arith.constant 8.192000e+03 : f32
    %159 = arith.mulf %cst_62, %151 : f32
    %160 = arith.mulf %159, %151 : f32
    %161 = arith.subf %158, %160 : f32
    %cst_63 = arith.constant 1.22070313E-4 : f32
    %162 = arith.mulf %161, %cst_63 : f32
    %cst_64 = arith.constant 9.99999997E-7 : f32
    %163 = arith.addf %162, %cst_64 : f32
    %164 = math.rsqrt %163 : f32
    %165 = vector.broadcast %164 : f32 to vector<128x128xf32>
    %166 = arith.mulf %153, %165 : vector<128x128xf32>
    %167 = arith.extf %117 : vector<128x128xbf16> to vector<128x128xf32>
    %168 = arith.mulf %166, %167 : vector<128x128xf32>
    %169 = arith.extf %118 : vector<128x128xbf16> to vector<128x128xf32>
    %170 = arith.addf %168, %169 : vector<128x128xf32>
    %171 = arith.truncf %170 : vector<128x128xf32> to vector<128x128xbf16>
    %c128_65 = arith.constant 128 : index
    %c0_66 = arith.constant 0 : index
    %172 = vector.load %arg19[%c128_65, %c0_66] : memref<256x128xbf16, #tpu.memory_space<vmem>>, vector<128x128xbf16>
    tpu.vector_store %arg19[%c128_65, %c0_66], %171 {strides = array<i32>} : memref<256x128xbf16, #tpu.memory_space<vmem>>, vector<128x128xbf16>,
    %c0_67 = arith.constant 0 : index
    %c0_68 = arith.constant 0 : index
    %173 = vector.load %arg19[%c0_67, %c0_68] : memref<256x128xbf16, #tpu.memory_space<vmem>>, vector<256x128xbf16>
    %c128_69 = arith.constant 128 : index
    %c0_70 = arith.constant 0 : index
    %174 = vector.load %arg10[%c128_69, %c0_70] : memref<384x128xbf16, #tpu.memory_space<vmem>>, vector<128x128xbf16>
    %cst_71 = arith.constant dense<0.000000e+00> : vector<256x128xf32>
    %175 = tpu.matmul %173, %174, %cst_71 {dimension_numbers = #tpu.dot_dimension_numbers<[1], [0], [0], [1], [0, 0, 1, 1], [], []>} : vector<256x128xbf16>, vector<128x128xbf16>, vector<256x128xf32> -> vector<256x128xf32>
    %c0_72 = arith.constant 0 : index
    %c0_73 = arith.constant 0 : index
    %176 = vector.load %arg10[%c0_72, %c0_73] : memref<384x128xbf16, #tpu.memory_space<vmem>>, vector<128x128xbf16>
    %cst_74 = arith.constant dense<0.000000e+00> : vector<256x128xf32>
    %177 = tpu.matmul %173, %176, %cst_74 {dimension_numbers = #tpu.dot_dimension_numbers<[1], [0], [0], [1], [0, 0, 1, 1], [], []>} : vector<256x128xbf16>, vector<128x128xbf16>, vector<256x128xf32> -> vector<256x128xf32>
    %c1_i32_75 = arith.constant 1 : i32
    %178 = tpu.dynamic_rotate %177 by %c1_i32_75 dim 0 : vector<256x128xf32>, i32 -> vector<256x128xf32>
    %179 = vector.broadcast %20 : vector<256x1xf32> to vector<256x128xf32>
    %180 = arith.mulf %178, %179 : vector<256x128xf32>
    %181 = arith.addf %175, %180 : vector<256x128xf32>
    %c256_76 = arith.constant 256 : index
    %c0_77 = arith.constant 0 : index
    %182 = vector.load %arg10[%c256_76, %c0_77] : memref<384x128xbf16, #tpu.memory_space<vmem>>, vector<128x128xbf16>
    %cst_78 = arith.constant dense<0.000000e+00> : vector<256x128xf32>
    %183 = tpu.matmul %173, %182, %cst_78 {dimension_numbers = #tpu.dot_dimension_numbers<[1], [0], [0], [1], [0, 0, 1, 1], [], []>} : vector<256x128xbf16>, vector<128x128xbf16>, vector<256x128xf32> -> vector<256x128xf32>
    %c255_i32_79 = arith.constant 255 : i32
    %184 = tpu.dynamic_rotate %183 by %c255_i32_79 dim 0 : vector<256x128xf32>, i32 -> vector<256x128xf32>
    %185 = vector.broadcast %24 : vector<256x1xf32> to vector<256x128xf32>
    %186 = arith.mulf %184, %185 : vector<256x128xf32>
    %187 = arith.addf %181, %186 : vector<256x128xf32>
    %c0_80 = arith.constant 0 : index
    %c0_81 = arith.constant 0 : index
    %188 = vector.load %arg11[%c0_80, %c0_81] : memref<1x128xf32, #tpu.memory_space<vmem>>, vector<1x128xf32>
    %189 = vector.broadcast %188 : vector<1x128xf32> to vector<256x128xf32>
    %190 = arith.addf %187, %189 : vector<256x128xf32>
    %c0_82 = arith.constant 0 : index
    %c0_83 = arith.constant 0 : index
    %191 = vector.load %arg12[%c0_82, %c0_83] : memref<128x128xbf16, #tpu.memory_space<vmem>>, vector<128x128xbf16>
    %c0_84 = arith.constant 0 : index
    %c0_85 = arith.constant 0 : index
    %192 = vector.load %arg13[%c0_84, %c0_85] : memref<128x128xbf16, #tpu.memory_space<vmem>>, vector<128x128xbf16>
    %193 = vector.extract_strided_slice %190 {offsets = [0, 0], sizes = [128, 128], strides = [1, 1]} : vector<256x128xf32> to vector<128x128xf32>
    %194 = vector.shape_cast %193 : vector<128x128xf32> to vector<1x128x128xf32>
    %cst_86 = arith.constant dense<0.000000e+00> : vector<1xf32>
    %195 = vector.multi_reduction <add>, %194, %cst_86 [1, 2] : vector<1x128x128xf32> to vector<1xf32>
    %196 = vector.shape_cast %195 : vector<1xf32> to vector<1x1x1xf32>
    %197 = vector.extract %196[0, 0, 0] : f32 from vector<1x1x1xf32>
    %cst_87 = arith.constant 8.13802107E-5 : f32
    %198 = arith.mulf %197, %cst_87 : f32
    %199 = vector.broadcast %198 : f32 to vector<128x128xf32>
    %200 = arith.subf %193, %199 : vector<128x128xf32>
    %201 = arith.mulf %200, %200 : vector<128x128xf32>
    %202 = vector.shape_cast %201 : vector<128x128xf32> to vector<1x128x128xf32>
    %cst_88 = arith.constant dense<0.000000e+00> : vector<1xf32>
    %203 = vector.multi_reduction <add>, %202, %cst_88 [1, 2] : vector<1x128x128xf32> to vector<1xf32>
    %204 = vector.shape_cast %203 : vector<1xf32> to vector<1x1x1xf32>
    %205 = vector.extract %204[0, 0, 0] : f32 from vector<1x1x1xf32>
    %cst_89 = arith.constant 4.096000e+03 : f32
    %206 = arith.mulf %cst_89, %198 : f32
    %207 = arith.mulf %206, %198 : f32
    %208 = arith.subf %205, %207 : f32
    %cst_90 = arith.constant 8.13802107E-5 : f32
    %209 = arith.mulf %208, %cst_90 : f32
    %cst_91 = arith.constant 9.99999997E-7 : f32
    %210 = arith.addf %209, %cst_91 : f32
    %211 = math.rsqrt %210 : f32
    %212 = vector.broadcast %211 : f32 to vector<128x128xf32>
    %213 = arith.mulf %200, %212 : vector<128x128xf32>
    %214 = arith.extf %191 : vector<128x128xbf16> to vector<128x128xf32>
    %215 = arith.mulf %213, %214 : vector<128x128xf32>
    %216 = arith.extf %192 : vector<128x128xbf16> to vector<128x128xf32>
    %217 = arith.addf %215, %216 : vector<128x128xf32>
    %218 = arith.truncf %217 : vector<128x128xf32> to vector<128x128xbf16>
    %c0_92 = arith.constant 0 : index
    %c0_93 = arith.constant 0 : index
    %219 = vector.load %arg18[%c0_92, %c0_93] : memref<256x128xbf16, #tpu.memory_space<vmem>>, vector<128x128xbf16>
    tpu.vector_store %arg18[%c0_92, %c0_93], %218 {strides = array<i32>} : memref<256x128xbf16, #tpu.memory_space<vmem>>, vector<128x128xbf16>,
    %220 = vector.extract_strided_slice %190 {offsets = [128, 0], sizes = [128, 128], strides = [1, 1]} : vector<256x128xf32> to vector<128x128xf32>
    %221 = vector.shape_cast %220 : vector<128x128xf32> to vector<1x128x128xf32>
    %cst_94 = arith.constant dense<0.000000e+00> : vector<1xf32>
    %222 = vector.multi_reduction <add>, %221, %cst_94 [1, 2] : vector<1x128x128xf32> to vector<1xf32>
    %223 = vector.shape_cast %222 : vector<1xf32> to vector<1x1x1xf32>
    %224 = vector.extract %223[0, 0, 0] : f32 from vector<1x1x1xf32>
    %cst_95 = arith.constant 8.13802107E-5 : f32
    %225 = arith.mulf %224, %cst_95 : f32
    %226 = vector.broadcast %225 : f32 to vector<128x128xf32>
    %227 = arith.subf %220, %226 : vector<128x128xf32>
    %228 = arith.mulf %227, %227 : vector<128x128xf32>
    %229 = vector.shape_cast %228 : vector<128x128xf32> to vector<1x128x128xf32>
    %cst_96 = arith.constant dense<0.000000e+00> : vector<1xf32>
    %230 = vector.multi_reduction <add>, %229, %cst_96 [1, 2] : vector<1x128x128xf32> to vector<1xf32>
    %231 = vector.shape_cast %230 : vector<1xf32> to vector<1x1x1xf32>
    %232 = vector.extract %231[0, 0, 0] : f32 from vector<1x1x1xf32>
    %cst_97 = arith.constant 4.096000e+03 : f32
    %233 = arith.mulf %cst_97, %225 : f32
    %234 = arith.mulf %233, %225 : f32
    %235 = arith.subf %232, %234 : f32
    %cst_98 = arith.constant 8.13802107E-5 : f32
    %236 = arith.mulf %235, %cst_98 : f32
    %cst_99 = arith.constant 9.99999997E-7 : f32
    %237 = arith.addf %236, %cst_99 : f32
    %238 = math.rsqrt %237 : f32
    %239 = vector.broadcast %238 : f32 to vector<128x128xf32>
    %240 = arith.mulf %227, %239 : vector<128x128xf32>
    %241 = arith.extf %191 : vector<128x128xbf16> to vector<128x128xf32>
    %242 = arith.mulf %240, %241 : vector<128x128xf32>
    %243 = arith.extf %192 : vector<128x128xbf16> to vector<128x128xf32>
    %244 = arith.addf %242, %243 : vector<128x128xf32>
    %245 = arith.truncf %244 : vector<128x128xf32> to vector<128x128xbf16>
    %c128_100 = arith.constant 128 : index
    %c0_101 = arith.constant 0 : index
    %246 = vector.load %arg18[%c128_100, %c0_101] : memref<256x128xbf16, #tpu.memory_space<vmem>>, vector<128x128xbf16>
    tpu.vector_store %arg18[%c128_100, %c0_101], %245 {strides = array<i32>} : memref<256x128xbf16, #tpu.memory_space<vmem>>, vector<128x128xbf16>,
    %c0_102 = arith.constant 0 : index
    %c0_103 = arith.constant 0 : index
    %247 = vector.load %arg18[%c0_102, %c0_103] : memref<256x128xbf16, #tpu.memory_space<vmem>>, vector<256x128xbf16>
    %c128_104 = arith.constant 128 : index
    %c0_105 = arith.constant 0 : index
    %248 = vector.load %arg14[%c128_104, %c0_105] : memref<384x128xbf16, #tpu.memory_space<vmem>>, vector<128x128xbf16>
    %cst_106 = arith.constant dense<0.000000e+00> : vector<256x128xf32>
    %249 = tpu.matmul %247, %248, %cst_106 {dimension_numbers = #tpu.dot_dimension_numbers<[1], [0], [0], [1], [0, 0, 1, 1], [], []>} : vector<256x128xbf16>, vector<128x128xbf16>, vector<256x128xf32> -> vector<256x128xf32>
    %c0_107 = arith.constant 0 : index
    %c0_108 = arith.constant 0 : index
    %250 = vector.load %arg14[%c0_107, %c0_108] : memref<384x128xbf16, #tpu.memory_space<vmem>>, vector<128x128xbf16>
    %cst_109 = arith.constant dense<0.000000e+00> : vector<256x128xf32>
    %251 = tpu.matmul %247, %250, %cst_109 {dimension_numbers = #tpu.dot_dimension_numbers<[1], [0], [0], [1], [0, 0, 1, 1], [], []>} : vector<256x128xbf16>, vector<128x128xbf16>, vector<256x128xf32> -> vector<256x128xf32>
    %c1_i32_110 = arith.constant 1 : i32
    %252 = tpu.dynamic_rotate %251 by %c1_i32_110 dim 0 : vector<256x128xf32>, i32 -> vector<256x128xf32>
    %253 = vector.broadcast %20 : vector<256x1xf32> to vector<256x128xf32>
    %254 = arith.mulf %252, %253 : vector<256x128xf32>
    %255 = arith.addf %249, %254 : vector<256x128xf32>
    %c256_111 = arith.constant 256 : index
    %c0_112 = arith.constant 0 : index
    %256 = vector.load %arg14[%c256_111, %c0_112] : memref<384x128xbf16, #tpu.memory_space<vmem>>, vector<128x128xbf16>
    %cst_113 = arith.constant dense<0.000000e+00> : vector<256x128xf32>
    %257 = tpu.matmul %247, %256, %cst_113 {dimension_numbers = #tpu.dot_dimension_numbers<[1], [0], [0], [1], [0, 0, 1, 1], [], []>} : vector<256x128xbf16>, vector<128x128xbf16>, vector<256x128xf32> -> vector<256x128xf32>
    %c255_i32_114 = arith.constant 255 : i32
    %258 = tpu.dynamic_rotate %257 by %c255_i32_114 dim 0 : vector<256x128xf32>, i32 -> vector<256x128xf32>
    %259 = vector.broadcast %24 : vector<256x1xf32> to vector<256x128xf32>
    %260 = arith.mulf %258, %259 : vector<256x128xf32>
    %261 = arith.addf %255, %260 : vector<256x128xf32>
    %262 = arith.truncf %261 : vector<256x128xf32> to vector<256x128xbf16>
    %c0_115 = arith.constant 0 : index
    %c0_116 = arith.constant 0 : index
    %263 = vector.load %arg15[%c0_115, %c0_116] : memref<128x64xbf16, #tpu.memory_space<vmem>>, vector<128x64xbf16>
    %cst_117 = arith.constant dense<0.000000e+00> : vector<256x64xf32>
    %264 = tpu.matmul %262, %263, %cst_117 {dimension_numbers = #tpu.dot_dimension_numbers<[1], [0], [0], [1], [0, 0, 1, 1], [], []>} : vector<256x128xbf16>, vector<128x64xbf16>, vector<256x64xf32> -> vector<256x64xf32>
    %c0_118 = arith.constant 0 : index
    %c0_119 = arith.constant 0 : index
    %265 = vector.load %arg16[%c0_118, %c0_119] : memref<1x64xf32, #tpu.memory_space<vmem>>, vector<1x64xf32>
    %266 = vector.broadcast %265 : vector<1x64xf32> to vector<256x64xf32>
    %267 = arith.addf %264, %266 : vector<256x64xf32>
    %268 = vector.extract_strided_slice %267 {offsets = [0, 0], sizes = [128, 64], strides = [1, 1]} : vector<256x64xf32> to vector<128x64xf32>
    %c0_120 = arith.constant 0 : index
    %c0_121 = arith.constant 0 : index
    %c0_122 = arith.constant 0 : index
    %269 = vector.load %arg17[%c0_120, %c0_121, %c0_122] : memref<2x128x64xf32, #tpu.memory_space<vmem>>, vector<1x128x64xf32>
    %270 = vector.shape_cast %269 : vector<1x128x64xf32> to vector<128x64xf32>
    %271 = vector.shape_cast %268 : vector<128x64xf32> to vector<1x128x64xf32>
    tpu.vector_store %arg17[%c0_120, %c0_121, %c0_122], %271 {strides = array<i32>} : memref<2x128x64xf32, #tpu.memory_space<vmem>>, vector<1x128x64xf32>,
    %272 = vector.extract_strided_slice %267 {offsets = [128, 0], sizes = [128, 64], strides = [1, 1]} : vector<256x64xf32> to vector<128x64xf32>
    %c1 = arith.constant 1 : index
    %c0_123 = arith.constant 0 : index
    %c0_124 = arith.constant 0 : index
    %273 = vector.load %arg17[%c1, %c0_123, %c0_124] : memref<2x128x64xf32, #tpu.memory_space<vmem>>, vector<1x128x64xf32>
    %274 = vector.shape_cast %273 : vector<1x128x64xf32> to vector<128x64xf32>
    %275 = vector.shape_cast %272 : vector<128x64xf32> to vector<1x128x64xf32>
    tpu.vector_store %arg17[%c1, %c0_123, %c0_124], %275 {strides = array<i32>} : memref<2x128x64xf32, #tpu.memory_space<vmem>>, vector<1x128x64xf32>,
    return
  }
  func.func @transform_0(%arg0: i32) -> (i32, i32) {
    %c0_i32 = arith.constant 0 : i32
    %c0_i32_0 = arith.constant 0 : i32
    return %arg0, %c0_i32 : i32, i32
  }
  func.func @transform_1(%arg0: i32) -> (i32, i32) {
    %c0_i32 = arith.constant 0 : i32
    %c0_i32_0 = arith.constant 0 : i32
    %c0_i32_1 = arith.constant 0 : i32
    return %c0_i32, %c0_i32_0 : i32, i32
  }
  func.func @transform_2(%arg0: i32) -> (i32, i32) {
    %c0_i32 = arith.constant 0 : i32
    %c0_i32_0 = arith.constant 0 : i32
    %c0_i32_1 = arith.constant 0 : i32
    return %c0_i32, %c0_i32_0 : i32, i32
  }
  func.func @transform_3(%arg0: i32) -> (i32, i32) {
    %c0_i32 = arith.constant 0 : i32
    %c0_i32_0 = arith.constant 0 : i32
    %c0_i32_1 = arith.constant 0 : i32
    return %c0_i32, %c0_i32_0 : i32, i32
  }
  func.func @transform_4(%arg0: i32) -> (i32, i32) {
    %c0_i32 = arith.constant 0 : i32
    %c0_i32_0 = arith.constant 0 : i32
    %c0_i32_1 = arith.constant 0 : i32
    return %c0_i32, %c0_i32_0 : i32, i32
  }
  func.func @transform_5(%arg0: i32) -> (i32, i32) {
    %c0_i32 = arith.constant 0 : i32
    %c0_i32_0 = arith.constant 0 : i32
    %c0_i32_1 = arith.constant 0 : i32
    return %c0_i32, %c0_i32_0 : i32, i32
  }
  func.func @transform_6(%arg0: i32) -> (i32, i32) {
    %c0_i32 = arith.constant 0 : i32
    %c0_i32_0 = arith.constant 0 : i32
    %c0_i32_1 = arith.constant 0 : i32
    return %c0_i32, %c0_i32_0 : i32, i32
  }
  func.func @transform_7(%arg0: i32) -> (i32, i32) {
    %c0_i32 = arith.constant 0 : i32
    %c0_i32_0 = arith.constant 0 : i32
    %c0_i32_1 = arith.constant 0 : i32
    return %c0_i32, %c0_i32_0 : i32, i32
  }
  func.func @transform_8(%arg0: i32) -> (i32, i32) {
    %c0_i32 = arith.constant 0 : i32
    %c0_i32_0 = arith.constant 0 : i32
    %c0_i32_1 = arith.constant 0 : i32
    return %c0_i32, %c0_i32_0 : i32, i32
  }
  func.func @transform_9(%arg0: i32) -> (i32, i32) {
    %c0_i32 = arith.constant 0 : i32
    %c0_i32_0 = arith.constant 0 : i32
    %c0_i32_1 = arith.constant 0 : i32
    return %c0_i32, %c0_i32_0 : i32, i32
  }
  func.func @transform_10(%arg0: i32) -> (i32, i32) {
    %c0_i32 = arith.constant 0 : i32
    %c0_i32_0 = arith.constant 0 : i32
    %c0_i32_1 = arith.constant 0 : i32
    return %c0_i32, %c0_i32_0 : i32, i32
  }
  func.func @transform_11(%arg0: i32) -> (i32, i32) {
    %c0_i32 = arith.constant 0 : i32
    %c0_i32_0 = arith.constant 0 : i32
    %c0_i32_1 = arith.constant 0 : i32
    return %c0_i32, %c0_i32_0 : i32, i32
  }
  func.func @transform_12(%arg0: i32) -> (i32, i32) {
    %c0_i32 = arith.constant 0 : i32
    %c0_i32_0 = arith.constant 0 : i32
    %c0_i32_1 = arith.constant 0 : i32
    return %c0_i32, %c0_i32_0 : i32, i32
  }
  func.func @transform_13(%arg0: i32) -> (i32, i32) {
    %c0_i32 = arith.constant 0 : i32
    %c0_i32_0 = arith.constant 0 : i32
    %c0_i32_1 = arith.constant 0 : i32
    return %c0_i32, %c0_i32_0 : i32, i32
  }
  func.func @transform_14(%arg0: i32) -> (i32, i32) {
    %c0_i32 = arith.constant 0 : i32
    %c0_i32_0 = arith.constant 0 : i32
    %c0_i32_1 = arith.constant 0 : i32
    return %c0_i32, %c0_i32_0 : i32, i32
  }
  func.func @transform_15(%arg0: i32) -> (i32, i32) {
    %c0_i32 = arith.constant 0 : i32
    %c0_i32_0 = arith.constant 0 : i32
    %c0_i32_1 = arith.constant 0 : i32
    return %c0_i32, %c0_i32_0 : i32, i32
  }
  func.func @transform_16(%arg0: i32) -> (i32, i32, i32) {
    %c0_i32 = arith.constant 0 : i32
    %c0_i32_0 = arith.constant 0 : i32
    %c0_i32_1 = arith.constant 0 : i32
    return %arg0, %c0_i32, %c0_i32_0 : i32, i32, i32
  }
}

</mosaic_0001>

<bundles_post_ra>
// kernel: lightconv_forward.1
= control target key start
LH: loop header
LB: loop body
LE: loop exit
PB: predicated region body
PF: predicated region fallthrough
CT: control target
= control target key end

     0   :  { %v7542_v0 = vmov 0   ;;  %vm959_vm0 = vcmask 523264   ;;  %s11514_s1 = inlined_call_operand.vmem [shape: bf16[576,128], index: 1, kind: input, shape index: {}]   ;;  %s11515_s0 = inlined_call_operand.vmem [shape: bf16[256,192], index: 0, kind: input, shape index: {}]   ;;  %s11516_s2 = inlined_call_operand.vmem [shape: f32[1,128], index: 2, kind: input, shape index: {}]   ;;  %s11517_s5 = inlined_call_operand.vmem [shape: bf16[384,128], index: 5, kind: input, shape index: {}]   ;;  %s11518_s3 = inlined_call_operand.vmem [shape: bf16[128,128], index: 3, kind: input, shape index: {}]   ;;  %s11519_s4 = inlined_call_operand.vmem [shape: bf16[128,128], index: 4, kind: input, shape index: {}]   ;;  %s11520_s6 = inlined_call_operand.vmem [shape: f32[1,128], index: 6, kind: input, shape index: {}]   ;;  %s11521_s9 = inlined_call_operand.vmem [shape: bf16[384,128], index: 9, kind: input, shape index: {}]   ;;  %s11522_s7 = inlined_call_operand.vmem [shape: bf16[128,128], index: 7, kind: input, shape index: {}]   ;;  %s11523_s8 = inlined_call_operand.vmem [shape: bf16[128,128], index: 8, kind: input, shape index: {}]   ;;  %s11524_s10 = inlined_call_operand.vmem [shape: f32[1,128], index: 10, kind: input, shape index: {}]   ;;  %s11525_s13 = inlined_call_operand.vmem [shape: bf16[384,128], index: 13, kind: input, shape index: {}]   ;;  %s11526_s11 = inlined_call_operand.vmem [shape: bf16[128,128], index: 11, kind: input, shape index: {}]   ;;  %s11527_s12 = inlined_call_operand.vmem [shape: bf16[128,128], index: 12, kind: input, shape index: {}]   ;;  %s11528_s14 = inlined_call_operand.vmem [shape: bf16[128,64], index: 14, kind: input, shape index: {}]   ;;  %s11529_s15 = inlined_call_operand.vmem [shape: f32[1,64], index: 15, kind: input, shape index: {}]   ;;  %s11530_s16 = inlined_call_operand.vmem [shape: f32[2,128,64], index: 16, kind: output, shape index: {}]  }
   0x1   :  { %11644 = sst [smem:[#allocation35_spill]] %s11514_s1  ;;  %1008 = vmatprep.subr.bf16.mxu0 %v7542_v0  ;;  %1338 = vmatprep.subr.bf16.mxu1 %v7542_v0  ;;  %v7687_v15 = vld [vmem:[%s11515_s0 + $0x4] ss:$8 sps:$4 sm:$0xff]   ;;  %v7737_v26 = vld [vmem:[%s11515_s0] ss:$8 sps:$4 sm:$0xff]  }
   0x2   :  { %s11645_s23 = sld [smem:[#allocation35_spill]]  ;;  %6202 = vmatprep.mubr.msk.bf16.mxu0 %vm959_vm0, %v7687_v15  ;;  %6230 = vmatprep.mubr.msk.bf16.mxu1 %vm959_vm0, %v7687_v15  ;;  %v7746_v28 = vld [vmem:[%s11515_s0 + $0x14] ss:$8 sps:$4 sm:$0xff]   ;;  %v7761_v30 = vld [vmem:[%s11515_s0 + $0x10] ss:$8 sps:$4 sm:$0xff]  }
   0x3   :  { %v7766_v31 = vld [vmem:[%s11515_s0 + $0x24] ss:$8 sps:$4 sm:$0xff]   ;;  %v7785_v34 = vld [vmem:[%s11515_s0 + $0x20] ss:$8 sps:$4 sm:$0xff]   ;;  %v7790_v35 = vld [vmem:[%s11515_s0 + $0x34] ss:$8 sps:$4 sm:$0xff]  }
   0x4   :  { %v7809_v38 = vld [vmem:[%s11515_s0 + $0x30] ss:$8 sps:$4 sm:$0xff]   ;;  %v7814_v39 = vld [vmem:[%s11515_s0 + $0x44] ss:$8 sps:$4 sm:$0xff]   ;;  %v7833_v42 = vld [vmem:[%s11515_s0 + $0x40] ss:$8 sps:$4 sm:$0xff]  }
   0x5   :  { %v7838_v43 = vld [vmem:[%s11515_s0 + $0x54] ss:$8 sps:$4 sm:$0xff]   ;;  %v7857_v46 = vld [vmem:[%s11515_s0 + $0x50] ss:$8 sps:$4 sm:$0xff]   ;;  %v7862_v47 = vld [vmem:[%s11515_s0 + $0x64] ss:$8 sps:$4 sm:$0xff]  }
   0x6   :  { %v7881_v50 = vld [vmem:[%s11515_s0 + $0x60] ss:$8 sps:$4 sm:$0xff]   ;;  %v7886_v51 = vld [vmem:[%s11515_s0 + $0x74] ss:$8 sps:$4 sm:$0xff]   ;;  %v7897_v52 = vld [vmem:[%s11515_s0 + $0x70] ss:$8 sps:$4 sm:$0xff]  }
   0x7   :  { %v7902_v53 = vld [vmem:[%s11515_s0 + $0x84] ss:$8 sps:$4 sm:$0xff]   ;;  %v7422_v54 = vld [vmem:[%s11515_s0 + $0x80] ss:$8 sps:$4 sm:$0xff]   ;;  %v7424_v55 = vld [vmem:[%s11515_s0 + $0x94] ss:$8 sps:$4 sm:$0xff]  }
   0x8   :  { %v7366_v1 = vld [vmem:[%s11645_s23] sm:$0xff]   ;;  %v7368_v3 = vld [vmem:[%s11645_s23 + $0x8] sm:$0xff]   ;;  %v7370_v5 = vld [vmem:[%s11645_s23 + $0x10] sm:$0xff]  }
   0x9   :  { %v7367_v2 = vld [vmem:[%s11645_s23 + $0x60] sm:$0xff]   ;;  %1009 = vmatpush1.bf16.msra.mxu0 %v7366_v1  ;;  %v7369_v4 = vld [vmem:[%s11645_s23 + $0x68] sm:$0xff]   ;;  %v7371_v6 = vld [vmem:[%s11645_s23 + $0x70] sm:$0xff]  }
   0xa   :  { %1010 = vmatprep.subr.bf16.mxu0 %v7542_v0  ;;  %1339 = vmatpush1.bf16.msra.mxu1 %v7367_v2  ;;  %v7372_v7 = vld [vmem:[%s11645_s23 + $0x18] sm:$0xff]   ;;  %v7374_v9 = vld [vmem:[%s11645_s23 + $0x20] sm:$0xff]   ;;  %v7376_v11 = vld [vmem:[%s11645_s23 + $0x28] sm:$0xff]  }
   0xb   :  { %1340 = vmatprep.subr.bf16.mxu1 %v7542_v0  ;;  %v7373_v8 = vld [vmem:[%s11645_s23 + $0x78] sm:$0xff]   ;;  %v7375_v10 = vld [vmem:[%s11645_s23 + $0x80] sm:$0xff]   ;;  %v7377_v12 = vld [vmem:[%s11645_s23 + $0x88] sm:$0xff]  }
   0xc   :  { %v7378_v13 = vld [vmem:[%s11645_s23 + $0x30] sm:$0xff]   ;;  %v7380_v16 = vld [vmem:[%s11645_s23 + $0x38] sm:$0xff]   ;;  %v7382_v18 = vld [vmem:[%s11645_s23 + $0x40] sm:$0xff]  }
   0xd   :  { %1011 = vmatpush1.bf16.msra.mxu0 %v7368_v3  ;;  %v7379_v14 = vld [vmem:[%s11645_s23 + $0x90] sm:$0xff]   ;;  %v7381_v17 = vld [vmem:[%s11645_s23 + $0x98] sm:$0xff]   ;;  %v7383_v19 = vld [vmem:[%s11645_s23 + $0xa0] sm:$0xff]  }
   0xe   :  { %1012 = vmatprep.subr.bf16.mxu0 %v7542_v0  ;;  %1341 = vmatpush1.bf16.msra.mxu1 %v7369_v4  ;;  %v7384_v20 = vld [vmem:[%s11645_s23 + $0x48] sm:$0xff]   ;;  %v7386_v22 = vld [vmem:[%s11645_s23 + $0x50] sm:$0xff]   ;;  %v7388_v24 = vld [vmem:[%s11645_s23 + $0x58] sm:$0xff]  }
   0xf   :  { %1342 = vmatprep.subr.bf16.mxu1 %v7542_v0  ;;  %v7385_v21 = vld [vmem:[%s11645_s23 + $0xa8] sm:$0xff]   ;;  %v7387_v23 = vld [vmem:[%s11645_s23 + $0xb0] sm:$0xff]   ;;  %v7392_v25 = vld [vmem:[%s11645_s23 + $0xb8] sm:$0xff]  }
  0x10   :  { %v7393_v27 = vld [vmem:[%s11645_s23 + $0xc0] sm:$0xff]   ;;  %v7397_v29 = vld [vmem:[%s11645_s23 + $0xc8] sm:$0xff]   ;;  %v7403_v32 = vld [vmem:[%s11645_s23 + $0xd0] sm:$0xff]  }
  0x11   :  { %1013 = vmatpush1.bf16.msra.mxu0 %v7370_v5  ;;  %v7408_v33 = vld [vmem:[%s11645_s23 + $0xd8] sm:$0xff]   ;;  %v7412_v36 = vld [vmem:[%s11645_s23 + $0xe0] sm:$0xff]   ;;  %v7418_v37 = vld [vmem:[%s11645_s23 + $0xe8] sm:$0xff]   ;;  %v54_v5 = vlaneseq }
  0x12   :  { %1014 = vmatprep.subr.bf16.mxu0 %v7542_v0  ;;  %1343 = vmatpush1.bf16.msra.mxu1 %v7371_v6  ;;  %v7423_v40 = vld [vmem:[%s11645_s23 + $0xf0] sm:$0xff]   ;;  %v7427_v41 = vld [vmem:[%s11645_s23 + $0xf8] sm:$0xff]   ;;  %v7433_v44 = vld [vmem:[%s11645_s23 + $0x100] sm:$0xff]  }
  0x13   :  { %1344 = vmatprep.subr.bf16.mxu1 %v7542_v0  ;;  %v7438_v45 = vld [vmem:[%s11645_s23 + $0x108] sm:$0xff]   ;;  %v7442_v48 = vld [vmem:[%s11645_s23 + $0x110] sm:$0xff]   ;;  %v7448_v49 = vld [vmem:[%s11645_s23 + $0x118] sm:$0xff]   ;;  %v8034_v6 = vshrl.u32 %v54_v5, 7 }
  0x14   :  { %v7426_v56 = vld [vmem:[%s11515_s0 + $0x90] ss:$8 sps:$4 sm:$0xff]   ;;  %v7428_v57 = vld [vmem:[%s11515_s0 + $0xa4] ss:$8 sps:$4 sm:$0xff]   ;;  %v7430_v58 = vld [vmem:[%s11515_s0 + $0xa0] ss:$8 sps:$4 sm:$0xff]  }
  0x15   :  { %1015 = vmatpush1.bf16.msra.mxu0 %v7372_v7  ;;  %v7431_v59 = vld [vmem:[%s11515_s0 + $0xb4] ss:$8 sps:$4 sm:$0xff]   ;;  %v7937_v60 = vld [vmem:[%s11515_s0 + $0xb0] ss:$8 sps:$4 sm:$0xff]   ;;  %v7942_v61 = vld [vmem:[%s11515_s0 + $0xc4] ss:$8 sps:$4 sm:$0xff]  }
  0x16   :  { %1016 = vmatprep.subr.bf16.mxu0 %v7542_v0  ;;  %1345 = vmatpush1.bf16.msra.mxu1 %v7373_v8  ;;  %v7953_v62 = vld [vmem:[%s11515_s0 + $0xc0] ss:$8 sps:$4 sm:$0xff]   ;;  %v7958_v63 = vld [vmem:[%s11515_s0 + $0xd4] ss:$8 sps:$4 sm:$0xff]   ;;  %v7974_v1 = vld [vmem:[%s11515_s0 + $0xe4] ss:$8 sps:$4 sm:$0xff]  }
  0x17   :  { %1346 = vmatprep.subr.bf16.mxu1 %v7542_v0  ;;  %v7985_v2 = vld [vmem:[%s11515_s0 + $0xe0] ss:$8 sps:$4 sm:$0xff]   ;;  %v7990_v3 = vld [vmem:[%s11515_s0 + $0xf4] ss:$8 sps:$4 sm:$0xff]   ;;  %v8001_v4 = vld [vmem:[%s11515_s0 + $0xf0] ss:$8 sps:$4 sm:$0xff]  }
  0x18   :  { %11646 = vst [vmem:[#allocation4_spill] sm:$0xff] %v8034_v6  ;;  %vm1201_vm1 = vcmp.lt.s32.totalorder %v8034_v6, 1  ;;  %vm1788_vm4 = vcmp.lt.s32.totalorder %v8034_v6, 7 }
  0x19   :  { %1017 = vmatpush1.bf16.msra.mxu0 %v7374_v9 }
  0x1a   :  { %1018 = vmatprep.subr.bf16.mxu0 %v7542_v0  ;;  %1347 = vmatpush1.bf16.msra.mxu1 %v7375_v10 }
  0x1b   :  { %1348 = vmatprep.subr.bf16.mxu1 %v7542_v0 }
  0x1d   :  { %1019 = vmatpush1.bf16.msra.mxu0 %v7376_v11 }
  0x1e   :  { %1020 = vmatprep.subr.bf16.mxu0 %v7542_v0  ;;  %1349 = vmatpush1.bf16.msra.mxu1 %v7377_v12 }
  0x1f   :  { %1350 = vmatprep.subr.bf16.mxu1 %v7542_v0 }
  0x21   :  { %1021 = vmatpush1.bf16.msra.mxu0 %v7378_v13 }
  0x22   :  { %1022 = vmatprep.subr.bf16.mxu0 %v7542_v0  ;;  %1351 = vmatpush1.bf16.msra.mxu1 %v7379_v14 }
  0x23   :  { %1352 = vmatprep.subr.bf16.mxu1 %v7542_v0 }
  0x25   :  { %1023 = vmatpush1.bf16.msra.mxu0 %v7380_v16 }
  0x26   :  { %1024 = vmatprep.subr.bf16.mxu0 %v7542_v0  ;;  %1353 = vmatpush1.bf16.msra.mxu1 %v7381_v17 }
  0x27   :  { %1354 = vmatprep.subr.bf16.mxu1 %v7542_v0 }
  0x29   :  { %1025 = vmatpush1.bf16.msra.mxu0 %v7382_v18 }
  0x2a   :  { %1026 = vmatprep.subr.bf16.mxu0 %v7542_v0  ;;  %1355 = vmatpush1.bf16.msra.mxu1 %v7383_v19 }
  0x2b   :  { %1356 = vmatprep.subr.bf16.mxu1 %v7542_v0 }
  0x2d   :  { %1027 = vmatpush1.bf16.msra.mxu0 %v7384_v20 }
  0x2e   :  { %1028 = vmatprep.subr.bf16.mxu0 %v7542_v0  ;;  %1357 = vmatpush1.bf16.msra.mxu1 %v7385_v21 }
  0x2f   :  { %1358 = vmatprep.subr.bf16.mxu1 %v7542_v0 }
  0x31   :  { %1029 = vmatpush1.bf16.msra.mxu0 %v7386_v22 }
  0x32   :  { %1030 = vmatprep.subr.bf16.mxu0 %v7542_v0  ;;  %1359 = vmatpush1.bf16.msra.mxu1 %v7387_v23 }
  0x33   :  { %1360 = vmatprep.subr.bf16.mxu1 %v7542_v0 }
  0x35   :  { %1031 = vmatpush1.bf16.msra.mxu0 %v7388_v24 }
  0x36   :  { %1361 = vmatpush1.bf16.msra.mxu1 %v7392_v25  ;;  %1595 = vmatprep.subr.bf16.mxu0 %v7542_v0 }
  0x38   :  { %1041 = vmatmul.mubr.bf16.vlgmr.msra.gmra.mrb[0].mxu0 %v7737_v26 }
  0x39   :  { %1596 = vmatpush1.bf16.msra.mxu0 %v7393_v27  ;;  %1371 = vmatmul.mubr.bf16.vlgmr.msra.gmra.mrb[0].mxu1 %v7737_v26 }
  0x3a   :  { %6203 = vmatprep.mubr.msk.bf16.mxu0 %vm959_vm0, %v7746_v28  ;;  %6231 = vmatprep.mubr.msk.bf16.mxu1 %vm959_vm0, %v7746_v28 }
  0x3b   :  { %1597 = vmatprep.subr.bf16.mxu0 %v7542_v0 }
  0x3d   :  { %1598 = vmatpush1.bf16.msra.mxu0 %v7397_v29 }
  0x3e   :  { %1599 = vmatprep.subr.bf16.mxu0 %v7542_v0 }
  0x40   :  { %1049 = vmatmul.mubr.bf16.gmra.mrb[4].mxu0 %v7761_v30 }
  0x41   :  { %1379 = vmatmul.mubr.bf16.gmra.mrb[4].mxu1 %v7761_v30  ;;  %6204 = vmatprep.mubr.msk.bf16.mxu0 %vm959_vm0, %v7766_v31 }
  0x42   :  { %6232 = vmatprep.mubr.msk.bf16.mxu1 %vm959_vm0, %v7766_v31  ;;  %1600 = vmatpush1.bf16.msra.mxu0 %v7403_v32 }
  0x43   :  { %1601 = vmatprep.subr.bf16.mxu0 %v7542_v0 }
  0x46   :  { %1602 = vmatpush1.bf16.msra.mxu0 %v7408_v33 }
  0x47   :  { %1603 = vmatprep.subr.bf16.mxu0 %v7542_v0 }
  0x48   :  { %1057 = vmatmul.mubr.bf16.gmra.mrb[8].mxu0 %v7785_v34 }
  0x49   :  { %1387 = vmatmul.mubr.bf16.gmra.mrb[8].mxu1 %v7785_v34  ;;  %6205 = vmatprep.mubr.msk.bf16.mxu0 %vm959_vm0, %v7790_v35 }
  0x4a   :  { %6233 = vmatprep.mubr.msk.bf16.mxu1 %vm959_vm0, %v7790_v35  ;;  %1604 = vmatpush1.bf16.msra.mxu0 %v7412_v36 }
  0x4b   :  { %1605 = vmatprep.subr.bf16.mxu0 %v7542_v0 }
  0x4e   :  { %1606 = vmatpush1.bf16.msra.mxu0 %v7418_v37 }
  0x4f   :  { %1607 = vmatprep.subr.bf16.mxu0 %v7542_v0 }
  0x50   :  { %1065 = vmatmul.mubr.bf16.gmra.mrb[12].mxu0 %v7809_v38 }
  0x51   :  { %1395 = vmatmul.mubr.bf16.gmra.mrb[12].mxu1 %v7809_v38  ;;  %6206 = vmatprep.mubr.msk.bf16.mxu0 %vm959_vm0, %v7814_v39 }
  0x52   :  { %6234 = vmatprep.mubr.msk.bf16.mxu1 %vm959_vm0, %v7814_v39  ;;  %1608 = vmatpush1.bf16.msra.mxu0 %v7423_v40 }
  0x53   :  { %1609 = vmatprep.subr.bf16.mxu0 %v7542_v0 }
  0x56   :  { %1610 = vmatpush1.bf16.msra.mxu0 %v7427_v41 }
  0x57   :  { %1611 = vmatprep.subr.bf16.mxu0 %v7542_v0 }
  0x58   :  { %1073 = vmatmul.mubr.bf16.gmra.mrb[16].mxu0 %v7833_v42 }
  0x59   :  { %1403 = vmatmul.mubr.bf16.gmra.mrb[16].mxu1 %v7833_v42  ;;  %6207 = vmatprep.mubr.msk.bf16.mxu0 %vm959_vm0, %v7838_v43 }
  0x5a   :  { %6235 = vmatprep.mubr.msk.bf16.mxu1 %vm959_vm0, %v7838_v43  ;;  %1612 = vmatpush1.bf16.msra.mxu0 %v7433_v44 }
  0x5b   :  { %1613 = vmatprep.subr.bf16.mxu0 %v7542_v0 }
  0x5e   :  { %1614 = vmatpush1.bf16.msra.mxu0 %v7438_v45 }
  0x5f   :  { %1615 = vmatprep.subr.bf16.mxu0 %v7542_v0 }
  0x60   :  { %1081 = vmatmul.mubr.bf16.gmra.mrb[20].mxu0 %v7857_v46 }
  0x61   :  { %1411 = vmatmul.mubr.bf16.gmra.mrb[20].mxu1 %v7857_v46  ;;  %6208 = vmatprep.mubr.msk.bf16.mxu0 %vm959_vm0, %v7862_v47 }
  0x62   :  { %6236 = vmatprep.mubr.msk.bf16.mxu1 %vm959_vm0, %v7862_v47  ;;  %1616 = vmatpush1.bf16.msra.mxu0 %v7442_v48 }
  0x63   :  { %1617 = vmatprep.subr.bf16.mxu0 %v7542_v0  ;;  %v7969_v0 = vld [vmem:[%s11515_s0 + $0xd0] ss:$8 sps:$4 sm:$0xff]  }
  0x66   :  { %1618 = vmatpush1.bf16.msra.mxu0 %v7448_v49 }
  0x68   :  { %1089 = vmatmul.mubr.bf16.gmra.mrb[24].mxu0 %v7881_v50 }
  0x69   :  { %1419 = vmatmul.mubr.bf16.gmra.mrb[24].mxu1 %v7881_v50  ;;  %6209 = vmatprep.mubr.msk.bf16.mxu0 %vm959_vm0, %v7886_v51 }
  0x6a   :  { %6237 = vmatprep.mubr.msk.bf16.mxu1 %vm959_vm0, %v7886_v51 }
  0x70   :  { %1097 = vmatmul.mubr.bf16.gmra.mrb[28].mxu0 %v7897_v52 }
  0x71   :  { %1427 = vmatmul.mubr.bf16.gmra.mrb[28].mxu1 %v7897_v52  ;;  %6210 = vmatprep.mubr.msk.bf16.mxu0 %vm959_vm0, %v7902_v53 }
  0x72   :  { %6238 = vmatprep.mubr.msk.bf16.mxu1 %vm959_vm0, %v7902_v53 }
  0x78   :  { %1105 = vmatmul.mubr.bf16.gmra.mrb[32].mxu0 %v7422_v54 }
  0x79   :  { %1435 = vmatmul.mubr.bf16.gmra.mrb[32].mxu1 %v7422_v54  ;;  %6211 = vmatprep.mubr.msk.bf16.mxu0 %vm959_vm0, %v7424_v55 }
  0x7a   :  { %6239 = vmatprep.mubr.msk.bf16.mxu1 %vm959_vm0, %v7424_v55 }
  0x80   :  { %1113 = vmatmul.mubr.bf16.gmra.mrb[36].mxu0 %v7426_v56 }
  0x81   :  { %1443 = vmatmul.mubr.bf16.gmra.mrb[36].mxu1 %v7426_v56  ;;  %6212 = vmatprep.mubr.msk.bf16.mxu0 %vm959_vm0, %v7428_v57 }
  0x82   :  { %6240 = vmatprep.mubr.msk.bf16.mxu1 %vm959_vm0, %v7428_v57 }
  0x88   :  { %1121 = vmatmul.mubr.bf16.gmra.mrb[40].mxu0 %v7430_v58 }
  0x89   :  { %1451 = vmatmul.mubr.bf16.gmra.mrb[40].mxu1 %v7430_v58  ;;  %6213 = vmatprep.mubr.msk.bf16.mxu0 %vm959_vm0, %v7431_v59 }
  0x8a   :  { %6241 = vmatprep.mubr.msk.bf16.mxu1 %vm959_vm0, %v7431_v59 }
  0x90   :  { %1129 = vmatmul.mubr.bf16.gmra.mrb[44].mxu0 %v7937_v60 }
  0x91   :  { %1459 = vmatmul.mubr.bf16.gmra.mrb[44].mxu1 %v7937_v60  ;;  %6214 = vmatprep.mubr.msk.bf16.mxu0 %vm959_vm0, %v7942_v61 }
  0x92   :  { %6242 = vmatprep.mubr.msk.bf16.mxu1 %vm959_vm0, %v7942_v61 }
  0x98   :  { %1137 = vmatmul.mubr.bf16.gmra.mrb[48].mxu0 %v7953_v62 }
  0x99   :  { %1467 = vmatmul.mubr.bf16.gmra.mrb[48].mxu1 %v7953_v62  ;;  %6215 = vmatprep.mubr.msk.bf16.mxu0 %vm959_vm0, %v7958_v63 }
  0x9a   :  { %6243 = vmatprep.mubr.msk.bf16.mxu1 %vm959_vm0, %v7958_v63 }
  0xa0   :  { %1145 = vmatmul.mubr.bf16.gmra.mrb[52].mxu0 %v7969_v0 }
  0xa1   :  { %1475 = vmatmul.mubr.bf16.gmra.mrb[52].mxu1 %v7969_v0  ;;  %6216 = vmatprep.mubr.msk.bf16.mxu0 %vm959_vm0, %v7974_v1 }
  0xa2   :  { %6244 = vmatprep.mubr.msk.bf16.mxu1 %vm959_vm0, %v7974_v1 }
  0xa8   :  { %1153 = vmatmul.mubr.bf16.gmra.mrb[56].mxu0 %v7985_v2 }
  0xa9   :  { %1483 = vmatmul.mubr.bf16.gmra.mrb[56].mxu1 %v7985_v2  ;;  %6217 = vmatprep.mubr.msk.bf16.mxu0 %vm959_vm0, %v7990_v3 }
  0xaa   :  { %6245 = vmatprep.mubr.msk.bf16.mxu1 %vm959_vm0, %v7990_v3 }
  0xb0   :  { %1161 = vmatmul.mubr.bf16.gmra.mrb[60].mxu0 %v8001_v4 }
  0xb1   :  { %1491 = vmatmul.mubr.bf16.gmra.mrb[60].mxu1 %v8001_v4  ;;  %6258 = vmatprep.mubr.msk.bf16.mxu0 %vm959_vm0, %v7687_v15 }
  0xb8   :  { %1628 = vmatmul.mubr.bf16.vlgmr.msra.gmra.mrb[64].mxu0 %v7737_v26 }
  0xb9   :  { %6259 = vmatprep.mubr.msk.bf16.mxu0 %vm959_vm0, %v7746_v28 }
  0xc0   :  { %1636 = vmatmul.mubr.bf16.gmra.mrb[68].mxu0 %v7761_v30 }
  0xc1   :  { %6260 = vmatprep.mubr.msk.bf16.mxu0 %vm959_vm0, %v7766_v31 }
  0xc8   :  { %1644 = vmatmul.mubr.bf16.gmra.mrb[72].mxu0 %v7785_v34 }
  0xc9   :  { %6261 = vmatprep.mubr.msk.bf16.mxu0 %vm959_vm0, %v7790_v35 }
  0xd0   :  { %1652 = vmatmul.mubr.bf16.gmra.mrb[76].mxu0 %v7809_v38 }
  0xd1   :  { %6262 = vmatprep.mubr.msk.bf16.mxu0 %vm959_vm0, %v7814_v39 }
  0xd8   :  { %1660 = vmatmul.mubr.bf16.gmra.mrb[80].mxu0 %v7833_v42 }
  0xd9   :  { %6263 = vmatprep.mubr.msk.bf16.mxu0 %vm959_vm0, %v7838_v43 }
  0xe0   :  { %1668 = vmatmul.mubr.bf16.gmra.mrb[84].mxu0 %v7857_v46 }
  0xe1   :  { %6264 = vmatprep.mubr.msk.bf16.mxu0 %vm959_vm0, %v7862_v47 }
  0xe8   :  { %1676 = vmatmul.mubr.bf16.gmra.mrb[88].mxu0 %v7881_v50 }
  0xe9   :  { %6265 = vmatprep.mubr.msk.bf16.mxu0 %vm959_vm0, %v7886_v51 }
  0xf0   :  { %1684 = vmatmul.mubr.bf16.gmra.mrb[92].mxu0 %v7897_v52 }
  0xf1   :  { %6266 = vmatprep.mubr.msk.bf16.mxu0 %vm959_vm0, %v7902_v53 }
  0xf8   :  { %1692 = vmatmul.mubr.bf16.gmra.mrb[96].mxu0 %v7422_v54 }
  0xf9   :  { %6267 = vmatprep.mubr.msk.bf16.mxu0 %vm959_vm0, %v7424_v55 }
 0x100   :  { %1700 = vmatmul.mubr.bf16.gmra.mrb[100].mxu0 %v7426_v56 }
 0x101   :  { %6268 = vmatprep.mubr.msk.bf16.mxu0 %vm959_vm0, %v7428_v57 }
 0x108   :  { %1708 = vmatmul.mubr.bf16.gmra.mrb[104].mxu0 %v7430_v58 }
 0x109   :  { %6269 = vmatprep.mubr.msk.bf16.mxu0 %vm959_vm0, %v7431_v59 }
 0x10b   :  { %v8036_v7 = vpop.f32.mrb[0].mxu0 }
 0x10c   :  { %v1044_v8 = vpop.f32.mrb[1].mxu0  ;;  %v8038_v9 = vpop.f32.mrb[0].mxu1  ;;  %v1169_v12 = vrot.slane %v8036_v7, 7 }
 0x10d   :  { %v1045_v10 = vpop.f32.mrb[2].mxu0  ;;  %v1374_v11 = vpop.f32.mrb[1].mxu1 }
 0x10e   :  { %v1170_v13 = vrot.slane %v1045_v10, 7  ;;  %v1047_v14 = vpop.f32.mrb[3].mxu0  ;;  %v1375_v15 = vpop.f32.mrb[2].mxu1 }
 0x10f   :  { %v1377_v16 = vpop.f32.mrb[3].mxu1 }
 0x110   :  { %v1232_v17 = vsel %vm1201_vm1, %v1169_v12, %v1170_v13  ;;  %1716 = vmatmul.mubr.bf16.gmra.mrb[108].mxu0 %v7937_v60 }
 0x111   :  { %v8047_v18 = vadd.f32 %v1375_v15, %v1232_v17  ;;  %6270 = vmatprep.mubr.msk.bf16.mxu0 %vm959_vm0, %v7942_v61 }
 0x113   :  { %v1050_v19 = vpop.f32.mrb[4].mxu0 }
 0x114   :  { %v1171_v20 = vrot.slane %v1050_v19, 7  ;;  %v1052_v21 = vpop.f32.mrb[5].mxu0  ;;  %v1380_v22 = vpop.f32.mrb[4].mxu1 }
 0x115   :  { %v1053_v23 = vpop.f32.mrb[6].mxu0  ;;  %v1382_v24 = vpop.f32.mrb[5].mxu1 }
 0x116   :  { %v1172_v25 = vrot.slane %v1053_v23, 7  ;;  %v1055_v26 = vpop.f32.mrb[7].mxu0  ;;  %v1231_v27 = vsel %vm1201_vm1, %v1170_v13, %v1171_v20  ;;  %v1383_v28 = vpop.f32.mrb[6].mxu1 }
 0x117   :  { %v8053_v29 = vadd.f32 %v1380_v22, %v1231_v27  ;;  %v1385_v30 = vpop.f32.mrb[7].mxu1 }
 0x118   :  { %v1230_v31 = vsel %vm1201_vm1, %v1171_v20, %v1172_v25  ;;  %1724 = vmatmul.mubr.bf16.gmra.mrb[112].mxu0 %v7953_v62 }
 0x119   :  { %v8058_v32 = vadd.f32 %v1383_v28, %v1230_v31  ;;  %6271 = vmatprep.mubr.msk.bf16.mxu0 %vm959_vm0, %v7958_v63 }
 0x11b   :  { %v1058_v33 = vpop.f32.mrb[8].mxu0 }
 0x11c   :  { %v1173_v34 = vrot.slane %v1058_v33, 7  ;;  %v1060_v35 = vpop.f32.mrb[9].mxu0  ;;  %v1388_v36 = vpop.f32.mrb[8].mxu1 }
 0x11d   :  { %v1061_v37 = vpop.f32.mrb[10].mxu0  ;;  %v1390_v38 = vpop.f32.mrb[9].mxu1 }
 0x11e   :  { %v1174_v39 = vrot.slane %v1061_v37, 7  ;;  %v1063_v40 = vpop.f32.mrb[11].mxu0  ;;  %v1229_v41 = vsel %vm1201_vm1, %v1172_v25, %v1173_v34  ;;  %v1391_v42 = vpop.f32.mrb[10].mxu1 }
 0x11f   :  { %v8064_v43 = vadd.f32 %v1388_v36, %v1229_v41  ;;  %v1393_v44 = vpop.f32.mrb[11].mxu1 }
 0x120   :  { %v1228_v45 = vsel %vm1201_vm1, %v1173_v34, %v1174_v39  ;;  %1732 = vmatmul.mubr.bf16.gmra.mrb[116].mxu0 %v7969_v0 }
 0x121   :  { %v8069_v46 = vadd.f32 %v1391_v42, %v1228_v45  ;;  %6272 = vmatprep.mubr.msk.bf16.mxu0 %vm959_vm0, %v7974_v1 }
 0x123   :  { %v1066_v47 = vpop.f32.mrb[12].mxu0 }
 0x124   :  { %v1175_v48 = vrot.slane %v1066_v47, 7  ;;  %v1068_v49 = vpop.f32.mrb[13].mxu0  ;;  %v1396_v50 = vpop.f32.mrb[12].mxu1 }
 0x125   :  { %v1069_v51 = vpop.f32.mrb[14].mxu0  ;;  %v1398_v52 = vpop.f32.mrb[13].mxu1 }
 0x126   :  { %v1176_v53 = vrot.slane %v1069_v51, 7  ;;  %v1071_v54 = vpop.f32.mrb[15].mxu0  ;;  %v1227_v55 = vsel %vm1201_vm1, %v1174_v39, %v1175_v48  ;;  %v1399_v56 = vpop.f32.mrb[14].mxu1 }
 0x127   :  { %v8075_v57 = vadd.f32 %v1396_v50, %v1227_v55  ;;  %v1401_v58 = vpop.f32.mrb[15].mxu1 }
 0x128   :  { %v1226_v59 = vsel %vm1201_vm1, %v1175_v48, %v1176_v53  ;;  %1740 = vmatmul.mubr.bf16.gmra.mrb[120].mxu0 %v7985_v2  ;;  %v71_v48 = vadd.s32 128, %v8034_v6 }
 0x129   :  { %v8080_v60 = vadd.f32 %v1399_v56, %v1226_v59  ;;  %6273 = vmatprep.mubr.msk.bf16.mxu0 %vm959_vm0, %v7990_v3 }
 0x12a   :  { %v203_v55 = vand.u32 127, %v71_v48 }
 0x12b   :  { %v1074_v61 = vpop.f32.mrb[16].mxu0 }
 0x12c   :  { %v1177_v62 = vrot.slane %v1074_v61, 7  ;;  %v1076_v63 = vpop.f32.mrb[17].mxu0  ;;  %v1404_v0 = vpop.f32.mrb[16].mxu1  ;;  %vm487_vm2 = vcmp.ne.s32.totalorder %v203_v55, 0 }
 0x12d   :  { %v1077_v1 = vpop.f32.mrb[18].mxu0  ;;  %v1406_v5 = vpop.f32.mrb[17].mxu1 }
 0x12e   :  { %v1178_v8 = vrot.slane %v1077_v1, 7  ;;  %v1079_v10 = vpop.f32.mrb[19].mxu0  ;;  %v1225_v11 = vsel %vm1201_vm1, %v1176_v53, %v1177_v62  ;;  %v1407_v13 = vpop.f32.mrb[18].mxu1 }
 0x12f   :  { %v8086_v14 = vadd.f32 %v1404_v0, %v1225_v11  ;;  %v1409_v2 = vpop.f32.mrb[19].mxu1  ;;  %v7543_v11 = vmov 0.0  }
 0x130   :  { %v1224_v15 = vsel %vm1201_vm1, %v1177_v62, %v1178_v8  ;;  %1748 = vmatmul.mubr.bf16.gmra.mrb[124].mxu0 %v8001_v4 }
 0x131   :  { %v8091_v3 = vadd.f32 %v1407_v13, %v1224_v15  ;;  %v8119_v13 = vsel %vm487_vm2, 1.0, %v7543_v11 }
 0x132   :  { %11647 = vst [vmem:[#allocation5_spill] sm:$0xff] %v8119_v13 }
 0x133   :  { %v1082_v16 = vpop.f32.mrb[20].mxu0 }
 0x134   :  { %v1179_v17 = vrot.slane %v1082_v16, 7  ;;  %v1084_v19 = vpop.f32.mrb[21].mxu0  ;;  %v1412_v20 = vpop.f32.mrb[20].mxu1 }
 0x135   :  { %v1085_v21 = vpop.f32.mrb[22].mxu0  ;;  %v1414_v22 = vpop.f32.mrb[21].mxu1 }
 0x136   :  { %v1180_v23 = vrot.slane %v1085_v21, 7  ;;  %v1087_v24 = vpop.f32.mrb[23].mxu0  ;;  %v1223_v25 = vsel %vm1201_vm1, %v1178_v8, %v1179_v17  ;;  %v1415_v26 = vpop.f32.mrb[22].mxu1 }
 0x137   :  { %v8095_v27 = vadd.f32 %v1412_v20, %v1223_v25  ;;  %v1417_v28 = vpop.f32.mrb[23].mxu1 }
 0x138   :  { %v1222_v4 = vsel %vm1201_vm1, %v1179_v17, %v1180_v23 }
 0x139   :  { %v8099_v30 = vadd.f32 %v1415_v26, %v1222_v4 }
 0x13b   :  { %v1090_v31 = vpop.f32.mrb[24].mxu0 }
 0x13c   :  { %v1181_v33 = vrot.slane %v1090_v31, 7  ;;  %v1092_v34 = vpop.f32.mrb[25].mxu0  ;;  %v1420_v35 = vpop.f32.mrb[24].mxu1 }
 0x13d   :  { %v1093_v36 = vpop.f32.mrb[26].mxu0  ;;  %v1422_v37 = vpop.f32.mrb[25].mxu1 }
 0x13e   :  { %v1182_v38 = vrot.slane %v1093_v36, 7  ;;  %v1095_v39 = vpop.f32.mrb[27].mxu0  ;;  %v1221_v40 = vsel %vm1201_vm1, %v1180_v23, %v1181_v33  ;;  %v1423_v41 = vpop.f32.mrb[26].mxu1 }
 0x13f   :  { %v8103_v42 = vadd.f32 %v1420_v35, %v1221_v40  ;;  %v1425_v44 = vpop.f32.mrb[27].mxu1 }
 0x140   :  { %v1220_v45 = vsel %vm1201_vm1, %v1181_v33, %v1182_v38 }
 0x141   :  { %v8107_v47 = vadd.f32 %v1423_v41, %v1220_v45 }
 0x143   :  { %v1098_v49 = vpop.f32.mrb[28].mxu0 }
 0x144   :  { %v1183_v50 = vrot.slane %v1098_v49, 7  ;;  %v1100_v51 = vpop.f32.mrb[29].mxu0  ;;  %v1428_v52 = vpop.f32.mrb[28].mxu1 }
 0x145   :  { %v1101_v53 = vpop.f32.mrb[30].mxu0  ;;  %v1430_v54 = vpop.f32.mrb[29].mxu1 }
 0x146   :  { %v1184_v56 = vrot.slane %v1101_v53, 7  ;;  %v1103_v58 = vpop.f32.mrb[31].mxu0  ;;  %v1219_v59 = vsel %vm1201_vm1, %v1182_v38, %v1183_v50  ;;  %v1431_v61 = vpop.f32.mrb[30].mxu1 }
 0x147   :  { %v8112_v62 = vadd.f32 %v1428_v52, %v1219_v59  ;;  %v1433_v63 = vpop.f32.mrb[31].mxu1 }
 0x148   :  { %v1218_v0 = vsel %vm1201_vm1, %v1183_v50, %v1184_v56 }
 0x149   :  { %v8116_v1 = vadd.f32 %v1431_v61, %v1218_v0 }
 0x14b   :  { %v1106_v5 = vpop.f32.mrb[32].mxu0 }
 0x14c   :  { %v1185_v8 = vrot.slane %v1106_v5, 7  ;;  %v1108_v10 = vpop.f32.mrb[33].mxu0  ;;  %v1436_v2 = vpop.f32.mrb[32].mxu1 }
 0x14d   :  { %v1109_v15 = vpop.f32.mrb[34].mxu0  ;;  %v1438_v16 = vpop.f32.mrb[33].mxu1 }
 0x14e   :  { %v1186_v17 = vrot.slane %v1109_v15, 7  ;;  %v1111_v19 = vpop.f32.mrb[35].mxu0  ;;  %v1217_v20 = vsel %vm1201_vm1, %v1184_v56, %v1185_v8  ;;  %v1439_v21 = vpop.f32.mrb[34].mxu1 }
 0x14f   :  { %v1250_v22 = vmul.f32 %v8119_v13, %v1217_v20  ;;  %v1441_v23 = vpop.f32.mrb[35].mxu1 }
 0x150   :  { %v1216_v24 = vsel %vm1201_vm1, %v1185_v8, %v1186_v17 }
 0x151   :  { %v8126_v25 = vadd.f32 %v1436_v2, %v1250_v22  ;;  %v8128_v26 = vadd.f32 %v1439_v21, %v1216_v24 }
 0x153   :  { %v1114_v28 = vpop.f32.mrb[36].mxu0 }
 0x154   :  { %v1187_v4 = vrot.slane %v1114_v28, 7  ;;  %v1116_v31 = vpop.f32.mrb[37].mxu0  ;;  %v1444_v33 = vpop.f32.mrb[36].mxu1 }
 0x155   :  { %v1117_v34 = vpop.f32.mrb[38].mxu0  ;;  %v1446_v35 = vpop.f32.mrb[37].mxu1 }
 0x156   :  { %v1188_v36 = vrot.slane %v1117_v34, 7  ;;  %v1119_v37 = vpop.f32.mrb[39].mxu0  ;;  %v1215_v38 = vsel %vm1201_vm1, %v1186_v17, %v1187_v4  ;;  %v1447_v39 = vpop.f32.mrb[38].mxu1 }
 0x157   :  { %v8132_v40 = vadd.f32 %v1444_v33, %v1215_v38  ;;  %v1449_v41 = vpop.f32.mrb[39].mxu1 }
 0x158   :  { %v1214_v44 = vsel %vm1201_vm1, %v1187_v4, %v1188_v36 }
 0x159   :  { %v8136_v45 = vadd.f32 %v1447_v39, %v1214_v44 }
 0x15b   :  { %v1122_v48 = vpop.f32.mrb[40].mxu0 }
 0x15c   :  { %v1189_v49 = vrot.slane %v1122_v48, 7  ;;  %v1124_v50 = vpop.f32.mrb[41].mxu0  ;;  %v1452_v51 = vpop.f32.mrb[40].mxu1 }
 0x15d   :  { %v1125_v52 = vpop.f32.mrb[42].mxu0  ;;  %v1454_v53 = vpop.f32.mrb[41].mxu1 }
 0x15e   :  { %v1190_v54 = vrot.slane %v1125_v52, 7  ;;  %v1127_v55 = vpop.f32.mrb[43].mxu0  ;;  %v1213_v56 = vsel %vm1201_vm1, %v1188_v36, %v1189_v49  ;;  %v1455_v58 = vpop.f32.mrb[42].mxu1 }
 0x15f   :  { %v8140_v59 = vadd.f32 %v1452_v51, %v1213_v56  ;;  %v1457_v61 = vpop.f32.mrb[43].mxu1 }
 0x160   :  { %v1212_v63 = vsel %vm1201_vm1, %v1189_v49, %v1190_v54 }
 0x161   :  { %v8144_v0 = vadd.f32 %v1455_v58, %v1212_v63 }
 0x163   :  { %v1130_v5 = vpop.f32.mrb[44].mxu0 }
 0x164   :  { %v1191_v8 = vrot.slane %v1130_v5, 7  ;;  %v1132_v10 = vpop.f32.mrb[45].mxu0  ;;  %v1460_v2 = vpop.f32.mrb[44].mxu1 }
 0x165   :  { %v1133_v15 = vpop.f32.mrb[46].mxu0  ;;  %v1462_v16 = vpop.f32.mrb[45].mxu1 }
 0x166   :  { %v1192_v17 = vrot.slane %v1133_v15, 7  ;;  %v1135_v19 = vpop.f32.mrb[47].mxu0  ;;  %v1211_v20 = vsel %vm1201_vm1, %v1190_v54, %v1191_v8  ;;  %v1463_v21 = vpop.f32.mrb[46].mxu1 }
 0x167   :  { %v8148_v22 = vadd.f32 %v1460_v2, %v1211_v20  ;;  %v1465_v23 = vpop.f32.mrb[47].mxu1 }
 0x168   :  { %v1210_v24 = vsel %vm1201_vm1, %v1191_v8, %v1192_v17 }
 0x169   :  { %v8152_v28 = vadd.f32 %v1463_v21, %v1210_v24 }
 0x16b   :  { %v1138_v4 = vpop.f32.mrb[48].mxu0 }
 0x16c   :  { %v1193_v31 = vrot.slane %v1138_v4, 7  ;;  %v1140_v33 = vpop.f32.mrb[49].mxu0  ;;  %v1468_v34 = vpop.f32.mrb[48].mxu1 }
 0x16d   :  { %v1141_v35 = vpop.f32.mrb[50].mxu0  ;;  %v1470_v36 = vpop.f32.mrb[49].mxu1 }
 0x16e   :  { %v1194_v37 = vrot.slane %v1141_v35, 7  ;;  %v1143_v38 = vpop.f32.mrb[51].mxu0  ;;  %v1209_v39 = vsel %vm1201_vm1, %v1192_v17, %v1193_v31  ;;  %v1471_v41 = vpop.f32.mrb[50].mxu1  ;;  %v91_v35 = vand.u32 127, %v8034_v6 }
 0x16f   :  { %v8156_v44 = vadd.f32 %v1468_v34, %v1209_v39  ;;  %v1473_v48 = vpop.f32.mrb[51].mxu1 }
 0x170   :  { %v1208_v49 = vsel %vm1201_vm1, %v1193_v31, %v1194_v37  ;;  %vm471_vm3 = vcmp.ne.s32.totalorder %v91_v35, 0 }
 0x171   :  { %v8160_v50 = vadd.f32 %v1471_v41, %v1208_v49 }
 0x173   :  { %v1146_v51 = vpop.f32.mrb[52].mxu0 }
 0x174   :  { %v1195_v52 = vrot.slane %v1146_v51, 7  ;;  %v1148_v53 = vpop.f32.mrb[53].mxu0  ;;  %v1476_v54 = vpop.f32.mrb[52].mxu1 }
 0x175   :  { %v1149_v55 = vpop.f32.mrb[54].mxu0  ;;  %v1478_v56 = vpop.f32.mrb[53].mxu1  ;;  %v8180_v53 = vsel %vm471_vm3, 1.0, %v7543_v11 }
 0x176   :  { %v1196_v58 = vrot.slane %v1149_v55, 7  ;;  %v1151_v61 = vpop.f32.mrb[55].mxu0  ;;  %v1207_v63 = vsel %vm1201_vm1, %v1194_v37, %v1195_v52  ;;  %v1479_v5 = vpop.f32.mrb[54].mxu1  ;;  %11648 = vst [vmem:[#allocation6_spill] sm:$0xff] %v8180_v53 }
 0x177   :  { %v8164_v8 = vadd.f32 %v1476_v54, %v1207_v63  ;;  %v1481_v10 = vpop.f32.mrb[55].mxu1 }
 0x178   :  { %v1206_v2 = vsel %vm1201_vm1, %v1195_v52, %v1196_v58 }
 0x179   :  { %v8168_v15 = vadd.f32 %v1479_v5, %v1206_v2 }
 0x17b   :  { %v1154_v16 = vpop.f32.mrb[56].mxu0 }
 0x17c   :  { %v1197_v17 = vrot.slane %v1154_v16, 7  ;;  %v1156_v19 = vpop.f32.mrb[57].mxu0  ;;  %v1484_v20 = vpop.f32.mrb[56].mxu1 }
 0x17d   :  { %v1157_v21 = vpop.f32.mrb[58].mxu0  ;;  %v1486_v23 = vpop.f32.mrb[57].mxu1 }
 0x17e   :  { %v1198_v24 = vrot.slane %v1157_v21, 7  ;;  %v1159_v4 = vpop.f32.mrb[59].mxu0  ;;  %v1205_v31 = vsel %vm1201_vm1, %v1196_v58, %v1197_v17  ;;  %v1487_v33 = vpop.f32.mrb[58].mxu1 }
 0x17f   :  { %v8172_v34 = vadd.f32 %v1484_v20, %v1205_v31  ;;  %v1489_v36 = vpop.f32.mrb[59].mxu1 }
 0x180   :  { %v1204_v37 = vsel %vm1201_vm1, %v1197_v17, %v1198_v24 }
 0x181   :  { %v8177_v38 = vadd.f32 %v1487_v33, %v1204_v37 }
 0x183   :  { %v1162_v39 = vpop.f32.mrb[60].mxu0 }
 0x184   :  { %v1199_v41 = vrot.slane %v1162_v39, 7  ;;  %v1164_v48 = vpop.f32.mrb[61].mxu0  ;;  %v1492_v49 = vpop.f32.mrb[60].mxu1 }
 0x185   :  { %v1165_v51 = vpop.f32.mrb[62].mxu0  ;;  %v1494_v52 = vpop.f32.mrb[61].mxu1 }
 0x186   :  { %v1200_v54 = vrot.slane %v1165_v51, 7  ;;  %v1167_v55 = vpop.f32.mrb[63].mxu0  ;;  %v1203_v56 = vsel %vm1201_vm1, %v1198_v24, %v1199_v41  ;;  %v1495_v58 = vpop.f32.mrb[62].mxu1 }
 0x187   :  { %v8184_v61 = vadd.f32 %v1492_v49, %v1203_v56  ;;  %v1497_v63 = vpop.f32.mrb[63].mxu1 }
 0x188   :  { %v1233_v5 = vsel %vm1201_vm1, %v1200_v54, %v1169_v12  ;;  %v1202_v10 = vsel %vm1201_vm1, %v1199_v41, %v1200_v54 }
 0x189   :  { %v1234_v2 = vmul.f32 %v8180_v53, %v1233_v5  ;;  %v8193_v16 = vadd.f32 %v1495_v58, %v1202_v10 }
 0x18b   :  { %v8195_v17 = vpop.f32.mrb[64].mxu0  ;;  %v1373_v19 = vadd.f32 %v8038_v9, %v1234_v2 }
 0x18c   :  { %v1631_v20 = vpop.f32.mrb[65].mxu0  ;;  %v1756_v7 = vrot.slane %v8195_v17, 1 }
 0x18d   :  { %v1632_v21 = vpop.f32.mrb[66].mxu0 }
 0x18e   :  { %v1757_v23 = vrot.slane %v1632_v21, 1  ;;  %v1634_v24 = vpop.f32.mrb[67].mxu0  ;;  %v8219_v21 = vld [vmem:[%s11516_s2] ss:$0 sm:$0xff] }
 0x190   :  { %v1819_v12 = vsel %vm1788_vm4, %v1756_v7, %v1757_v23 }
 0x191   :  { %v1853_v4 = vadd.f32 %v1819_v12, %v1373_v19 }
 0x193   :  { %v1637_v31 = vpop.f32.mrb[68].mxu0 }
 0x194   :  { %v1758_v33 = vrot.slane %v1637_v31, 1  ;;  %v1639_v35 = vpop.f32.mrb[69].mxu0 }
 0x195   :  { %v1640_v36 = vpop.f32.mrb[70].mxu0 }
 0x196   :  { %v1818_v9 = vsel %vm1788_vm4, %v1757_v23, %v1758_v33  ;;  %v1759_v37 = vrot.slane %v1640_v36, 1  ;;  %v1642_v39 = vpop.f32.mrb[71].mxu0 }
 0x197   :  { %v1854_v41 = vadd.f32 %v1818_v9, %v8047_v18 }
 0x198   :  { %v1817_v48 = vsel %vm1788_vm4, %v1758_v33, %v1759_v37  ;;  %v8230_v33 = vadd.f32 %v8219_v21, %v1853_v4 }
 0x199   :  { %v1855_v49 = vadd.f32 %v1817_v48, %v8053_v29 }
 0x19b   :  { %v1645_v51 = vpop.f32.mrb[72].mxu0  ;;  %v8236_v9 = vadd.f32 %v8219_v21, %v1855_v49 }
 0x19c   :  { %v1760_v52 = vrot.slane %v1645_v51, 1  ;;  %v1647_v54 = vpop.f32.mrb[73].mxu0 }
 0x19d   :  { %v1648_v55 = vpop.f32.mrb[74].mxu0 }
 0x19e   :  { %v1816_v56 = vsel %vm1788_vm4, %v1759_v37, %v1760_v52  ;;  %v1761_v58 = vrot.slane %v1648_v55, 1  ;;  %v1650_v63 = vpop.f32.mrb[75].mxu0 }
 0x19f   :  { %v1856_v5 = vadd.f32 %v1816_v56, %v8058_v32  ;;  %v8224_v32 = vadd.f32 %v8219_v21, %v1854_v41 }
 0x1a0   :  { %v1815_v10 = vsel %vm1788_vm4, %v1760_v52, %v1761_v58 }
 0x1a1   :  { %v1857_v18 = vadd.f32 %v1815_v10, %v8064_v43  ;;  %v1956_v36 = vadd.f32 %v8224_v32, %v8230_v33  ;;  %v8239_v48 = vadd.f32 %v8219_v21, %v1856_v5 }
 0x1a3   :  { %v1653_v2 = vpop.f32.mrb[76].mxu0  ;;  %v8249_v56 = vadd.f32 %v8219_v21, %v1857_v18 }
 0x1a4   :  { %v1762_v19 = vrot.slane %v1653_v2, 1  ;;  %v1655_v20 = vpop.f32.mrb[77].mxu0 }
 0x1a5   :  { %v1656_v29 = vpop.f32.mrb[78].mxu0 }
 0x1a6   :  { %v1814_v23 = vsel %vm1788_vm4, %v1761_v58, %v1762_v19  ;;  %v1763_v24 = vrot.slane %v1656_v29, 1  ;;  %v1658_v12 = vpop.f32.mrb[79].mxu0 }
 0x1a7   :  { %v1858_v31 = vadd.f32 %v1814_v23, %v8069_v46 }
 0x1a8   :  { %v1813_v43 = vsel %vm1788_vm4, %v1762_v19, %v1763_v24 }
 0x1a9   :  { %v1859_v35 = vadd.f32 %v1813_v43, %v8075_v57  ;;  %v1957_v57 = vadd.f32 %v1956_v36, %v8236_v9  ;;  %v8253_v63 = vadd.f32 %v8219_v21, %v1858_v31 }
 0x1ab   :  { %v1661_v37 = vpop.f32.mrb[80].mxu0  ;;  %v1958_v55 = vadd.f32 %v1957_v57, %v8239_v48  ;;  %v8260_v18 = vadd.f32 %v8219_v21, %v1859_v35 }
 0x1ac   :  { %v1764_v39 = vrot.slane %v1661_v37, 1  ;;  %v1663_v41 = vpop.f32.mrb[81].mxu0 }
 0x1ad   :  { %v1664_v46 = vpop.f32.mrb[82].mxu0  ;;  %v1959_v19 = vadd.f32 %v1958_v55, %v8249_v56 }
 0x1ae   :  { %v1812_v51 = vsel %vm1788_vm4, %v1763_v24, %v1764_v39  ;;  %v1765_v4 = vrot.slane %v1664_v46, 1  ;;  %v1666_v52 = vpop.f32.mrb[83].mxu0 }
 0x1af   :  { %v1860_v54 = vadd.f32 %v1812_v51, %v8080_v60  ;;  %v1960_v24 = vadd.f32 %v1959_v19, %v8253_v63 }
 0x1b0   :  { %v1811_v49 = vsel %vm1788_vm4, %v1764_v39, %v1765_v4 }
 0x1b1   :  { %v1861_v58 = vadd.f32 %v1811_v49, %v8086_v14  ;;  %v8266_v31 = vadd.f32 %v8219_v21, %v1860_v54  ;;  %v1961_v36 = vadd.f32 %v1960_v24, %v8260_v18 }
 0x1b3   :  { %v1669_v5 = vpop.f32.mrb[84].mxu0  ;;  %v1962_v46 = vadd.f32 %v1961_v36, %v8266_v31  ;;  %v8272_v35 = vadd.f32 %v8219_v21, %v1861_v58  ;;  %v70_v58 = vadd.s32 120, %v8034_v6 }
 0x1b4   :  { %v1766_v10 = vrot.slane %v1669_v5, 1  ;;  %v1671_v2 = vpop.f32.mrb[85].mxu0 }
 0x1b5   :  { %v1672_v20 = vpop.f32.mrb[86].mxu0  ;;  %v1963_v49 = vadd.f32 %v1962_v46, %v8272_v35 }
 0x1b6   :  { %v1810_v60 = vsel %vm1788_vm4, %v1765_v4, %v1766_v10  ;;  %v1767_v29 = vrot.slane %v1672_v20, 1  ;;  %v1674_v23 = vpop.f32.mrb[87].mxu0 }
 0x1b7   :  { %v1862_v14 = vadd.f32 %v1810_v60, %v8091_v3 }
 0x1b8   :  { %v1809_v12 = vsel %vm1788_vm4, %v1766_v10, %v1767_v29 }
 0x1b9   :  { %v1863_v43 = vadd.f32 %v1809_v12, %v8095_v27  ;;  %v8277_v57 = vadd.f32 %v8219_v21, %v1862_v14 }
 0x1bb   :  { %v1677_v37 = vpop.f32.mrb[88].mxu0  ;;  %v1964_v5 = vadd.f32 %v1963_v49, %v8277_v57  ;;  %v8287_v10 = vadd.f32 %v8219_v21, %v1863_v43 }
 0x1bc   :  { %v1768_v39 = vrot.slane %v1677_v37, 1  ;;  %v1679_v41 = vpop.f32.mrb[89].mxu0 }
 0x1bd   :  { %v1680_v51 = vpop.f32.mrb[90].mxu0  ;;  %v1965_v12 = vadd.f32 %v1964_v5, %v8287_v10 }
 0x1be   :  { %v1808_v3 = vsel %vm1788_vm4, %v1767_v29, %v1768_v39  ;;  %v1769_v4 = vrot.slane %v1680_v51, 1  ;;  %v1682_v52 = vpop.f32.mrb[91].mxu0  ;;  %v196_v29 = vand.u32 127, %v70_v58 }
 0x1bf   :  { %v1864_v27 = vadd.f32 %v1808_v3, %v8099_v30 }
 0x1c0   :  { %v1807_v54 = vsel %vm1788_vm4, %v1768_v39, %v1769_v4  ;;  %vm582_vm5 = vcmp.ne.s32.totalorder %v196_v29, 127 }
 0x1c1   :  { %v1865_v55 = vadd.f32 %v1807_v54, %v8103_v42  ;;  %v8290_v60 = vadd.f32 %v8219_v21, %v1864_v27 }
 0x1c3   :  { %v1685_v2 = vpop.f32.mrb[92].mxu0  ;;  %v8300_v37 = vadd.f32 %v8219_v21, %v1865_v55  ;;  %v1966_v39 = vadd.f32 %v1965_v12, %v8290_v60 }
 0x1c4   :  { %v1770_v19 = vrot.slane %v1685_v2, 1  ;;  %v1687_v20 = vpop.f32.mrb[93].mxu0 }
 0x1c5   :  { %v1688_v30 = vpop.f32.mrb[94].mxu0  ;;  %v1967_v52 = vadd.f32 %v1966_v39, %v8300_v37 }
 0x1c6   :  { %v1806_v23 = vsel %vm1788_vm4, %v1769_v4, %v1770_v19  ;;  %v1771_v24 = vrot.slane %v1688_v30, 1  ;;  %v1690_v42 = vpop.f32.mrb[95].mxu0 }
 0x1c7   :  { %v1866_v14 = vadd.f32 %v1806_v23, %v8107_v47  ;;  %v8307_v47 = vsel %vm582_vm5, 1.0, %v7543_v11 }
 0x1c8   :  { %v1805_v43 = vsel %vm1788_vm4, %v1770_v19, %v1771_v24  ;;  %11649 = vst [vmem:[#allocation7_spill] sm:$0xff] %v8307_v47 }
 0x1c9   :  { %v1867_v36 = vadd.f32 %v1805_v43, %v8112_v62  ;;  %v8304_v46 = vadd.f32 %v8219_v21, %v1866_v14 }
 0x1cb   :  { %v1693_v41 = vpop.f32.mrb[96].mxu0  ;;  %v8314_v55 = vadd.f32 %v8219_v21, %v1867_v36  ;;  %v1968_v58 = vadd.f32 %v1967_v52, %v8304_v46 }
 0x1cc   :  { %v1772_v51 = vrot.slane %v1693_v41, 1  ;;  %v1695_v3 = vpop.f32.mrb[97].mxu0 }
 0x1cd   :  { %v1696_v4 = vpop.f32.mrb[98].mxu0  ;;  %v1969_v29 = vadd.f32 %v1968_v58, %v8314_v55 }
 0x1ce   :  { %v1804_v62 = vsel %vm1788_vm4, %v1771_v24, %v1772_v51  ;;  %v1773_v27 = vrot.slane %v1696_v4, 1  ;;  %v1698_v54 = vpop.f32.mrb[99].mxu0 }
 0x1cf   :  { %v1836_v49 = vmul.f32 %v8307_v47, %v1804_v62 }
 0x1d0   :  { %v1803_v5 = vsel %vm1788_vm4, %v1772_v51, %v1773_v27 }
 0x1d1   :  { %v1869_v2 = vadd.f32 %v1803_v5, %v8126_v25  ;;  %v1868_v19 = vadd.f32 %v1836_v49, %v8116_v1 }
 0x1d3   :  { %v1701_v20 = vpop.f32.mrb[100].mxu0  ;;  %v8322_v30 = vadd.f32 %v8219_v21, %v1868_v19 }
 0x1d4   :  { %v1774_v23 = vrot.slane %v1701_v20, 1  ;;  %v1703_v24 = vpop.f32.mrb[101].mxu0  ;;  %v8342_v20 = vadd.f32 %v8219_v21, %v1869_v2 }
 0x1d5   :  { %v1704_v42 = vpop.f32.mrb[102].mxu0  ;;  %v1970_v14 = vadd.f32 %v1969_v29, %v8322_v30 }
 0x1d6   :  { %v1802_v12 = vsel %vm1788_vm4, %v1773_v27, %v1774_v23  ;;  %v1775_v43 = vrot.slane %v1704_v42, 1  ;;  %v1706_v36 = vpop.f32.mrb[103].mxu0 }
 0x1d7   :  { %v1870_v25 = vadd.f32 %v1802_v12, %v8128_v26  ;;  %1971 = vadd.xlane.f32.xlu0 %v1970_v14 }
 0x1d8   :  { %v1801_v1 = vsel %vm1788_vm4, %v1774_v23, %v1775_v43 }
 0x1d9   :  { %v1871_v39 = vadd.f32 %v1801_v1, %v8132_v40  ;;  %v8339_v58 = vadd.f32 %v8219_v21, %v1870_v25 }
 0x1db   :  { %v1709_v41 = vpop.f32.mrb[104].mxu0  ;;  %v2143_v42 = vadd.f32 %v8339_v58, %v8342_v20 }
 0x1dc   :  { %v1776_v51 = vrot.slane %v1709_v41, 1  ;;  %v1711_v3 = vpop.f32.mrb[105].mxu0 }
 0x1dd   :  { %v1712_v4 = vpop.f32.mrb[106].mxu0 }
 0x1de   :  { %v1800_v52 = vsel %vm1788_vm4, %v1775_v43, %v1776_v51  ;;  %v1777_v62 = vrot.slane %v1712_v4, 1  ;;  %v1714_v54 = vpop.f32.mrb[107].mxu0 }
 0x1df   :  { %v1872_v27 = vadd.f32 %v1800_v52, %v8136_v45 }
 0x1e0   :  { %v1799_v26 = vsel %vm1788_vm4, %v1776_v51, %v1777_v62 }
 0x1e1   :  { %v1873_v49 = vadd.f32 %v1799_v26, %v8140_v59  ;;  %v8349_v59 = vadd.f32 %v8219_v21, %v1871_v39  ;;  %v8355_v2 = vadd.f32 %v8219_v21, %v1872_v27 }
 0x1e3   :  { %v1717_v40 = vpop.f32.mrb[108].mxu0  ;;  %v2144_v36 = vadd.f32 %v2143_v42, %v8349_v59  ;;  %v8361_v39 = vadd.f32 %v8219_v21, %v1873_v49 }
 0x1e4   :  { %v1778_v5 = vrot.slane %v1717_v40, 1  ;;  %v1719_v19 = vpop.f32.mrb[109].mxu0 }
 0x1e5   :  { %v1720_v29 = vpop.f32.mrb[110].mxu0  ;;  %v2145_v51 = vadd.f32 %v2144_v36, %v8355_v2 }
 0x1e6   :  { %v1798_v23 = vsel %vm1788_vm4, %v1777_v62, %v1778_v5  ;;  %v1779_v24 = vrot.slane %v1720_v29, 1  ;;  %v1722_v45 = vpop.f32.mrb[111].mxu0 }
 0x1e7   :  { %v1874_v14 = vadd.f32 %v1798_v23, %v8144_v0  ;;  %v2146_v27 = vadd.f32 %v2145_v51, %v8361_v39  ;;  %v86_v51 = vadd.s32 248, %v8034_v6 }
 0x1e8   :  { %v1797_v12 = vsel %vm1788_vm4, %v1778_v5, %v1779_v24 }
 0x1e9   :  { %v1875_v43 = vadd.f32 %v1797_v12, %v8148_v22  ;;  %v8366_v62 = vadd.f32 %v8219_v21, %v1874_v14 }
 0x1eb   :  { %v1725_v25 = vpop.f32.mrb[112].mxu0  ;;  %v2147_v49 = vadd.f32 %v2146_v27, %v8366_v62  ;;  %v8375_v40 = vadd.f32 %v8219_v21, %v1875_v43 }
 0x1ec   :  { %v1780_v1 = vrot.slane %v1725_v25, 1  ;;  %v1727_v41 = vpop.f32.mrb[113].mxu0 }
 0x1ed   :  { %v1728_v3 = vpop.f32.mrb[114].mxu0  ;;  %v2148_v14 = vadd.f32 %v2147_v49, %v8375_v40  ;;  %v308_v49 = vand.u32 127, %v86_v51 }
 0x1ee   :  { %v1796_v0 = vsel %vm1788_vm4, %v1779_v24, %v1780_v1  ;;  %v1781_v4 = vrot.slane %v1728_v3, 1  ;;  %v1730_v52 = vpop.f32.mrb[115].mxu0 }
 0x1ef   :  { %v1876_v22 = vadd.f32 %v1796_v0, %v8152_v28  ;;  %vm598_vm6 = vcmp.ne.s32.totalorder %v308_v49, 127 }
 0x1f0   :  { %v1795_v54 = vsel %vm1788_vm4, %v1780_v1, %v1781_v4 }
 0x1f1   :  { %v1877_v26 = vadd.f32 %v1795_v54, %v8156_v44  ;;  %v8378_v23 = vadd.f32 %v8219_v21, %v1876_v22 }
 0x1f3   :  { %v1733_v5 = vpop.f32.mrb[116].mxu0  ;;  %v2149_v43 = vadd.f32 %v2148_v14, %v8378_v23  ;;  %v8388_v36 = vadd.f32 %v8219_v21, %v1877_v26 }
 0x1f4   :  { %v1782_v19 = vrot.slane %v1733_v5, 1  ;;  %v1735_v29 = vpop.f32.mrb[117].mxu0 }
 0x1f5   :  { %v1736_v24 = vpop.f32.mrb[118].mxu0 }
 0x1f6   :  { %v1794_v28 = vsel %vm1788_vm4, %v1781_v4, %v1782_v19  ;;  %v1783_v45 = vrot.slane %v1736_v24, 1  ;;  %v1738_v42 = vpop.f32.mrb[119].mxu0 }
 0x1f7   :  { %v1878_v44 = vadd.f32 %v1794_v28, %v8160_v50  ;;  %v2150_v50 = vadd.f32 %v2149_v43, %v8388_v36 }
 0x1f8   :  { %v1793_v12 = vsel %vm1788_vm4, %v1782_v19, %v1783_v45 }
 0x1f9   :  { %v1879_v25 = vadd.f32 %v1793_v12, %v8164_v8  ;;  %v8392_v1 = vadd.f32 %v8219_v21, %v1878_v44 }
 0x1fb   :  { %v1741_v41 = vpop.f32.mrb[120].mxu0  ;;  %v2151_v27 = vadd.f32 %v2150_v50, %v8392_v1  ;;  %v8400_v8 = vadd.f32 %v8219_v21, %v1879_v25  ;;  %v8417_v25 = vsel %vm598_vm6, 1.0, %v7543_v11 }
 0x1fc   :  { %v1784_v3 = vrot.slane %v1741_v41, 1  ;;  %v1743_v0 = vpop.f32.mrb[121].mxu0  ;;  %11650 = vst [vmem:[#allocation8_spill] sm:$0xff] %v8417_v25 }
 0x1fd   :  { %v1744_v4 = vpop.f32.mrb[122].mxu0  ;;  %v2152_v28 = vadd.f32 %v2151_v27, %v8400_v8 }
 0x1fe   :  { %v1792_v52 = vsel %vm1788_vm4, %v1783_v45, %v1784_v3  ;;  %v1785_v22 = vrot.slane %v1744_v4, 1  ;;  %v1746_v54 = vpop.f32.mrb[123].mxu0 }
 0x1ff   :  { %v1880_v26 = vadd.f32 %v1792_v52, %v8168_v15 }
 0x200   :  { %v1791_v5 = vsel %vm1788_vm4, %v1784_v3, %v1785_v22 }
 0x201   :  { %v8406_v19 = vadd.f32 %v8219_v21, %v1880_v26  ;;  %v1881_v29 = vadd.f32 %v1791_v5, %v8172_v34 }
 0x203   :  { %v1749_v24 = vpop.f32.mrb[124].mxu0  ;;  %v8411_v44 = vadd.f32 %v8219_v21, %v1881_v29  ;;  %v2153_v15 = vadd.f32 %v2152_v28, %v8406_v19 }
 0x204   :  { %v1786_v45 = vrot.slane %v1749_v24, 1  ;;  %v1751_v42 = vpop.f32.mrb[125].mxu0 }
 0x205   :  { %v1752_v14 = vpop.f32.mrb[126].mxu0  ;;  %v2154_v11 = vadd.f32 %v2153_v15, %v8411_v44 }
 0x206   :  { %v1790_v12 = vsel %vm1788_vm4, %v1785_v22, %v1786_v45  ;;  %v1787_v43 = vrot.slane %v1752_v14, 1  ;;  %v1754_v34 = vpop.f32.mrb[127].mxu0 }
 0x207   :  { %v1882_v41 = vadd.f32 %v1790_v12, %v8177_v38 }
 0x208   :  { %v1789_v51 = vsel %vm1788_vm4, %v1786_v45, %v1787_v43  ;;  %v1820_v3 = vsel %vm1788_vm4, %v1787_v43, %v1756_v7 }
 0x209   :  { %v1852_v0 = vmul.f32 %v8417_v25, %v1820_v3  ;;  %v1883_v50 = vadd.f32 %v1789_v51, %v8184_v61  ;;  %v8429_v4 = vadd.f32 %v8219_v21, %v1882_v41 }
 0x20b   :  { %v1884_v52 = vadd.f32 %v1852_v0, %v8193_v16  ;;  %v8434_v38 = vadd.f32 %v8219_v21, %v1883_v50  ;;  %v2155_v22 = vadd.f32 %v2154_v11, %v8429_v4 }
 0x20d   :  { %v8438_v17 = vadd.f32 %v8219_v21, %v1884_v52  ;;  %v2156_v7 = vadd.f32 %v2155_v22, %v8434_v38 }
 0x20f   :  { %v2157_v54 = vadd.f32 %v2156_v7, %v8438_v17 }
 0x211   :  { %2158 = vadd.xlane.f32.xlu1 %v2157_v54 }
 0x264   :  { %v1972_v61 = vpop.xlane.xlu0 %1971 }
 0x265   :  { %v1973_v27 = vrot.slane %v1972_v61, 4 }
 0x267   :  { %v1974_v26 = vadd.f32 %v1973_v27, %v1972_v61 }
 0x269   :  { %v1975_v49 = vrot.slane %v1974_v26, 2 }
 0x26b   :  { %v1976_v5 = vadd.f32 %v1975_v49, %v1974_v26 }
 0x26d   :  { %v1977_v29 = vrot.slane %v1976_v5, 1 }
 0x26f   :  { %v1978_v16 = vadd.f32 %v1977_v29, %v1976_v5 }
 0x271   :  { %7328 = vpush %v1978_v16 }
 0x2a2   :  { %s7329_s2 = spop %7328 }
 0x2a3   :  { %s8442_s30 = smul.f32 0.00024414063, %s7329_s2 }
 0x2a5   :  { %v1981_v24 = vstv %s8442_s30  ;;  %s2038_s1 = smul.f32 12288.0, %s8442_s30 }
 0x2a6   :  { %v8446_v21 = vsub.f32 %v8230_v33, %v1981_v24  ;;  %v8449_v28 = vsub.f32 %v8224_v32, %v1981_v24  ;;  %v8452_v45 = vsub.f32 %v8236_v9, %v1981_v24  ;;  %v8459_v15 = vsub.f32 %v8239_v48, %v1981_v24 }
 0x2a7   :  { %v8462_v12 = vsub.f32 %v8249_v56, %v1981_v24  ;;  %v8467_v43 = vsub.f32 %v8253_v63, %v1981_v24  ;;  %v8472_v41 = vsub.f32 %v8260_v18, %v1981_v24  ;;  %v8477_v56 = vsub.f32 %v8266_v31, %v1981_v24  ;;  %s2039_s17 = smul.f32 %s2038_s1, %s8442_s30 }
 0x2a8   :  { %v1998_v42 = vmul.f32 %v8446_v21, %v8446_v21  ;;  %v1999_v14 = vmul.f32 %v8449_v28, %v8449_v28  ;;  %v2000_v33 = vmul.f32 %v8452_v45, %v8452_v45  ;;  %v2001_v9 = vmul.f32 %v8459_v15, %v8459_v15 }
 0x2a9   :  { %v2002_v48 = vmul.f32 %v8462_v12, %v8462_v12  ;;  %v2003_v3 = vmul.f32 %v8467_v43, %v8467_v43  ;;  %v8482_v63 = vsub.f32 %v8272_v35, %v1981_v24  ;;  %v2004_v50 = vmul.f32 %v8472_v41, %v8472_v41 }
 0x2aa   :  { %v2014_v32 = vadd.f32 %v1999_v14, %v1998_v42  ;;  %v8487_v18 = vsub.f32 %v8277_v57, %v1981_v24  ;;  %v2005_v52 = vmul.f32 %v8477_v56, %v8477_v56  ;;  %v8492_v31 = vsub.f32 %v8287_v10, %v1981_v24 }
 0x2ab   :  { %v2006_v7 = vmul.f32 %v8482_v63, %v8482_v63  ;;  %v8497_v35 = vsub.f32 %v8290_v60, %v1981_v24  ;;  %v8502_v57 = vsub.f32 %v8300_v37, %v1981_v24  ;;  %v8507_v10 = vsub.f32 %v8304_v46, %v1981_v24 }
 0x2ac   :  { %v2015_v34 = vadd.f32 %v2014_v32, %v2000_v33  ;;  %v2007_v61 = vmul.f32 %v8487_v18, %v8487_v18  ;;  %v2008_v26 = vmul.f32 %v8492_v31, %v8492_v31  ;;  %v8512_v60 = vsub.f32 %v8314_v55, %v1981_v24 }
 0x2ad   :  { %v2009_v5 = vmul.f32 %v8497_v35, %v8497_v35  ;;  %v2010_v16 = vmul.f32 %v8502_v57, %v8502_v57  ;;  %v8517_v37 = vsub.f32 %v8322_v30, %v1981_v24  ;;  %v2011_v14 = vmul.f32 %v8507_v10, %v8507_v10  ;;  %v7451_v30 = vld [vmem:[%s11517_s5 + $0x80] sm:$0xff]   ;;  %v7452_v24 = vld [vmem:[%s11517_s5 + $0x8] sm:$0xff]  }
 0x2ae   :  { %v2016_v51 = vadd.f32 %v2015_v34, %v2001_v9  ;;  %v2012_v46 = vmul.f32 %v8512_v60, %v8512_v60  ;;  %6944 = vmatprep.subr.bf16.mxu0 %v7451_v30 }
 0x2af   :  { %v2013_v9 = vmul.f32 %v8517_v37, %v8517_v37  ;;  %6945 = vmatpush3.bf16.msra.mxu0 %v7451_v30 }
 0x2b0   :  { %v2017_v0 = vadd.f32 %v2016_v51, %v2002_v48  ;;  %v7450_v48 = vld [vmem:[%s11517_s5] sm:$0xff]   ;;  %v7453_v51 = vld [vmem:[%s11517_s5 + $0x88] sm:$0xff]  }
 0x2b1   :  { %6848 = vmatprep.subr.bf16.mxu1 %v7450_v48  ;;  %6946 = vmatprep.subr.bf16.mxu0 %v7453_v51 }
 0x2b2   :  { %v2018_v11 = vadd.f32 %v2017_v0, %v2003_v3  ;;  %6849 = vmatpush3.bf16.msra.mxu1 %v7450_v48  ;;  %v7454_v3 = vld [vmem:[%s11517_s5 + $0x10] sm:$0xff]  }
 0x2b3   :  { %6850 = vmatprep.subr.bf16.mxu1 %v7452_v24  ;;  %v7455_v0 = vld [vmem:[%s11517_s5 + $0x90] sm:$0xff]   ;;  %6947 = vmatpush3.bf16.msra.mxu0 %v7453_v51 }
 0x2b4   :  { %v2019_v22 = vadd.f32 %v2018_v11, %v2004_v50  ;;  %v7456_v50 = vld [vmem:[%s11517_s5 + $0x18] sm:$0xff]   ;;  %6948 = vmatprep.subr.bf16.mxu0 %v7455_v0 }
 0x2b5   :  { %v7457_v11 = vld [vmem:[%s11517_s5 + $0x98] sm:$0xff]  }
 0x2b6   :  { %v2020_v54 = vadd.f32 %v2019_v22, %v2005_v52  ;;  %6851 = vmatpush3.bf16.msra.mxu1 %v7452_v24  ;;  %v7458_v52 = vld [vmem:[%s11517_s5 + $0x20] sm:$0xff]  }
 0x2b7   :  { %6852 = vmatprep.subr.bf16.mxu1 %v7454_v3  ;;  %v7459_v22 = vld [vmem:[%s11517_s5 + $0xa0] sm:$0xff]   ;;  %6949 = vmatpush3.bf16.msra.mxu0 %v7455_v0 }
 0x2b8   :  { %v2021_v27 = vadd.f32 %v2020_v54, %v2006_v7  ;;  %6950 = vmatprep.subr.bf16.mxu0 %v7457_v11  ;;  %v7460_v7 = vld [vmem:[%s11517_s5 + $0x28] sm:$0xff]   ;;  %v8578_v0 = vld [vmem:[%s11518_s3] sm:$0xff]  }
 0x2b9   :  { %v7461_v54 = vld [vmem:[%s11517_s5 + $0xa8] sm:$0xff]  }
 0x2ba   :  { %v2022_v49 = vadd.f32 %v2021_v27, %v2007_v61  ;;  %6853 = vmatpush3.bf16.msra.mxu1 %v7454_v3 }
 0x2bb   :  { %6854 = vmatprep.subr.bf16.mxu1 %v7456_v50  ;;  %6951 = vmatpush3.bf16.msra.mxu0 %v7457_v11  ;;  %v8588_v11 = vld [vmem:[%s11518_s3 + $0x8] sm:$0xff]  }
 0x2bc   :  { %v2023_v29 = vadd.f32 %v2022_v49, %v2008_v26  ;;  %6952 = vmatprep.subr.bf16.mxu0 %v7459_v22 }
 0x2be   :  { %v2024_v42 = vadd.f32 %v2023_v29, %v2009_v5  ;;  %6855 = vmatpush3.bf16.msra.mxu1 %v7456_v50  ;;  %v7462_v5 = vld [vmem:[%s11517_s5 + $0x30] sm:$0xff]   ;;  %v8583_v50 = vld [vmem:[%s11519_s4] sm:$0xff]  }
 0x2bf   :  { %6856 = vmatprep.subr.bf16.mxu1 %v7458_v52  ;;  %6953 = vmatpush3.bf16.msra.mxu0 %v7459_v22  ;;  %v7463_v29 = vld [vmem:[%s11517_s5 + $0xb0] sm:$0xff]  }
 0x2c0   :  { %v2025_v33 = vadd.f32 %v2024_v42, %v2010_v16  ;;  %6954 = vmatprep.subr.bf16.mxu0 %v7461_v54  ;;  %v7464_v16 = vld [vmem:[%s11517_s5 + $0x38] sm:$0xff]   ;;  %v8598_v22 = vld [vmem:[%s11518_s3 + $0x10] sm:$0xff]  }
 0x2c2   :  { %v2026_v32 = vadd.f32 %v2025_v33, %v2011_v14  ;;  %6857 = vmatpush3.bf16.msra.mxu1 %v7458_v52  ;;  %v7465_v14 = vld [vmem:[%s11517_s5 + $0xb8] sm:$0xff]   ;;  %v8593_v52 = vld [vmem:[%s11519_s4 + $0x8] sm:$0xff]  }
 0x2c3   :  { %6858 = vmatprep.subr.bf16.mxu1 %v7460_v7  ;;  %6955 = vmatpush3.bf16.msra.mxu0 %v7461_v54  ;;  %v11533_v54 = vunpack.c.h.bf16 %v8578_v0 }
 0x2c4   :  { %v2027_v55 = vadd.f32 %v2026_v32, %v2012_v46  ;;  %6956 = vmatprep.subr.bf16.mxu0 %v7463_v29  ;;  %v2159_v32 = vpop.xlane.xlu1 %2158 }
 0x2c6   :  { %v2028_v34 = vadd.f32 %v2027_v55, %v2013_v9  ;;  %6859 = vmatpush3.bf16.msra.mxu1 %v7460_v7  ;;  %v2160_v9 = vrot.slane %v2159_v32, 4  ;;  %v11560_v7 = vunpack.c.l.bf16 %v8578_v0 }
 0x2c7   :  { %6860 = vmatprep.subr.bf16.mxu1 %v7462_v5  ;;  %6957 = vmatpush3.bf16.msra.mxu0 %v7463_v29  ;;  %v11547_v29 = vunpack.c.h.bf16 %v8588_v11 }
 0x2c8   :  { %2029 = vadd.xlane.f32.xlu0 %v2028_v34  ;;  %6958 = vmatprep.subr.bf16.mxu0 %v7465_v14  ;;  %v2161_v55 = vadd.f32 %v2160_v9, %v2159_v32 }
 0x2ca   :  { %6861 = vmatpush3.bf16.msra.mxu1 %v7462_v5  ;;  %v2162_v34 = vrot.slane %v2161_v55, 2  ;;  %v11532_v5 = vunpack.c.l.bf16 %v8588_v11 }
 0x2cb   :  { %6862 = vmatprep.subr.bf16.mxu1 %v7464_v16  ;;  %6959 = vmatpush3.bf16.msra.mxu0 %v7465_v14  ;;  %v11538_v14 = vunpack.c.l.bf16 %v8598_v22 }
 0x2cc   :  { %v2163_v30 = vadd.f32 %v2162_v34, %v2161_v55 }
 0x2ce   :  { %6863 = vmatpush3.bf16.msra.mxu1 %v7464_v16  ;;  %v2164_v24 = vrot.slane %v2163_v30, 1  ;;  %v11537_v16 = vunpack.c.l.bf16 %v8593_v52 }
 0x2d0   :  { %v2165_v3 = vadd.f32 %v2164_v24, %v2163_v30 }
 0x355   :  { %v2030_v61 = vpop.xlane.xlu0 %2029 }
 0x356   :  { %v2031_v27 = vrot.slane %v2030_v61, 4 }
 0x358   :  { %v2032_v26 = vadd.f32 %v2031_v27, %v2030_v61  ;;  %v8605_v61 = vld [vmem:[%s11519_s4 + $0x10] sm:$0xff]   ;;  %v8610_v27 = vld [vmem:[%s11518_s3 + $0x18] sm:$0xff]  }
 0x359   :  { %v11541_v34 = vunpack.c.h.bf16 %v8610_v27 }
 0x35a   :  { %v2033_v49 = vrot.slane %v2032_v26, 2 }
 0x35c   :  { %v2034_v42 = vadd.f32 %v2033_v49, %v2032_v26  ;;  %v11535_v26 = vunpack.c.l.bf16 %v8583_v50  ;;  %v11536_v49 = vunpack.c.h.bf16 %v8583_v50 }
 0x35e   :  { %v2035_v33 = vrot.slane %v2034_v42, 1 }
 0x360   :  { %v2036_v46 = vadd.f32 %v2035_v33, %v2034_v42  ;;  %v11544_v42 = vunpack.c.h.bf16 %v8593_v52  ;;  %v11534_v33 = vunpack.c.h.bf16 %v8598_v22 }
 0x362   :  { %7330 = vpush %v2036_v46  ;;  %v8623_v46 = vld [vmem:[%s11518_s3 + $0x20] sm:$0xff]  }
 0x363   :  { %v11540_v9 = vunpack.c.l.bf16 %v8623_v46 }
 0x393   :  { %s7331_s18 = spop %7330 }
 0x394   :  { %s2040_s19 = ssub.f32 %s7331_s18, %s2039_s17 }
 0x396   :  { %s2041_s20 = smul.f32 0.00024414063, %s2040_s19 }
 0x398   :  { %s2042_s21 = sadd.f32 1e-06, %s2041_s20 }
 0x39a   :  { %v2043_v48 = vstv %s2042_s21 }
 0x39b   :  { %7530 = vrsqrt.f32 %v2043_v48 }
 0x3a5   :  { %v7531_v51 = vpop.eup %7530 }
 0x3a6   :  { %7332 = vpush %v7531_v51 }
 0x3a7   :  { %7334 = vpush %v2165_v3 }
 0x3d7   :  { %s7333_s19 = spop %7332 }
 0x3d8   :  { %v8625_v32 = vstv %s7333_s19  ;;  %s7335_s30 = spop %7334 }
 0x3d9   :  { %v2047_v48 = vmul.f32 %v8625_v32, %v8446_v21  ;;  %v2048_v30 = vmul.f32 %v8625_v32, %v8449_v28  ;;  %v2049_v24 = vmul.f32 %v8625_v32, %v8452_v45  ;;  %v2050_v51 = vmul.f32 %v8625_v32, %v8459_v15  ;;  %v8653_v15 = vld [vmem:[%s11519_s4 + $0x18] sm:$0xff]   ;;  %s8696_s28 = smul.f32 0.00024414063, %s7335_s30 }
 0x3da   :  { %v2051_v3 = vmul.f32 %v8625_v32, %v8462_v12  ;;  %v2052_v55 = vmul.f32 %v8625_v32, %v8467_v43  ;;  %v2053_v12 = vmul.f32 %v8625_v32, %v8472_v41 }
 0x3db   :  { %v2079_v21 = vmul.f32 %v11560_v7, %v2047_v48  ;;  %v2080_v28 = vmul.f32 %v11533_v54, %v2048_v30  ;;  %v2081_v45 = vmul.f32 %v11532_v5, %v2049_v24  ;;  %v2082_v43 = vmul.f32 %v11547_v29, %v2050_v51 }
 0x3dc   :  { %v2083_v48 = vmul.f32 %v11538_v14, %v2051_v3  ;;  %v2084_v30 = vmul.f32 %v11534_v33, %v2052_v55  ;;  %v2054_v24 = vmul.f32 %v8625_v32, %v8477_v56  ;;  %v11539_v51 = vunpack.c.h.bf16 %v8623_v46  ;;  %v8675_v3 = vld [vmem:[%s11519_s4 + $0x20] sm:$0xff]  }
 0x3dd   :  { %v2111_v5 = vadd.f32 %v11535_v26, %v2079_v21  ;;  %v2112_v54 = vadd.f32 %v11536_v49, %v2080_v28  ;;  %v2113_v41 = vadd.f32 %v11537_v16, %v2081_v45  ;;  %v2114_v56 = vadd.f32 %v11544_v42, %v2082_v43  ;;  %v8694_v43 = vld [vmem:[%s11518_s3 + $0x28] sm:$0xff]  }
 0x3de   :  { %v11651_v55 = vunpack.c.l.bf16 %v8605_v61  ;;  %v11652_v21 = vunpack.c.h.bf16 %v8605_v61  ;;  %v11543_v28 = vunpack.c.l.bf16 %v8653_v15  ;;  %v11542_v45 = vunpack.c.h.bf16 %v8653_v15 }
 0x3df   :  { %v8684_v49 = vpack.c.bf16 %v2112_v54, %v2111_v5  ;;  %v2055_v16 = vmul.f32 %v8625_v32, %v8482_v63  ;;  %v2056_v14 = vmul.f32 %v8625_v32, %v8487_v18  ;;  %v11653_v54 = vunpack.c.l.bf16 %v8610_v27  ;;  %v8708_v18 = vld [vmem:[%s11518_s3 + $0x30] sm:$0xff]  }
 0x3e0   :  { %v2115_v33 = vadd.f32 %v11651_v55, %v2083_v48  ;;  %v2116_v26 = vadd.f32 %v11652_v21, %v2084_v30  ;;  %v8698_v48 = vpack.c.bf16 %v2114_v56, %v2113_v41  ;;  %v2086_v30 = vmul.f32 %v11541_v34, %v2054_v24 }
 0x3e1   :  { %v2085_v5 = vmul.f32 %v11653_v54, %v2053_v12  ;;  %v11546_v63 = vunpack.c.l.bf16 %v8675_v3  ;;  %6864 = vmatprep.mubr.bf16.mxu1 %v8684_v49  ;;  %6960 = vmatprep.mubr.bf16.mxu0 %v8684_v49  ;;  %v11545_v56 = vunpack.c.h.bf16 %v8675_v3  ;;  %v2087_v12 = vmul.f32 %v11540_v9, %v2055_v16  ;;  %v8740_v9 = vld [vmem:[%s11519_s4 + $0x28] sm:$0xff]  }
 0x3e2   :  { %v8712_v41 = vpack.c.bf16 %v2116_v26, %v2115_v33  ;;  %v2088_v24 = vmul.f32 %v11539_v51, %v2056_v14  ;;  %6865 = vmatmul.mubr.bf16.vlgmr.msra.gmra.mrb[64].mxu1 %v8698_v48  ;;  %6961 = vmatmul.mubr.bf16.vlgmr.msra.gmra.mrb[128].mxu0 %v8698_v48  ;;  %v11553_v55 = vunpack.c.l.bf16 %v8694_v43  ;;  %v11548_v26 = vunpack.c.h.bf16 %v8694_v43 }
 0x3e3   :  { %v2057_v33 = vmul.f32 %v8625_v32, %v8492_v31  ;;  %v2058_v16 = vmul.f32 %v8625_v32, %v8497_v35  ;;  %v11552_v14 = vunpack.c.l.bf16 %v8708_v18  ;;  %v8731_v21 = vstv %s8696_s28 }
 0x3e4   :  { %6868 = vmatprep.mubr.bf16.mxu1 %v8712_v41  ;;  %6964 = vmatprep.mubr.bf16.mxu0 %v8712_v41  ;;  %v2117_v54 = vadd.f32 %v11543_v28, %v2085_v5  ;;  %v2118_v51 = vadd.f32 %v11542_v45, %v2086_v30  ;;  %v11549_v31 = vunpack.c.h.bf16 %v8708_v18  ;;  %v2119_v35 = vadd.f32 %v11546_v63, %v2087_v12  ;;  %v8750_v5 = vld [vmem:[%s11519_s4 + $0x30] sm:$0xff]  }
 0x3e5   :  { %v2120_v34 = vadd.f32 %v11545_v56, %v2088_v24  ;;  %v2059_v30 = vmul.f32 %v8625_v32, %v8502_v57  ;;  %v2060_v45 = vmul.f32 %v8625_v32, %v8507_v10  ;;  %v11551_v28 = vunpack.c.l.bf16 %v8740_v9  ;;  %v8765_v56 = vld [vmem:[%s11518_s3 + $0x38] sm:$0xff]  }
 0x3e6   :  { %v11550_v42 = vunpack.c.h.bf16 %v8740_v9  ;;  %v2089_v12 = vmul.f32 %v11553_v55, %v2057_v33  ;;  %v2090_v24 = vmul.f32 %v11548_v26, %v2058_v16  ;;  %v8767_v63 = vpack.c.bf16 %v2118_v51, %v2117_v54 }
 0x3e7   :  { %v11559_v57 = vunpack.c.l.bf16 %v8750_v5  ;;  %v8772_v10 = vsub.f32 %v8342_v20, %v8731_v21  ;;  %v8776_v29 = vsub.f32 %v8339_v58, %v8731_v21  ;;  %v8778_v33 = vpack.c.bf16 %v2120_v34, %v2119_v35  ;;  %v8800_v35 = vld [vmem:[%s11519_s4 + $0x38] sm:$0xff]  }
 0x3e8   :  { %v11558_v16 = vunpack.c.h.bf16 %v8750_v5  ;;  %v2091_v26 = vmul.f32 %v11552_v14, %v2059_v30  ;;  %v2092_v51 = vmul.f32 %v11549_v31, %v2060_v45  ;;  %v11557_v20 = vunpack.c.l.bf16 %v8765_v56 }
 0x3e9   :  { %v2121_v58 = vadd.f32 %v11551_v28, %v2089_v12  ;;  %v2122_v34 = vadd.f32 %v11550_v42, %v2090_v24  ;;  %v11556_v54 = vunpack.c.h.bf16 %v8765_v56  ;;  %v2061_v45 = vmul.f32 %v8625_v32, %v8512_v60 }
 0x3ea   :  { %6869 = vmatmul.mubr.bf16.gmra.mrb[68].mxu1 %v8767_v63  ;;  %6965 = vmatmul.mubr.bf16.gmra.mrb[132].mxu0 %v8767_v63  ;;  %v2062_v30 = vmul.f32 %v8625_v32, %v8517_v37  ;;  %v8806_v31 = vsub.f32 %v8349_v59, %v8731_v21  ;;  %v2185_v12 = vmul.f32 %v8772_v10, %v8772_v10  ;;  %v11555_v59 = vunpack.c.l.bf16 %v8800_v35 }
 0x3eb   :  { %6872 = vmatprep.mubr.bf16.mxu1 %v8778_v33  ;;  %6968 = vmatprep.mubr.bf16.mxu0 %v8778_v33  ;;  %v2186_v24 = vmul.f32 %v8776_v29, %v8776_v29  ;;  %v2123_v60 = vadd.f32 %v11559_v57, %v2091_v26  ;;  %v2124_v42 = vadd.f32 %v11558_v16, %v2092_v51  ;;  %v11554_v32 = vunpack.c.h.bf16 %v8800_v35 }
 0x3ec   :  { %v8818_v28 = vsub.f32 %v8355_v2, %v8731_v21  ;;  %v8820_v37 = vpack.c.bf16 %v2122_v34, %v2121_v58  ;;  %v2093_v14 = vmul.f32 %v11557_v20, %v2061_v45  ;;  %v2094_v55 = vmul.f32 %v11556_v54, %v2062_v30 }
 0x3ed   :  { %v8830_v26 = vsub.f32 %v8361_v39, %v8731_v21  ;;  %v2187_v2 = vmul.f32 %v8806_v31, %v8806_v31  ;;  %v2201_v51 = vadd.f32 %v2186_v24, %v2185_v12  ;;  %v8834_v58 = vpack.c.bf16 %v2124_v42, %v2123_v60 }
 0x3ee   :  { %v8840_v34 = vsub.f32 %v8366_v62, %v8731_v21  ;;  %v2188_v45 = vmul.f32 %v8818_v28, %v8818_v28  ;;  %v2125_v39 = vadd.f32 %v11555_v59, %v2093_v14  ;;  %v2126_v42 = vadd.f32 %v11554_v32, %v2094_v55  ;;  %v7472_v59 = vld [vmem:[%s11517_s5 + $0x70] sm:$0xff]  }
 0x3ef   :  { %v2202_v30 = vadd.f32 %v2201_v51, %v2187_v2  ;;  %v8852_v12 = vsub.f32 %v8375_v40, %v8731_v21  ;;  %v2189_v62 = vmul.f32 %v8830_v26, %v8830_v26  ;;  %v8858_v60 = vsub.f32 %v8378_v23, %v8731_v21 }
 0x3f0   :  { %v2190_v2 = vmul.f32 %v8840_v34, %v8840_v34  ;;  %v8862_v14 = vpack.c.bf16 %v2126_v42, %v2125_v39  ;;  %v8866_v55 = vsub.f32 %v8388_v36, %v8731_v21  ;;  %v8874_v23 = vsub.f32 %v8392_v1, %v8731_v21 }
 0x3f1   :  { %v2203_v24 = vadd.f32 %v2202_v30, %v2188_v45  ;;  %v2191_v40 = vmul.f32 %v8852_v12, %v8852_v12  ;;  %v2192_v45 = vmul.f32 %v8858_v60, %v8858_v60  ;;  %v8880_v36 = vsub.f32 %v8400_v8, %v8731_v21 }
 0x3f2   :  { %6873 = vmatmul.mubr.bf16.gmra.mrb[72].mxu1 %v8820_v37  ;;  %6969 = vmatmul.mubr.bf16.gmra.mrb[136].mxu0 %v8820_v37  ;;  %v2193_v39 = vmul.f32 %v8866_v55, %v8866_v55  ;;  %v2194_v1 = vmul.f32 %v8874_v23, %v8874_v23 }
 0x3f3   :  { %6876 = vmatprep.mubr.bf16.mxu1 %v8834_v58  ;;  %6972 = vmatprep.mubr.bf16.mxu0 %v8834_v58  ;;  %v2204_v51 = vadd.f32 %v2203_v24, %v2189_v62  ;;  %v8886_v62 = vsub.f32 %v8406_v19, %v8731_v21  ;;  %v2195_v8 = vmul.f32 %v8880_v36, %v8880_v36 }
 0x3f5   :  { %v2205_v32 = vadd.f32 %v2204_v51, %v2190_v2  ;;  %v8892_v2 = vsub.f32 %v8411_v44, %v8731_v21  ;;  %v8898_v51 = vsub.f32 %v8429_v4, %v8731_v21  ;;  %v2196_v19 = vmul.f32 %v8886_v62, %v8886_v62 }
 0x3f7   :  { %v2206_v30 = vadd.f32 %v2205_v32, %v2191_v40  ;;  %v2197_v44 = vmul.f32 %v8892_v2, %v8892_v2  ;;  %v2198_v4 = vmul.f32 %v8898_v51, %v8898_v51 }
 0x3f9   :  { %v2207_v42 = vadd.f32 %v2206_v30, %v2192_v45  ;;  %v8904_v45 = vsub.f32 %v8434_v38, %v8731_v21 }
 0x3fa   :  { %6877 = vmatmul.mubr.bf16.gmra.mrb[76].mxu1 %v8862_v14  ;;  %6973 = vmatmul.mubr.bf16.gmra.mrb[140].mxu0 %v8862_v14 }
 0x3fb   :  { %v2208_v24 = vadd.f32 %v2207_v42, %v2193_v39  ;;  %v8910_v39 = vsub.f32 %v8438_v17, %v8731_v21  ;;  %v7467_v17 = vld [vmem:[%s11517_s5 + $0x48] sm:$0xff]   ;;  %v7468_v21 = vld [vmem:[%s11517_s5 + $0x50] sm:$0xff]  }
 0x3fd   :  { %v2209_v32 = vadd.f32 %v2208_v24, %v2194_v1  ;;  %v2199_v1 = vmul.f32 %v8904_v45, %v8904_v45  ;;  %v2200_v38 = vmul.f32 %v8910_v39, %v8910_v39 }
 0x3ff   :  { %v2210_v40 = vadd.f32 %v2209_v32, %v2195_v8 }
 0x401   :  { %v2211_v30 = vadd.f32 %v2210_v40, %v2196_v19  ;;  %v7466_v19 = vld [vmem:[%s11517_s5 + $0x40] sm:$0xff]  }
 0x402   :  { %6896 = vmatprep.subr.bf16.mxu1 %v7466_v19 }
 0x403   :  { %v2212_v42 = vadd.f32 %v2211_v30, %v2197_v44  ;;  %6897 = vmatpush3.bf16.msra.mxu1 %v7466_v19 }
 0x404   :  { %6898 = vmatprep.subr.bf16.mxu1 %v7467_v17 }
 0x405   :  { %v2213_v24 = vadd.f32 %v2212_v42, %v2198_v4  ;;  %v7469_v4 = vld [vmem:[%s11517_s5 + $0x58] sm:$0xff]  }
 0x407   :  { %v2214_v8 = vadd.f32 %v2213_v24, %v2199_v1  ;;  %6899 = vmatpush3.bf16.msra.mxu1 %v7467_v17 }
 0x408   :  { %6900 = vmatprep.subr.bf16.mxu1 %v7468_v21 }
 0x409   :  { %v2215_v32 = vadd.f32 %v2214_v8, %v2200_v38  ;;  %v7470_v8 = vld [vmem:[%s11517_s5 + $0x60] sm:$0xff]  }
 0x40b   :  { %2216 = vadd.xlane.f32.xlu1 %v2215_v32  ;;  %6901 = vmatpush3.bf16.msra.mxu1 %v7468_v21  ;;  %v7471_v32 = vld [vmem:[%s11517_s5 + $0x68] sm:$0xff]  }
 0x40c   :  { %6902 = vmatprep.subr.bf16.mxu1 %v7469_v4 }
 0x40f   :  { %6903 = vmatpush3.bf16.msra.mxu1 %v7469_v4 }
 0x410   :  { %6904 = vmatprep.subr.bf16.mxu1 %v7470_v8 }
 0x413   :  { %6905 = vmatpush3.bf16.msra.mxu1 %v7470_v8 }
 0x414   :  { %6906 = vmatprep.subr.bf16.mxu1 %v7471_v32 }
 0x417   :  { %6907 = vmatpush3.bf16.msra.mxu1 %v7471_v32 }
 0x418   :  { %6908 = vmatprep.subr.bf16.mxu1 %v7472_v59 }
 0x41b   :  { %6909 = vmatpush3.bf16.msra.mxu1 %v7472_v59 }
 0x498   :  { %v2217_v40 = vpop.xlane.xlu1 %2216 }
 0x499   :  { %v2218_v44 = vrot.slane %v2217_v40, 4 }
 0x49b   :  { %v2219_v30 = vadd.f32 %v2218_v44, %v2217_v40 }
 0x49d   :  { %v2220_v42 = vrot.slane %v2219_v30, 2 }
 0x49f   :  { %v2221_v1 = vadd.f32 %v2220_v42, %v2219_v30 }
 0x4a1   :  { %v2222_v24 = vrot.slane %v2221_v1, 1 }
 0x4a3   :  { %v2223_v38 = vadd.f32 %v2222_v24, %v2221_v1 }
 0x4a5   :  { %7336 = vpush %v2223_v38 }
 0x4b5   :  { %v6866_v19 = vpop.f32.mrb[64].mxu1  ;;  %v6962_v17 = vpop.f32.mrb[128].mxu0 }
 0x4b6   :  { %v8936_v21 = vpop.f32.mrb[65].mxu1  ;;  %v8938_v40 = vpop.f32.mrb[129].mxu0  ;;  %v2557_v44 = vrot.slane %v6866_v19, 7  ;;  %v3087_v42 = vrot.slane %v6962_v17, 1 }
 0x4b7   :  { %11654 = vst [vmem:[#allocation9_spill] sm:$0xff] %v8936_v21  ;;  %v6867_v30 = vpop.f32.mrb[66].mxu1  ;;  %v6963_v4 = vpop.f32.mrb[130].mxu0  ;;  %v11571_v32 = vrot.slane %v8936_v21, 7  ;;  %v11567_v54 = vrot.slane %v8938_v40, 1 }
 0x4b8   :  { %v2558_v1 = vrot.slane %v6867_v30, 7  ;;  %v3088_v24 = vrot.slane %v6963_v4, 1  ;;  %v2431_v38 = vpop.f32.mrb[67].mxu1  ;;  %v2961_v8 = vpop.f32.mrb[131].mxu0 }
 0x4b9   :  { %v2556_v20 = vrot.slane %v2431_v38, 7  ;;  %v3086_v16 = vrot.slane %v2961_v8, 1 }
 0x4ba   :  { %v8947_v19 = vsel %vm1788_vm4, %v3087_v42, %v3088_v24  ;;  %v8951_v17 = vsel %vm1201_vm1, %v2557_v44, %v2558_v1 }
 0x4bb   :  { %11655 = vst [vmem:[#allocation10_spill] sm:$0xff] %v8947_v19  ;;  %11656 = vst [vmem:[#allocation11_spill] sm:$0xff] %v8951_v17  ;;  %v8955_v30 = vsel %vm1201_vm1, %v2556_v20, %v2557_v44  ;;  %v8961_v4 = vsel %vm1788_vm4, %v11567_v54, %v3086_v16  ;;  %v8967_v38 = vsel %vm1201_vm1, %v11571_v32, %v2556_v20  ;;  %v7473_v20 = vld [vmem:[%s11517_s5 + $0x78] sm:$0xff]   ;;  %s2225_s5 = smul.f32 12288.0, %s8696_s28 }
 0x4bc   :  { %11657 = vst [vmem:[#allocation12_spill] sm:$0xff] %v8955_v30  ;;  %11658 = vst [vmem:[#allocation13_spill] sm:$0xff] %v8961_v4  ;;  %v8971_v8 = vsel %vm1788_vm4, %v3086_v16, %v3087_v42  ;;  %6910 = vmatprep.subr.bf16.mxu1 %v7473_v20 }
 0x4bd   :  { %11659 = vst [vmem:[#allocation14_spill] sm:$0xff] %v8967_v38  ;;  %11660 = vst [vmem:[#allocation15_spill] sm:$0xff] %v8971_v8  ;;  %v6870_v59 = vpop.f32.mrb[68].mxu1  ;;  %v6966_v57 = vpop.f32.mrb[132].mxu0  ;;  %6911 = vmatpush3.bf16.msra.mxu1 %v7473_v20  ;;  %s2226_s3 = smul.f32 %s2225_s5, %s8696_s28 }
 0x4be   :  { %v2444_v44 = vpop.f32.mrb[69].mxu1  ;;  %v2974_v7 = vpop.f32.mrb[133].mxu0  ;;  %v2561_v25 = vrot.slane %v6870_v59, 7  ;;  %v3091_v4 = vrot.slane %v6966_v57, 1 }
 0x4bf   :  { %v2559_v13 = vrot.slane %v2444_v44, 7  ;;  %v3089_v47 = vrot.slane %v2974_v7, 1  ;;  %v6871_v17 = vpop.f32.mrb[70].mxu1  ;;  %v6967_v54 = vpop.f32.mrb[134].mxu0 }
 0x4c0   :  { %v2562_v19 = vrot.slane %v6871_v17, 7  ;;  %v3092_v30 = vrot.slane %v6967_v54, 1  ;;  %v2447_v53 = vpop.f32.mrb[71].mxu1  ;;  %v2977_v21 = vpop.f32.mrb[135].mxu0 }
 0x4c1   :  { %v2560_v16 = vrot.slane %v2447_v53, 7  ;;  %v3090_v42 = vrot.slane %v2977_v21, 1  ;;  %v8978_v32 = vsel %vm1788_vm4, %v3088_v24, %v3089_v47  ;;  %v8982_v7 = vsel %vm1201_vm1, %v2558_v1, %v2559_v13 }
 0x4c2   :  { %11661 = vst [vmem:[#allocation16_spill] sm:$0xff] %v8978_v32  ;;  %11662 = vst [vmem:[#allocation17_spill] sm:$0xff] %v8982_v7  ;;  %v8986_v57 = vsel %vm1788_vm4, %v3091_v4, %v3092_v30  ;;  %v8990_v54 = vsel %vm1201_vm1, %v2561_v25, %v2562_v19 }
 0x4c3   :  { %11663 = vst [vmem:[#allocation18_spill] sm:$0xff] %v8986_v57  ;;  %11664 = vst [vmem:[#allocation19_spill] sm:$0xff] %v8990_v54  ;;  %v8994_v53 = vsel %vm1201_vm1, %v2560_v16, %v2561_v25  ;;  %v8998_v21 = vsel %vm1788_vm4, %v3089_v47, %v3090_v42  ;;  %v9002_v1 = vsel %vm1201_vm1, %v2559_v13, %v2560_v16 }
 0x4c4   :  { %11665 = vst [vmem:[#allocation20_spill] sm:$0xff] %v8994_v53  ;;  %11666 = vst [vmem:[#allocation21_spill] sm:$0xff] %v8998_v21  ;;  %v9006_v24 = vsel %vm1788_vm4, %v3090_v42, %v3091_v4 }
 0x4c5   :  { %v6874_v17 = vpop.f32.mrb[72].mxu1  ;;  %v6970_v59 = vpop.f32.mrb[136].mxu0 }
 0x4c6   :  { %v2460_v44 = vpop.f32.mrb[73].mxu1  ;;  %v2990_v20 = vpop.f32.mrb[137].mxu0  ;;  %v2565_v53 = vrot.slane %v6874_v17, 7  ;;  %v3095_v8 = vrot.slane %v6970_v59, 1 }
 0x4c7   :  { %v2563_v54 = vrot.slane %v2460_v44, 7  ;;  %v3093_v57 = vrot.slane %v2990_v20, 1  ;;  %v6875_v25 = vpop.f32.mrb[74].mxu1  ;;  %v6971_v7 = vpop.f32.mrb[138].mxu0 }
 0x4c8   :  { %v2566_v47 = vrot.slane %v6875_v25, 7  ;;  %v3096_v21 = vrot.slane %v6971_v7, 1  ;;  %v2463_v32 = vpop.f32.mrb[75].mxu1  ;;  %v2993_v38 = vpop.f32.mrb[139].mxu0 }
 0x4c9   :  { %v2564_v13 = vrot.slane %v2463_v32, 7  ;;  %v3094_v16 = vrot.slane %v2993_v38, 1  ;;  %v9010_v4 = vsel %vm1788_vm4, %v3092_v30, %v3093_v57  ;;  %v9014_v42 = vsel %vm1201_vm1, %v2562_v19, %v2563_v54 }
 0x4ca   :  { %11667 = vst [vmem:[#allocation22_spill] sm:$0xff] %v9014_v42  ;;  %v9018_v44 = vsel %vm1788_vm4, %v3095_v8, %v3096_v21  ;;  %v9022_v17 = vsel %vm1201_vm1, %v2565_v53, %v2566_v47 }
 0x4cb   :  { %11668 = vst [vmem:[#allocation23_spill] sm:$0xff] %v9018_v44  ;;  %11669 = vst [vmem:[#allocation24_spill] sm:$0xff] %v9022_v17  ;;  %v9026_v32 = vsel %vm1201_vm1, %v2564_v13, %v2565_v53  ;;  %v9030_v30 = vsel %vm1788_vm4, %v3093_v57, %v3094_v16  ;;  %v9034_v19 = vsel %vm1201_vm1, %v2563_v54, %v2564_v13 }
 0x4cc   :  { %11670 = vst [vmem:[#allocation25_spill] sm:$0xff] %v9030_v30  ;;  %11671 = vst [vmem:[#allocation26_spill] sm:$0xff] %v9034_v19  ;;  %v9038_v38 = vsel %vm1788_vm4, %v3094_v16, %v3095_v8 }
 0x4cd   :  { %11672 = vst [vmem:[#allocation27_spill] sm:$0xff] %v9038_v38  ;;  %v6878_v7 = vpop.f32.mrb[76].mxu1  ;;  %v6974_v59 = vpop.f32.mrb[140].mxu0 }
 0x4ce   :  { %v2476_v20 = vpop.f32.mrb[77].mxu1  ;;  %v3006_v25 = vpop.f32.mrb[141].mxu0  ;;  %v2569_v57 = vrot.slane %v6878_v7, 7  ;;  %v3099_v30 = vrot.slane %v6974_v59, 1 }
 0x4cf   :  { %v2567_v17 = vrot.slane %v2476_v20, 7  ;;  %v3097_v44 = vrot.slane %v3006_v25, 1  ;;  %v9040_v53 = vpop.f32.mrb[78].mxu1  ;;  %v9042_v42 = vpop.f32.mrb[142].mxu0 }
 0x4d0   :  { %v11572_v54 = vrot.slane %v9040_v53, 7  ;;  %v11573_v13 = vrot.slane %v9042_v42, 1  ;;  %v2479_v8 = vpop.f32.mrb[79].mxu1  ;;  %v3009_v16 = vpop.f32.mrb[143].mxu0 }
 0x4d1   :  { %v2568_v38 = vrot.slane %v2479_v8, 7  ;;  %v3098_v19 = vrot.slane %v3009_v16, 1  ;;  %v9048_v20 = vsel %vm1788_vm4, %v3096_v21, %v3097_v44  ;;  %v9052_v25 = vsel %vm1201_vm1, %v2566_v47, %v2567_v17 }
 0x4d2   :  { %11673 = vst [vmem:[#allocation28_spill] sm:$0xff] %v9052_v25  ;;  %v9058_v7 = vsel %vm1788_vm4, %v3099_v30, %v11573_v13  ;;  %v9064_v59 = vsel %vm1201_vm1, %v2569_v57, %v11572_v54 }
 0x4d3   :  { %11674 = vst [vmem:[#allocation29_spill] sm:$0xff] %v9058_v7  ;;  %11675 = vst [vmem:[#allocation30_spill] sm:$0xff] %v9064_v59  ;;  %v9068_v21 = vsel %vm1201_vm1, %v2568_v38, %v2569_v57  ;;  %v9072_v47 = vsel %vm1788_vm4, %v3097_v44, %v3098_v19  ;;  %v9076_v8 = vsel %vm1201_vm1, %v2567_v17, %v2568_v38  ;;  %v11682_v59 = vunpack.c.l.bf16 %v8588_v11 }
 0x4d4   :  { %11676 = vst [vmem:[#allocation31_spill] sm:$0xff] %v9068_v21  ;;  %11677 = vst [vmem:[#allocation32_spill] sm:$0xff] %v9072_v47  ;;  %v9080_v16 = vsel %vm1788_vm4, %v3098_v19, %v3099_v30 }
 0x4d5   :  { %11678 = vst [vmem:[#allocation33_spill] sm:$0xff] %v9076_v8  ;;  %11679 = vst [vmem:[#allocation34_spill] sm:$0xff] %v9080_v16  ;;  %v11680_v8 = vunpack.c.l.bf16 %v8578_v0 }
 0x4d6   :  { %s7337_s21 = spop %7336 }
 0x4d7   :  { %s2227_s4 = ssub.f32 %s7337_s21, %s2226_s3 }
 0x4d9   :  { %s2228_s22 = smul.f32 0.00024414063, %s2227_s4 }
 0x4db   :  { %s2229_s24 = sadd.f32 1e-06, %s2228_s22 }
 0x4dd   :  { %v2230_v57 = vstv %s2229_s24 }
 0x4de   :  { %7532 = vrsqrt.f32 %v2230_v57  ;;  %v11681_v57 = vunpack.c.h.bf16 %v8578_v0 }
 0x4e8   :  { %v7533_v54 = vpop.eup %7532 }
 0x4e9   :  { %7338 = vpush %v7533_v54 }
 0x51a   :  { %s7339_s30 = spop %7338 }
 0x51b   :  { %v2233_v44 = vstv %s7339_s30 }
 0x51c   :  { %v2234_v13 = vmul.f32 %v2233_v44, %v8772_v10  ;;  %v2235_v17 = vmul.f32 %v2233_v44, %v8776_v29  ;;  %v2236_v38 = vmul.f32 %v2233_v44, %v8806_v31  ;;  %v2237_v30 = vmul.f32 %v2233_v44, %v8818_v28 }
 0x51d   :  { %v2238_v19 = vmul.f32 %v2233_v44, %v8830_v26  ;;  %v2239_v16 = vmul.f32 %v2233_v44, %v8840_v34  ;;  %v11683_v10 = vunpack.c.h.bf16 %v8588_v11  ;;  %v11684_v31 = vunpack.c.l.bf16 %v8598_v22 }
 0x51e   :  { %v2250_v47 = vmul.f32 %v11680_v8, %v2234_v13  ;;  %v2251_v54 = vmul.f32 %v11681_v57, %v2235_v17  ;;  %v2252_v7 = vmul.f32 %v11682_v59, %v2236_v38  ;;  %v11685_v28 = vunpack.c.h.bf16 %v8598_v22 }
 0x51f   :  { %v2253_v29 = vmul.f32 %v11683_v10, %v2237_v30  ;;  %v2254_v25 = vmul.f32 %v11684_v31, %v2238_v19  ;;  %v2240_v34 = vmul.f32 %v2233_v44, %v8852_v12  ;;  %v2241_v21 = vmul.f32 %v2233_v44, %v8858_v60 }
 0x520   :  { %v2255_v26 = vmul.f32 %v11685_v28, %v2239_v16  ;;  %v11686_v13 = vunpack.c.l.bf16 %v8583_v50  ;;  %v11687_v8 = vunpack.c.h.bf16 %v8583_v50  ;;  %v11688_v59 = vunpack.c.l.bf16 %v8593_v52 }
 0x521   :  { %v11689_v38 = vunpack.c.h.bf16 %v8593_v52  ;;  %v11690_v19 = vunpack.c.l.bf16 %v8605_v61  ;;  %v11691_v16 = vunpack.c.h.bf16 %v8605_v61  ;;  %v2242_v10 = vmul.f32 %v2233_v44, %v8866_v55 }
 0x522   :  { %v2266_v0 = vadd.f32 %v11686_v13, %v2250_v47  ;;  %v2267_v17 = vadd.f32 %v11687_v8, %v2251_v54  ;;  %v2268_v11 = vadd.f32 %v11688_v59, %v2252_v7  ;;  %v2243_v47 = vmul.f32 %v2233_v44, %v8874_v23 }
 0x523   :  { %v2269_v30 = vadd.f32 %v11689_v38, %v2253_v29  ;;  %v2270_v22 = vadd.f32 %v11690_v19, %v2254_v25  ;;  %v2271_v12 = vadd.f32 %v11691_v16, %v2255_v26  ;;  %v11692_v50 = vunpack.c.l.bf16 %v8610_v27 }
 0x524   :  { %v2282_v57 = vpack.c.bf16 %v2267_v17, %v2266_v0  ;;  %v11693_v7 = vunpack.c.h.bf16 %v8610_v27  ;;  %v11694_v25 = vunpack.c.l.bf16 %v8623_v46  ;;  %v11695_v61 = vunpack.c.h.bf16 %v8623_v46 }
 0x525   :  { %v2283_v60 = vpack.c.bf16 %v2269_v30, %v2268_v11  ;;  %v2256_v54 = vmul.f32 %v11692_v50, %v2240_v34  ;;  %v2284_v52 = vpack.c.bf16 %v2271_v12, %v2270_v22  ;;  %v11696_v55 = vunpack.c.l.bf16 %v8653_v15 }
 0x526   :  { %v2257_v31 = vmul.f32 %v11693_v7, %v2241_v21  ;;  %6880 = vmatprep.mubr.bf16.mxu1 %v2282_v57  ;;  %6976 = vmatprep.mubr.bf16.mxu0 %v2282_v57  ;;  %v2258_v29 = vmul.f32 %v11694_v25, %v2242_v10  ;;  %v2259_v28 = vmul.f32 %v11695_v61, %v2243_v47  ;;  %v11697_v26 = vunpack.c.h.bf16 %v8653_v15 }
 0x527   :  { %6881 = vmatmul.mubr.bf16.gmra.mrb[80].mxu1 %v2283_v60  ;;  %6977 = vmatmul.mubr.bf16.gmra.mrb[144].mxu0 %v2283_v60  ;;  %v2272_v23 = vadd.f32 %v11696_v55, %v2256_v54  ;;  %v2244_v21 = vmul.f32 %v2233_v44, %v8880_v36  ;;  %v2245_v34 = vmul.f32 %v2233_v44, %v8886_v62  ;;  %v11698_v13 = vunpack.c.l.bf16 %v8675_v3 }
 0x528   :  { %6884 = vmatprep.mubr.bf16.mxu1 %v2284_v52  ;;  %6980 = vmatprep.mubr.bf16.mxu0 %v2284_v52  ;;  %v2273_v27 = vadd.f32 %v11697_v26, %v2257_v31  ;;  %v11699_v46 = vunpack.c.h.bf16 %v8675_v3  ;;  %v2246_v17 = vmul.f32 %v2233_v44, %v8892_v2  ;;  %v2247_v59 = vmul.f32 %v2233_v44, %v8898_v51 }
 0x529   :  { %v2274_v0 = vadd.f32 %v11698_v13, %v2258_v29  ;;  %v11700_v38 = vunpack.c.l.bf16 %v8694_v43  ;;  %v11701_v15 = vunpack.c.h.bf16 %v8694_v43  ;;  %v11702_v62 = vunpack.c.l.bf16 %v8708_v18 }
 0x52a   :  { %v2275_v8 = vadd.f32 %v11699_v46, %v2259_v28  ;;  %v2285_v11 = vpack.c.bf16 %v2273_v27, %v2272_v23  ;;  %v11703_v16 = vunpack.c.h.bf16 %v8708_v18  ;;  %v11704_v3 = vunpack.c.l.bf16 %v8740_v9 }
 0x52b   :  { %v2260_v30 = vmul.f32 %v11700_v38, %v2244_v21  ;;  %v2261_v19 = vmul.f32 %v11701_v15, %v2245_v34  ;;  %v2262_v22 = vmul.f32 %v11702_v62, %v2246_v17  ;;  %v11705_v51 = vunpack.c.h.bf16 %v8740_v9 }
 0x52c   :  { %v2286_v36 = vpack.c.bf16 %v2275_v8, %v2274_v0  ;;  %v2263_v12 = vmul.f32 %v11703_v16, %v2247_v59  ;;  %v2248_v43 = vmul.f32 %v2233_v44, %v8904_v45  ;;  %v2249_v47 = vmul.f32 %v2233_v44, %v8910_v39 }
 0x52d   :  { %v2276_v2 = vadd.f32 %v11704_v3, %v2260_v30  ;;  %v2277_v10 = vadd.f32 %v11705_v51, %v2261_v19  ;;  %v11706_v50 = vunpack.c.l.bf16 %v8750_v5  ;;  %v11707_v18 = vunpack.c.h.bf16 %v8750_v5 }
 0x52e   :  { %v11708_v25 = vunpack.c.l.bf16 %v8765_v56  ;;  %v11709_v61 = vunpack.c.h.bf16 %v8765_v56  ;;  %v11710_v9 = vunpack.c.l.bf16 %v8800_v35  ;;  %v11711_v39 = vunpack.c.h.bf16 %v8800_v35 }
 0x52f   :  { %6885 = vmatmul.mubr.bf16.gmra.mrb[84].mxu1 %v2285_v11  ;;  %6981 = vmatmul.mubr.bf16.gmra.mrb[148].mxu0 %v2285_v11  ;;  %v2278_v54 = vadd.f32 %v11706_v50, %v2262_v22  ;;  %v2279_v7 = vadd.f32 %v11707_v18, %v2263_v12  ;;  %v2287_v31 = vpack.c.bf16 %v2277_v10, %v2276_v2  ;;  %v11713_v13 = vrot.slane %v9040_v53, 7 }
 0x530   :  { %6888 = vmatprep.mubr.bf16.mxu1 %v2286_v36  ;;  %6984 = vmatprep.mubr.bf16.mxu0 %v2286_v36  ;;  %v2264_v29 = vmul.f32 %v11708_v25, %v2248_v43  ;;  %v2265_v28 = vmul.f32 %v11709_v61, %v2249_v47 }
 0x531   :  { %v2288_v55 = vpack.c.bf16 %v2279_v7, %v2278_v54 }
 0x532   :  { %v2280_v45 = vadd.f32 %v11710_v9, %v2264_v29  ;;  %v2281_v44 = vadd.f32 %v11711_v39, %v2265_v28 }
 0x534   :  { %v2289_v5 = vpack.c.bf16 %v2281_v44, %v2280_v45 }
 0x537   :  { %6889 = vmatmul.mubr.bf16.gmra.mrb[88].mxu1 %v2287_v31  ;;  %6985 = vmatmul.mubr.bf16.gmra.mrb[152].mxu0 %v2287_v31 }
 0x538   :  { %6892 = vmatprep.mubr.bf16.mxu1 %v2288_v55  ;;  %6988 = vmatprep.mubr.bf16.mxu0 %v2288_v55 }
 0x53f   :  { %6893 = vmatmul.mubr.bf16.gmra.mrb[92].mxu1 %v2289_v5  ;;  %6989 = vmatmul.mubr.bf16.gmra.mrb[156].mxu0 %v2289_v5 }
 0x540   :  { %6912 = vmatprep.mubr.bf16.mxu1 %v8684_v49 }
 0x547   :  { %6913 = vmatmul.mubr.bf16.vlgmr.msra.gmra.mrb[96].mxu1 %v8698_v48 }
 0x548   :  { %6916 = vmatprep.mubr.bf16.mxu1 %v8712_v41 }
 0x54f   :  { %6917 = vmatmul.mubr.bf16.gmra.mrb[100].mxu1 %v8767_v63 }
 0x550   :  { %6920 = vmatprep.mubr.bf16.mxu1 %v8778_v33 }
 0x557   :  { %6921 = vmatmul.mubr.bf16.gmra.mrb[104].mxu1 %v8820_v37 }
 0x558   :  { %6924 = vmatprep.mubr.bf16.mxu1 %v8834_v58 }
 0x55f   :  { %6925 = vmatmul.mubr.bf16.gmra.mrb[108].mxu1 %v8862_v14 }
 0x560   :  { %6928 = vmatprep.mubr.bf16.mxu1 %v2282_v57 }
 0x567   :  { %6929 = vmatmul.mubr.bf16.gmra.mrb[112].mxu1 %v2283_v60 }
 0x568   :  { %6932 = vmatprep.mubr.bf16.mxu1 %v2284_v52  ;;  %v11712_v52 = vrot.slane %v9042_v42, 1 }
 0x56f   :  { %6933 = vmatmul.mubr.bf16.gmra.mrb[116].mxu1 %v2285_v11 }
 0x570   :  { %6936 = vmatprep.mubr.bf16.mxu1 %v2286_v36 }
 0x577   :  { %6937 = vmatmul.mubr.bf16.gmra.mrb[120].mxu1 %v2287_v31 }
 0x578   :  { %6940 = vmatprep.mubr.bf16.mxu1 %v2288_v55 }
 0x57f   :  { %6941 = vmatmul.mubr.bf16.gmra.mrb[124].mxu1 %v2289_v5 }
 0x5fa   :  { %v6882_v49 = vpop.f32.mrb[80].mxu1  ;;  %v6978_v48 = vpop.f32.mrb[144].mxu0 }
 0x5fb   :  { %v2492_v41 = vpop.f32.mrb[81].mxu1  ;;  %v3022_v63 = vpop.f32.mrb[145].mxu0  ;;  %v2573_v23 = vrot.slane %v6882_v49, 7  ;;  %v3103_v58 = vrot.slane %v6978_v48, 1 }
 0x5fc   :  { %v2571_v56 = vrot.slane %v2492_v41, 7  ;;  %v3101_v33 = vrot.slane %v3022_v63, 1  ;;  %v6883_v35 = vpop.f32.mrb[82].mxu1  ;;  %v6979_v37 = vpop.f32.mrb[146].mxu0 }
 0x5fd   :  { %v2574_v26 = vrot.slane %v6883_v35, 7  ;;  %v3104_v14 = vrot.slane %v6979_v37, 1  ;;  %v2495_v57 = vpop.f32.mrb[83].mxu1  ;;  %v3025_v60 = vpop.f32.mrb[147].mxu0 }
 0x5fe   :  { %v9176_v27 = vsel %vm1788_vm4, %v11712_v52, %v3101_v33  ;;  %v2572_v21 = vrot.slane %v2495_v57, 7  ;;  %v3102_v34 = vrot.slane %v3025_v60, 1  ;;  %v9182_v0 = vsel %vm1201_vm1, %v11713_v13, %v2571_v56 }
 0x5ff   :  { %v9186_v46 = vsel %vm1788_vm4, %v3103_v58, %v3104_v14  ;;  %v9190_v8 = vsel %vm1201_vm1, %v2573_v23, %v2574_v26 }
 0x600   :  { %v9194_v42 = vsel %vm1201_vm1, %v2572_v21, %v2573_v23  ;;  %v9198_v17 = vsel %vm1788_vm4, %v3101_v33, %v3102_v34  ;;  %v9202_v53 = vsel %vm1201_vm1, %v2571_v56, %v2572_v21  ;;  %v9206_v59 = vsel %vm1788_vm4, %v3102_v34, %v3103_v58 }
 0x602   :  { %v6886_v11 = vpop.f32.mrb[84].mxu1  ;;  %v6982_v38 = vpop.f32.mrb[148].mxu0 }
 0x603   :  { %v2508_v30 = vpop.f32.mrb[85].mxu1  ;;  %v3038_v15 = vpop.f32.mrb[149].mxu0  ;;  %v2577_v16 = vrot.slane %v6886_v11, 7  ;;  %v3107_v12 = vrot.slane %v6982_v38, 1 }
 0x604   :  { %v2575_v19 = vrot.slane %v2508_v30, 7  ;;  %v3105_v36 = vrot.slane %v3038_v15, 1  ;;  %v6887_v62 = vpop.f32.mrb[86].mxu1  ;;  %v6983_v22 = vpop.f32.mrb[150].mxu0 }
 0x605   :  { %v2578_v3 = vrot.slane %v6887_v62, 7  ;;  %v3108_v2 = vrot.slane %v6983_v22, 1  ;;  %v2511_v51 = vpop.f32.mrb[87].mxu1  ;;  %v3041_v10 = vpop.f32.mrb[151].mxu0 }
 0x606   :  { %v2576_v43 = vrot.slane %v2511_v51, 7  ;;  %v3106_v47 = vrot.slane %v3041_v10, 1  ;;  %v9210_v50 = vsel %vm1788_vm4, %v3104_v14, %v3105_v36  ;;  %v9214_v54 = vsel %vm1201_vm1, %v2574_v26, %v2575_v19 }
 0x607   :  { %v9218_v18 = vsel %vm1788_vm4, %v3107_v12, %v3108_v2  ;;  %v9222_v7 = vsel %vm1201_vm1, %v2577_v16, %v2578_v3 }
 0x608   :  { %v9226_v31 = vsel %vm1201_vm1, %v2576_v43, %v2577_v16  ;;  %v9230_v25 = vsel %vm1788_vm4, %v3105_v36, %v3106_v47  ;;  %v9234_v29 = vsel %vm1201_vm1, %v2575_v19, %v2576_v43  ;;  %v9238_v61 = vsel %vm1788_vm4, %v3106_v47, %v3107_v12 }
 0x60a   :  { %v6890_v28 = vpop.f32.mrb[88].mxu1  ;;  %v6986_v55 = vpop.f32.mrb[152].mxu0 }
 0x60b   :  { %v2524_v9 = vpop.f32.mrb[89].mxu1  ;;  %v3054_v45 = vpop.f32.mrb[153].mxu0  ;;  %v2581_v48 = vrot.slane %v6890_v28, 7  ;;  %v3111_v41 = vrot.slane %v6986_v55, 1  ;;  %v11714_v55 = vrot.slane %v8938_v40, 1 }
 0x60c   :  { %v2579_v39 = vrot.slane %v2524_v9, 7  ;;  %v3109_v44 = vrot.slane %v3054_v45, 1  ;;  %v6891_v5 = vpop.f32.mrb[90].mxu1  ;;  %v6987_v49 = vpop.f32.mrb[154].mxu0  ;;  %v11715_v45 = vld [vmem:[#allocation9_spill] sm:$0xff] }
 0x60d   :  { %v2582_v63 = vrot.slane %v6891_v5, 7  ;;  %v3112_v56 = vrot.slane %v6987_v49, 1  ;;  %v2527_v33 = vpop.f32.mrb[91].mxu1  ;;  %v3057_v35 = vpop.f32.mrb[155].mxu0 }
 0x60e   :  { %v2580_v37 = vrot.slane %v2527_v33, 7  ;;  %v3110_v23 = vrot.slane %v3057_v35, 1  ;;  %v9242_v58 = vsel %vm1788_vm4, %v3108_v2, %v3109_v44  ;;  %v9246_v26 = vsel %vm1201_vm1, %v2578_v3, %v2579_v39  ;;  %v11717_v33 = vld [vmem:[#allocation6_spill] sm:$0xff] }
 0x60f   :  { %v9250_v14 = vsel %vm1788_vm4, %v3111_v41, %v3112_v56  ;;  %v9254_v57 = vsel %vm1201_vm1, %v2581_v48, %v2582_v63 }
 0x610   :  { %v9258_v60 = vsel %vm1201_vm1, %v2580_v37, %v2581_v48  ;;  %v9262_v52 = vsel %vm1788_vm4, %v3109_v44, %v3110_v23  ;;  %v9266_v21 = vsel %vm1201_vm1, %v2579_v39, %v2580_v37  ;;  %v9270_v34 = vsel %vm1788_vm4, %v3110_v23, %v3111_v41  ;;  %v11718_v37 = vld [vmem:[#allocation12_spill] sm:$0xff] }
 0x611   :  { %v11716_v39 = vrot.slane %v11715_v45, 7 }
 0x612   :  { %v6894_v13 = vpop.f32.mrb[92].mxu1  ;;  %v6990_v11 = vpop.f32.mrb[156].mxu0 }
 0x613   :  { %v2540_v38 = vpop.f32.mrb[93].mxu1  ;;  %v3070_v30 = vpop.f32.mrb[157].mxu0  ;;  %v2585_v22 = vrot.slane %v6894_v13, 7  ;;  %v3115_v16 = vrot.slane %v6990_v11, 1 }
 0x614   :  { %v2583_v15 = vrot.slane %v2540_v38, 7  ;;  %v3113_v19 = vrot.slane %v3070_v30, 1  ;;  %v6895_v36 = vpop.f32.mrb[94].mxu1  ;;  %v6991_v62 = vpop.f32.mrb[158].mxu0  ;;  %v11719_v30 = vld [vmem:[#allocation10_spill] sm:$0xff] }
 0x615   :  { %v2586_v12 = vrot.slane %v6895_v36, 7  ;;  %v3116_v3 = vrot.slane %v6991_v62, 1  ;;  %v2543_v2 = vpop.f32.mrb[95].mxu1  ;;  %v3073_v51 = vpop.f32.mrb[159].mxu0 }
 0x616   :  { %v2584_v10 = vrot.slane %v2543_v2, 7  ;;  %v3114_v43 = vrot.slane %v3073_v51, 1  ;;  %v9274_v47 = vsel %vm1788_vm4, %v3112_v56, %v3113_v19  ;;  %v9278_v28 = vsel %vm1201_vm1, %v2582_v63, %v2583_v15  ;;  %v11723_v51 = vld [vmem:[#allocation16_spill] sm:$0xff] }
 0x617   :  { %v9284_v9 = vsel %vm1788_vm4, %v3116_v3, %v11714_v55  ;;  %v2618_v44 = vsel %vm1201_vm1, %v2586_v12, %v11716_v39  ;;  %v9292_v5 = vsel %vm1788_vm4, %v3115_v16, %v3116_v3  ;;  %v9296_v49 = vsel %vm1201_vm1, %v2585_v22, %v2586_v12  ;;  %v11721_v12 = vld [vmem:[#allocation13_spill] sm:$0xff]  ;;  %v11722_v3 = vld [vmem:[#allocation14_spill] sm:$0xff] }
 0x618   :  { %v9300_v40 = vsel %vm1201_vm1, %v2584_v10, %v2585_v22  ;;  %v9304_v48 = vsel %vm1788_vm4, %v3113_v19, %v3114_v43  ;;  %v9308_v41 = vsel %vm1201_vm1, %v2583_v15, %v2584_v10  ;;  %v9312_v63 = vsel %vm1788_vm4, %v3114_v43, %v3115_v16  ;;  %v11720_v19 = vld [vmem:[#allocation11_spill] sm:$0xff]  ;;  %v9323_v16 = vld [vmem:[%s11520_s6] ss:$0 sm:$0xff] }
 0x619   :  { %v2619_v35 = vmul.f32 %v11717_v33, %v2618_v44  ;;  %v11724_v43 = vld [vmem:[#allocation15_spill] sm:$0xff] }
 0x61a   :  { %v6914_v56 = vpop.f32.mrb[96].mxu1 }
 0x61b   :  { %v2742_v23 = vadd.f32 %v6914_v56, %v11718_v37  ;;  %v2733_v13 = vpop.f32.mrb[97].mxu1  ;;  %v11725_v56 = vld [vmem:[#allocation20_spill] sm:$0xff] }
 0x61c   :  { %v2734_v11 = vadd.f32 %v2733_v13, %v2619_v35  ;;  %v6915_v38 = vpop.f32.mrb[98].mxu1 }
 0x61d   :  { %v3183_v36 = vadd.f32 %v11719_v30, %v2742_v23  ;;  %v2745_v62 = vadd.f32 %v6915_v38, %v11720_v19  ;;  %v2736_v22 = vpop.f32.mrb[99].mxu1  ;;  %v11727_v19 = vld [vmem:[#allocation18_spill] sm:$0xff] }
 0x61e   :  { %v3181_v15 = vadd.f32 %v11721_v12, %v2734_v11  ;;  %v2737_v2 = vadd.f32 %v2736_v22, %v11722_v3  ;;  %v11726_v11 = vld [vmem:[#allocation17_spill] sm:$0xff]  ;;  %v11728_v22 = vld [vmem:[#allocation19_spill] sm:$0xff] }
 0x61f   :  { %v3184_v10 = vadd.f32 %v11723_v51, %v2745_v62  ;;  %v9335_v23 = vadd.f32 %v9323_v16, %v3183_v36  ;;  %v11729_v51 = vld [vmem:[#allocation21_spill] sm:$0xff] }
 0x620   :  { %v3182_v55 = vadd.f32 %v11724_v43, %v2737_v2  ;;  %v9328_v45 = vadd.f32 %v9323_v16, %v3181_v15 }
 0x621   :  { %v9343_v3 = vadd.f32 %v9323_v16, %v3184_v10 }
 0x622   :  { %v9331_v39 = vadd.f32 %v9323_v16, %v3182_v55  ;;  %v6918_v44 = vpop.f32.mrb[100].mxu1 }
 0x623   :  { %v2758_v35 = vadd.f32 %v6918_v44, %v11725_v56  ;;  %v2749_v37 = vpop.f32.mrb[101].mxu1 }
 0x624   :  { %v3284_v13 = vadd.f32 %v9331_v39, %v9328_v45  ;;  %v2750_v38 = vadd.f32 %v2749_v37, %v11726_v11  ;;  %v6919_v30 = vpop.f32.mrb[102].mxu1 }
 0x625   :  { %v3187_v62 = vadd.f32 %v11727_v19, %v2758_v35  ;;  %v2761_v12 = vadd.f32 %v6919_v30, %v11728_v22  ;;  %v2752_v15 = vpop.f32.mrb[103].mxu1  ;;  %v11730_v30 = vld [vmem:[#allocation22_spill] sm:$0xff] }
 0x626   :  { %v3285_v2 = vadd.f32 %v3284_v13, %v9335_v23  ;;  %v3185_v43 = vadd.f32 %v11729_v51, %v2750_v38  ;;  %v2753_v36 = vadd.f32 %v2752_v15, %v9002_v1 }
 0x627   :  { %v3188_v55 = vadd.f32 %v9010_v4, %v2761_v12  ;;  %v9360_v1 = vadd.f32 %v9323_v16, %v3187_v62  ;;  %v11731_v12 = vld [vmem:[#allocation23_spill] sm:$0xff] }
 0x628   :  { %v9350_v44 = vadd.f32 %v9323_v16, %v3185_v43  ;;  %v3286_v56 = vadd.f32 %v3285_v2, %v9343_v3  ;;  %v3186_v35 = vadd.f32 %v9006_v24, %v2753_v36  ;;  %v11732_v24 = vld [vmem:[#allocation24_spill] sm:$0xff] }
 0x629   :  { %v9367_v43 = vadd.f32 %v9323_v16, %v3188_v55 }
 0x62a   :  { %v3287_v37 = vadd.f32 %v3286_v56, %v9350_v44  ;;  %v9356_v10 = vadd.f32 %v9323_v16, %v3186_v35  ;;  %v6922_v11 = vpop.f32.mrb[104].mxu1  ;;  %v11734_v35 = vld [vmem:[#allocation26_spill] sm:$0xff] }
 0x62b   :  { %v2774_v13 = vadd.f32 %v6922_v11, %v9026_v32  ;;  %v2765_v38 = vpop.f32.mrb[105].mxu1  ;;  %v11733_v32 = vld [vmem:[#allocation25_spill] sm:$0xff] }
 0x62c   :  { %v3288_v4 = vadd.f32 %v3287_v37, %v9356_v10  ;;  %v2766_v19 = vadd.f32 %v2765_v38, %v11730_v30  ;;  %v6923_v22 = vpop.f32.mrb[106].mxu1 }
 0x62d   :  { %v3191_v15 = vadd.f32 %v11731_v12, %v2774_v13  ;;  %v2777_v2 = vadd.f32 %v6923_v22, %v11732_v24  ;;  %v2768_v51 = vpop.f32.mrb[107].mxu1  ;;  %v11736_v13 = vld [vmem:[#allocation27_spill] sm:$0xff] }
 0x62e   :  { %v3289_v36 = vadd.f32 %v3288_v4, %v9360_v1  ;;  %v3189_v56 = vadd.f32 %v11733_v32, %v2766_v19  ;;  %v2769_v62 = vadd.f32 %v2768_v51, %v11734_v35  ;;  %v11738_v4 = vld [vmem:[#allocation31_spill] sm:$0xff] }
 0x62f   :  { %v3192_v11 = vadd.f32 %v9048_v20, %v2777_v2  ;;  %v9384_v51 = vadd.f32 %v9323_v16, %v3191_v15  ;;  %v11739_v2 = vld [vmem:[#allocation28_spill] sm:$0xff] }
 0x630   :  { %v9374_v37 = vadd.f32 %v9323_v16, %v3189_v56  ;;  %v3290_v38 = vadd.f32 %v3289_v36, %v9367_v43  ;;  %v3190_v30 = vadd.f32 %v11736_v13, %v2769_v62  ;;  %v11740_v36 = vld [vmem:[#allocation29_spill] sm:$0xff]  ;;  %v11741_v62 = vld [vmem:[#allocation30_spill] sm:$0xff]  ;;  %v11743_v15 = vld [vmem:[#allocation32_spill] sm:$0xff] }
 0x631   :  { %v9393_v6 = vadd.f32 %v9323_v16, %v3192_v11 }
 0x632   :  { %11735 = vst [vmem:[#allocation9_spill] sm:$0xff] %v9374_v37  ;;  %v3291_v22 = vadd.f32 %v3290_v38, %v9374_v37  ;;  %v9380_v55 = vadd.f32 %v9323_v16, %v3190_v30  ;;  %v6926_v12 = vpop.f32.mrb[108].mxu1  ;;  %v11742_v38 = vld [vmem:[#allocation7_spill] sm:$0xff]  ;;  %v11744_v37 = vld [vmem:[#allocation33_spill] sm:$0xff] }
 0x633   :  { %v2790_v24 = vadd.f32 %v6926_v12, %v11738_v4  ;;  %v2781_v19 = vpop.f32.mrb[109].mxu1  ;;  %v3164_v30 = vmul.f32 %v11742_v38, %v9176_v27 }
 0x634   :  { %11737 = vst [vmem:[#allocation12_spill] sm:$0xff] %v9380_v55  ;;  %v3292_v20 = vadd.f32 %v3291_v22, %v9380_v55  ;;  %v2782_v32 = vadd.f32 %v2781_v19, %v11739_v2  ;;  %v6927_v56 = vpop.f32.mrb[110].mxu1  ;;  %v11745_v2 = vld [vmem:[#allocation34_spill] sm:$0xff] }
 0x635   :  { %v3195_v35 = vadd.f32 %v11740_v36, %v2790_v24  ;;  %v2793_v13 = vadd.f32 %v6927_v56, %v11741_v62  ;;  %v2784_v33 = vpop.f32.mrb[111].mxu1 }
 0x636   :  { %v3293_v12 = vadd.f32 %v3292_v20, %v9384_v51  ;;  %v3193_v4 = vadd.f32 %v11743_v15, %v2782_v32  ;;  %v2785_v22 = vadd.f32 %v2784_v33, %v11744_v37  ;;  %v11746_v20 = vld [vmem:[#allocation5_spill] sm:$0xff] }
 0x637   :  { %v3196_v55 = vadd.f32 %v3164_v30, %v2793_v13  ;;  %v2635_v62 = vmul.f32 %v11746_v20, %v9182_v0  ;;  %v9411_v37 = vadd.f32 %v9323_v16, %v3195_v35 }
 0x638   :  { %v9399_v19 = vadd.f32 %v9323_v16, %v3193_v4  ;;  %v3294_v24 = vadd.f32 %v3293_v12, %v9393_v6  ;;  %v3194_v56 = vadd.f32 %v11745_v2, %v2785_v22 }
 0x639   :  { %v9419_v0 = vadd.f32 %v9323_v16, %v3196_v55 }
 0x63a   :  { %v3295_v27 = vadd.f32 %v3294_v24, %v9399_v19  ;;  %v9405_v36 = vadd.f32 %v9323_v16, %v3194_v56  ;;  %v6930_v11 = vpop.f32.mrb[112].mxu1 }
 0x63b   :  { %v2806_v32 = vadd.f32 %v6930_v11, %v9194_v42  ;;  %v2797_v33 = vpop.f32.mrb[113].mxu1 }
 0x63c   :  { %v2798_v13 = vadd.f32 %v2797_v33, %v2635_v62  ;;  %v6931_v30 = vpop.f32.mrb[114].mxu1  ;;  %v3296_v12 = vadd.f32 %v3295_v27, %v9405_v36 }
 0x63d   :  { %v3199_v15 = vadd.f32 %v9186_v46, %v2806_v32  ;;  %v2809_v4 = vadd.f32 %v6931_v30, %v9190_v8  ;;  %v2800_v22 = vpop.f32.mrb[115].mxu1 }
 0x63e   :  { %v3197_v24 = vadd.f32 %v9198_v17, %v2798_v13  ;;  %v2801_v2 = vadd.f32 %v2800_v22, %v9202_v53  ;;  %v3297_v42 = vadd.f32 %v3296_v12, %v9411_v37 }
 0x63f   :  { %v3200_v35 = vadd.f32 %v9210_v50, %v2809_v4  ;;  %v9433_v11 = vadd.f32 %v9323_v16, %v3199_v15 }
 0x640   :  { %v3198_v56 = vadd.f32 %v9206_v59, %v2801_v2  ;;  %v3298_v27 = vadd.f32 %v3297_v42, %v9419_v0  ;;  %v9426_v46 = vadd.f32 %v9323_v16, %v3197_v24 }
 0x641   :  { %v9441_v30 = vadd.f32 %v9323_v16, %v3200_v35 }
 0x642   :  { %v9429_v8 = vadd.f32 %v9323_v16, %v3198_v56  ;;  %v6934_v17 = vpop.f32.mrb[116].mxu1  ;;  %3299 = vadd.xlane.f32.xlu0 %v3298_v27 }
 0x643   :  { %v2822_v53 = vadd.f32 %v6934_v17, %v9226_v31  ;;  %v2813_v55 = vpop.f32.mrb[117].mxu1 }
 0x644   :  { %v3471_v50 = vadd.f32 %v9429_v8, %v9426_v46  ;;  %v2814_v59 = vadd.f32 %v2813_v55, %v9214_v54  ;;  %v6935_v62 = vpop.f32.mrb[118].mxu1 }
 0x645   :  { %v3203_v32 = vadd.f32 %v9218_v18, %v2822_v53  ;;  %v2825_v33 = vadd.f32 %v6935_v62, %v9222_v7  ;;  %v2816_v13 = vpop.f32.mrb[119].mxu1 }
 0x646   :  { %v3472_v31 = vadd.f32 %v3471_v50, %v9433_v11  ;;  %v3201_v12 = vadd.f32 %v9230_v25, %v2814_v59  ;;  %v2817_v15 = vadd.f32 %v2816_v13, %v9234_v29 }
 0x647   :  { %v3204_v4 = vadd.f32 %v9242_v58, %v2825_v33  ;;  %v9458_v29 = vadd.f32 %v9323_v16, %v3203_v32 }
 0x648   :  { %v9448_v22 = vadd.f32 %v9323_v16, %v3201_v12  ;;  %v3473_v54 = vadd.f32 %v3472_v31, %v9441_v30  ;;  %v3202_v18 = vadd.f32 %v9238_v61, %v2817_v15 }
 0x649   :  { %v9465_v53 = vadd.f32 %v9323_v16, %v3204_v4  ;;  %v11747_v4 = vld [vmem:[#allocation8_spill] sm:$0xff] }
 0x64a   :  { %v3474_v7 = vadd.f32 %v3473_v54, %v9448_v22  ;;  %v9454_v24 = vadd.f32 %v9323_v16, %v3202_v18  ;;  %v6938_v2 = vpop.f32.mrb[120].mxu1  ;;  %v3180_v54 = vmul.f32 %v11747_v4, %v9284_v9 }
 0x64b   :  { %v2838_v42 = vadd.f32 %v6938_v2, %v9258_v60  ;;  %v2829_v25 = vpop.f32.mrb[121].mxu1 }
 0x64c   :  { %v3475_v58 = vadd.f32 %v3474_v7, %v9454_v24  ;;  %v2830_v35 = vadd.f32 %v2829_v25, %v9246_v26  ;;  %v6939_v56 = vpop.f32.mrb[122].mxu1 }
 0x64d   :  { %v3207_v27 = vadd.f32 %v9250_v14, %v2838_v42  ;;  %v2841_v61 = vadd.f32 %v6939_v56, %v9254_v57  ;;  %v2832_v17 = vpop.f32.mrb[123].mxu1 }
 0x64e   :  { %v3476_v55 = vadd.f32 %v3475_v58, %v9458_v29  ;;  %v3205_v60 = vadd.f32 %v9262_v52, %v2830_v35  ;;  %v2833_v50 = vadd.f32 %v2832_v17, %v9266_v21 }
 0x64f   :  { %v3208_v59 = vadd.f32 %v9274_v47, %v2841_v61  ;;  %v9482_v21 = vadd.f32 %v9323_v16, %v3207_v27 }
 0x650   :  { %v9472_v62 = vadd.f32 %v9323_v16, %v3205_v60  ;;  %v3477_v26 = vadd.f32 %v3476_v55, %v9465_v53  ;;  %v3206_v14 = vadd.f32 %v9270_v34, %v2833_v50 }
 0x651   :  { %v9491_v7 = vadd.f32 %v9323_v16, %v3208_v59 }
 0x652   :  { %v3478_v57 = vadd.f32 %v3477_v26, %v9472_v62  ;;  %v9478_v32 = vadd.f32 %v9323_v16, %v3206_v14  ;;  %v6942_v33 = vpop.f32.mrb[124].mxu1 }
 0x653   :  { %v2854_v13 = vadd.f32 %v6942_v33, %v9300_v40  ;;  %v2845_v52 = vpop.f32.mrb[125].mxu1 }
 0x654   :  { %v3479_v47 = vadd.f32 %v3478_v57, %v9478_v32  ;;  %v2846_v31 = vadd.f32 %v2845_v52, %v9278_v28  ;;  %v6943_v12 = vpop.f32.mrb[126].mxu1 }
 0x655   :  { %v3211_v15 = vadd.f32 %v9292_v5, %v2854_v13  ;;  %v2857_v34 = vadd.f32 %v6943_v12, %v9296_v49  ;;  %v2848_v18 = vpop.f32.mrb[127].mxu1 }
 0x656   :  { %v3480_v40 = vadd.f32 %v3479_v47, %v9482_v21  ;;  %v3209_v2 = vadd.f32 %v9304_v48, %v2846_v31  ;;  %v2849_v42 = vadd.f32 %v2848_v18, %v9308_v41 }
 0x657   :  { %v3212_v25 = vadd.f32 %v3180_v54, %v2857_v34  ;;  %v9506_v35 = vadd.f32 %v9323_v16, %v3211_v15 }
 0x658   :  { %v9497_v28 = vadd.f32 %v9323_v16, %v3209_v2  ;;  %v3481_v5 = vadd.f32 %v3480_v40, %v9491_v7  ;;  %v3210_v49 = vadd.f32 %v9312_v63, %v2849_v42 }
 0x659   :  { %v9510_v41 = vadd.f32 %v9323_v16, %v3212_v25 }
 0x65a   :  { %v3482_v9 = vadd.f32 %v3481_v5, %v9497_v28  ;;  %v9503_v58 = vadd.f32 %v9323_v16, %v3210_v49 }
 0x65c   :  { %v3483_v48 = vadd.f32 %v3482_v9, %v9503_v58 }
 0x65e   :  { %v3484_v56 = vadd.f32 %v3483_v48, %v9506_v35 }
 0x660   :  { %v3485_v27 = vadd.f32 %v3484_v56, %v9510_v41 }
 0x662   :  { %3486 = vadd.xlane.f32.xlu0 %v3485_v27 }
 0x6cf   :  { %v3300_v61 = vpop.xlane.xlu0 %3299 }
 0x6d0   :  { %v3301_v63 = vrot.slane %v3300_v61, 4 }
 0x6d2   :  { %v3302_v17 = vadd.f32 %v3301_v63, %v3300_v61 }
 0x6d4   :  { %v3303_v55 = vrot.slane %v3302_v17, 2 }
 0x6d6   :  { %v3304_v60 = vadd.f32 %v3303_v55, %v3302_v17 }
 0x6d8   :  { %v3305_v50 = vrot.slane %v3304_v60, 1 }
 0x6da   :  { %v3306_v59 = vadd.f32 %v3305_v50, %v3304_v60 }
 0x6dc   :  { %7340 = vpush %v3306_v59 }
 0x70d   :  { %s7341_s6 = spop %7340 }
 0x70e   :  { %s9514_s23 = smul.f32 0.00012207031, %s7341_s6 }
 0x710   :  { %v3309_v26 = vstv %s9514_s23  ;;  %s3366_s21 = smul.f32 8192.0, %s9514_s23 }
 0x711   :  { %v9518_v16 = vsub.f32 %v9328_v45, %v3309_v26  ;;  %v9521_v14 = vsub.f32 %v9331_v39, %v3309_v26  ;;  %v9524_v57 = vsub.f32 %v9335_v23, %v3309_v26  ;;  %v9531_v52 = vsub.f32 %v9343_v3, %v3309_v26 }
 0x712   :  { %v9534_v47 = vsub.f32 %v9350_v44, %v3309_v26  ;;  %v9539_v31 = vsub.f32 %v9356_v10, %v3309_v26  ;;  %v9544_v15 = vsub.f32 %v9360_v1, %v3309_v26  ;;  %v9549_v44 = vsub.f32 %v9367_v43, %v3309_v26  ;;  %v11748_v10 = vld [vmem:[#allocation9_spill] sm:$0xff]  ;;  %v11749_v1 = vld [vmem:[#allocation12_spill] sm:$0xff]  ;;  %s3367_s4 = smul.f32 %s3366_s21, %s9514_s23 }
 0x713   :  { %v3326_v33 = vmul.f32 %v9518_v16, %v9518_v16  ;;  %v3327_v13 = vmul.f32 %v9521_v14, %v9521_v14  ;;  %v3328_v45 = vmul.f32 %v9524_v57, %v9524_v57  ;;  %v3329_v23 = vmul.f32 %v9531_v52, %v9531_v52 }
 0x714   :  { %v3330_v3 = vmul.f32 %v9534_v47, %v9534_v47  ;;  %v3331_v54 = vmul.f32 %v9539_v31, %v9539_v31  ;;  %v9554_v40 = vsub.f32 %v11748_v10, %v3309_v26  ;;  %v3332_v2 = vmul.f32 %v9544_v15, %v9544_v15  ;;  %v7480_v10 = vld [vmem:[%s11521_s9 + $0x18] sm:$0xff]  }
 0x715   :  { %v3342_v39 = vadd.f32 %v3327_v13, %v3326_v33  ;;  %v9559_v25 = vsub.f32 %v11749_v1, %v3309_v26  ;;  %v3333_v5 = vmul.f32 %v9549_v44, %v9549_v44  ;;  %v9564_v43 = vsub.f32 %v9384_v51, %v3309_v26  ;;  %v7483_v1 = vld [vmem:[%s11521_s9 + $0x60] sm:$0xff]  }
 0x716   :  { %v3334_v9 = vmul.f32 %v9554_v40, %v9554_v40  ;;  %v9569_v56 = vsub.f32 %v9393_v6, %v3309_v26  ;;  %v9574_v63 = vsub.f32 %v9399_v19, %v3309_v26  ;;  %v9579_v51 = vsub.f32 %v9405_v36, %v3309_v26 }
 0x717   :  { %v3343_v12 = vadd.f32 %v3342_v39, %v3328_v45  ;;  %v3335_v27 = vmul.f32 %v9559_v25, %v9559_v25  ;;  %v3336_v17 = vmul.f32 %v9564_v43, %v9564_v43  ;;  %v9584_v6 = vsub.f32 %v9411_v37, %v3309_v26 }
 0x718   :  { %v3337_v60 = vmul.f32 %v9569_v56, %v9569_v56  ;;  %v3338_v59 = vmul.f32 %v9574_v63, %v9574_v63  ;;  %v9589_v19 = vsub.f32 %v9419_v0, %v3309_v26  ;;  %v3339_v13 = vmul.f32 %v9579_v51, %v9579_v51  ;;  %v7475_v0 = vld [vmem:[%s11521_s9 + $0x40] sm:$0xff]   ;;  %v7476_v26 = vld [vmem:[%s11521_s9 + $0x8] sm:$0xff]  }
 0x719   :  { %v3344_v34 = vadd.f32 %v3343_v12, %v3329_v23  ;;  %v3340_v36 = vmul.f32 %v9584_v6, %v9584_v6  ;;  %7040 = vmatprep.subr.bf16.mxu0 %v7475_v0 }
 0x71a   :  { %v3341_v23 = vmul.f32 %v9589_v19, %v9589_v19  ;;  %7041 = vmatpush3.bf16.msra.mxu0 %v7475_v0 }
 0x71b   :  { %v3345_v18 = vadd.f32 %v3344_v34, %v3330_v3  ;;  %v7474_v3 = vld [vmem:[%s11521_s9] sm:$0xff]   ;;  %v7477_v34 = vld [vmem:[%s11521_s9 + $0x48] sm:$0xff]  }
 0x71c   :  { %6992 = vmatprep.subr.bf16.mxu1 %v7474_v3  ;;  %7042 = vmatprep.subr.bf16.mxu0 %v7477_v34 }
 0x71d   :  { %v3346_v42 = vadd.f32 %v3345_v18, %v3331_v54  ;;  %6993 = vmatpush3.bf16.msra.mxu1 %v7474_v3  ;;  %v7478_v54 = vld [vmem:[%s11521_s9 + $0x10] sm:$0xff]  }
 0x71e   :  { %6994 = vmatprep.subr.bf16.mxu1 %v7476_v26  ;;  %v7479_v18 = vld [vmem:[%s11521_s9 + $0x50] sm:$0xff]   ;;  %7043 = vmatpush3.bf16.msra.mxu0 %v7477_v34  ;;  %v9650_v34 = vld [vmem:[%s11522_s7] sm:$0xff]  }
 0x71f   :  { %v3347_v49 = vadd.f32 %v3346_v42, %v3332_v2  ;;  %7044 = vmatprep.subr.bf16.mxu0 %v7479_v18  ;;  %v7481_v2 = vld [vmem:[%s11521_s9 + $0x58] sm:$0xff]   ;;  %v7482_v42 = vld [vmem:[%s11521_s9 + $0x20] sm:$0xff]  }
 0x721   :  { %v3348_v48 = vadd.f32 %v3347_v49, %v3333_v5  ;;  %6995 = vmatpush3.bf16.msra.mxu1 %v7476_v26  ;;  %v7484_v5 = vld [vmem:[%s11521_s9 + $0x28] sm:$0xff]  }
 0x722   :  { %6996 = vmatprep.subr.bf16.mxu1 %v7478_v54  ;;  %7045 = vmatpush3.bf16.msra.mxu0 %v7479_v18  ;;  %v7485_v49 = vld [vmem:[%s11521_s9 + $0x68] sm:$0xff]  }
 0x723   :  { %v3349_v61 = vadd.f32 %v3348_v48, %v3334_v9  ;;  %7046 = vmatprep.subr.bf16.mxu0 %v7481_v2  ;;  %v9660_v18 = vld [vmem:[%s11522_s7 + $0x8] sm:$0xff]  }
 0x725   :  { %v3350_v55 = vadd.f32 %v3349_v61, %v3335_v27  ;;  %6997 = vmatpush3.bf16.msra.mxu1 %v7478_v54  ;;  %v9655_v54 = vld [vmem:[%s11523_s8] sm:$0xff]  }
 0x726   :  { %6998 = vmatprep.subr.bf16.mxu1 %v7480_v10  ;;  %7047 = vmatpush3.bf16.msra.mxu0 %v7481_v2  ;;  %v9670_v2 = vld [vmem:[%s11522_s7 + $0x10] sm:$0xff]  }
 0x727   :  { %v3351_v50 = vadd.f32 %v3350_v55, %v3336_v17  ;;  %7048 = vmatprep.subr.bf16.mxu0 %v7483_v1  ;;  %v7486_v17 = vld [vmem:[%s11521_s9 + $0x30] sm:$0xff]  }
 0x728   :  { %v7487_v55 = vld [vmem:[%s11521_s9 + $0x70] sm:$0xff]  }
 0x729   :  { %v3352_v33 = vadd.f32 %v3351_v50, %v3337_v60  ;;  %6999 = vmatpush3.bf16.msra.mxu1 %v7480_v10  ;;  %v7488_v60 = vld [vmem:[%s11521_s9 + $0x38] sm:$0xff]   ;;  %v9665_v10 = vld [vmem:[%s11523_s8 + $0x8] sm:$0xff]  }
 0x72a   :  { %7000 = vmatprep.subr.bf16.mxu1 %v7482_v42  ;;  %7049 = vmatpush3.bf16.msra.mxu0 %v7483_v1  ;;  %v11579_v1 = vunpack.c.h.bf16 %v9650_v34 }
 0x72b   :  { %v3353_v45 = vadd.f32 %v3352_v33, %v3338_v59  ;;  %7050 = vmatprep.subr.bf16.mxu0 %v7485_v49  ;;  %v7489_v59 = vld [vmem:[%s11521_s9 + $0x78] sm:$0xff]  }
 0x72d   :  { %v3354_v39 = vadd.f32 %v3353_v45, %v3339_v13  ;;  %7001 = vmatpush3.bf16.msra.mxu1 %v7482_v42  ;;  %v3487_v45 = vpop.xlane.xlu0 %3486  ;;  %v11608_v42 = vunpack.c.l.bf16 %v9650_v34 }
 0x72e   :  { %7002 = vmatprep.subr.bf16.mxu1 %v7484_v5  ;;  %7051 = vmatpush3.bf16.msra.mxu0 %v7485_v49  ;;  %v9682_v49 = vld [vmem:[%s11522_s7 + $0x18] sm:$0xff]  }
 0x72f   :  { %v3355_v37 = vadd.f32 %v3354_v39, %v3340_v36  ;;  %7052 = vmatprep.subr.bf16.mxu0 %v7487_v55  ;;  %v3488_v36 = vrot.slane %v3487_v45, 4 }
 0x731   :  { %v3356_v12 = vadd.f32 %v3355_v37, %v3341_v23  ;;  %7003 = vmatpush3.bf16.msra.mxu1 %v7484_v5  ;;  %v3489_v39 = vadd.f32 %v3488_v36, %v3487_v45  ;;  %v9677_v5 = vld [vmem:[%s11523_s8 + $0x10] sm:$0xff]   ;;  %v11585_v45 = vunpack.c.l.bf16 %v9682_v49 }
 0x732   :  { %7004 = vmatprep.subr.bf16.mxu1 %v7486_v17  ;;  %7053 = vmatpush3.bf16.msra.mxu0 %v7487_v55  ;;  %v11590_v55 = vunpack.c.h.bf16 %v9665_v10 }
 0x733   :  { %3357 = vadd.xlane.f32.xlu1 %v3356_v12  ;;  %7054 = vmatprep.subr.bf16.mxu0 %v7489_v59  ;;  %v3490_v23 = vrot.slane %v3489_v39, 2 }
 0x735   :  { %7005 = vmatpush3.bf16.msra.mxu1 %v7486_v17  ;;  %v3491_v12 = vadd.f32 %v3490_v23, %v3489_v39  ;;  %v11581_v17 = vunpack.c.l.bf16 %v9665_v10 }
 0x736   :  { %7006 = vmatprep.subr.bf16.mxu1 %v7488_v60  ;;  %7055 = vmatpush3.bf16.msra.mxu0 %v7489_v59  ;;  %v9695_v59 = vld [vmem:[%s11522_s7 + $0x20] sm:$0xff]  }
 0x737   :  { %v3492_v3 = vrot.slane %v3491_v12, 1  ;;  %v11584_v36 = vunpack.c.l.bf16 %v9695_v59 }
 0x739   :  { %7007 = vmatpush3.bf16.msra.mxu1 %v7488_v60  ;;  %v3493_v26 = vadd.f32 %v3492_v3, %v3491_v12  ;;  %v11606_v60 = vunpack.c.l.bf16 %v9670_v2  ;;  %v11586_v3 = vunpack.c.h.bf16 %v9677_v5 }
 0x7c0   :  { %v3358_v9 = vpop.xlane.xlu1 %3357 }
 0x7c1   :  { %v3359_v48 = vrot.slane %v3358_v9, 4 }
 0x7c3   :  { %v3360_v27 = vadd.f32 %v3359_v48, %v3358_v9  ;;  %v11582_v9 = vunpack.c.l.bf16 %v9655_v54  ;;  %v11580_v48 = vunpack.c.h.bf16 %v9655_v54 }
 0x7c5   :  { %v3361_v61 = vrot.slane %v3360_v27, 2 }
 0x7c7   :  { %v3362_v50 = vadd.f32 %v3361_v61, %v3360_v27  ;;  %v11578_v27 = vunpack.c.l.bf16 %v9660_v18  ;;  %v11607_v61 = vunpack.c.h.bf16 %v9660_v18 }
 0x7c9   :  { %v3363_v33 = vrot.slane %v3362_v50, 1 }
 0x7cb   :  { %v3364_v13 = vadd.f32 %v3363_v33, %v3362_v50  ;;  %v11593_v50 = vunpack.c.h.bf16 %v9670_v2 }
 0x7cd   :  { %7342 = vpush %v3364_v13  ;;  %v11587_v13 = vunpack.c.l.bf16 %v9677_v5 }
 0x7fe   :  { %s7343_s22 = spop %7342 }
 0x7ff   :  { %s3368_s24 = ssub.f32 %s7343_s22, %s3367_s4 }
 0x801   :  { %s3369_s30 = smul.f32 0.00012207031, %s3368_s24 }
 0x803   :  { %s3370_s28 = sadd.f32 1e-06, %s3369_s30 }
 0x805   :  { %v3371_v37 = vstv %s3370_s28 }
 0x806   :  { %7534 = vrsqrt.f32 %v3371_v37 }
 0x810   :  { %v7535_v0 = vpop.eup %7534 }
 0x811   :  { %7344 = vpush %v7535_v0 }
 0x812   :  { %7346 = vpush %v3493_v26 }
 0x842   :  { %s7345_s3 = spop %7344 }
 0x843   :  { %v9697_v33 = vstv %s7345_s3  ;;  %s7347_s30 = spop %7346 }
 0x844   :  { %v3375_v39 = vmul.f32 %v9697_v33, %v9518_v16  ;;  %v3376_v23 = vmul.f32 %v9697_v33, %v9521_v14  ;;  %v3377_v37 = vmul.f32 %v9697_v33, %v9524_v57  ;;  %v3378_v12 = vmul.f32 %v9697_v33, %v9531_v52  ;;  %v9725_v52 = vld [vmem:[%s11523_s8 + $0x18] sm:$0xff]   ;;  %s9768_s26 = smul.f32 0.00012207031, %s7347_s30 }
 0x845   :  { %v3379_v0 = vmul.f32 %v9697_v33, %v9534_v47  ;;  %v3380_v26 = vmul.f32 %v9697_v33, %v9539_v31  ;;  %v3381_v47 = vmul.f32 %v9697_v33, %v9544_v15 }
 0x846   :  { %v3407_v16 = vmul.f32 %v11608_v42, %v3375_v39  ;;  %v3408_v14 = vmul.f32 %v11579_v1, %v3376_v23  ;;  %v3409_v57 = vmul.f32 %v11578_v27, %v3377_v37  ;;  %v3410_v31 = vmul.f32 %v11607_v61, %v3378_v12 }
 0x847   :  { %v3411_v39 = vmul.f32 %v11606_v60, %v3379_v0  ;;  %v3412_v23 = vmul.f32 %v11593_v50, %v3380_v26  ;;  %v3382_v37 = vmul.f32 %v9697_v33, %v9549_v44  ;;  %v11583_v12 = vunpack.c.h.bf16 %v9695_v59  ;;  %v9747_v0 = vld [vmem:[%s11523_s8 + $0x20] sm:$0xff]  }
 0x848   :  { %v3439_v27 = vadd.f32 %v11582_v9, %v3407_v16  ;;  %v3440_v1 = vadd.f32 %v11580_v48, %v3408_v14  ;;  %v3441_v15 = vadd.f32 %v11581_v17, %v3409_v57  ;;  %v3442_v44 = vadd.f32 %v11590_v55, %v3410_v31  ;;  %v9766_v31 = vld [vmem:[%s11522_s7 + $0x28] sm:$0xff]  }
 0x849   :  { %v3443_v26 = vadd.f32 %v11587_v13, %v3411_v39  ;;  %v3444_v16 = vadd.f32 %v11586_v3, %v3412_v23  ;;  %v11589_v14 = vunpack.c.l.bf16 %v9725_v52  ;;  %v11588_v57 = vunpack.c.h.bf16 %v9725_v52  ;;  %v9812_v3 = vld [vmem:[%s11523_s8 + $0x28] sm:$0xff]  }
 0x84a   :  { %v9756_v48 = vpack.c.bf16 %v3440_v1, %v3439_v27  ;;  %v3383_v17 = vmul.f32 %v9697_v33, %v9554_v40  ;;  %v3384_v9 = vmul.f32 %v9697_v33, %v9559_v25  ;;  %v9770_v39 = vpack.c.bf16 %v3442_v44, %v3441_v15  ;;  %v9780_v25 = vld [vmem:[%s11522_s7 + $0x30] sm:$0xff]  }
 0x84b   :  { %v3413_v1 = vmul.f32 %v11585_v45, %v3381_v47  ;;  %v11750_v27 = vunpack.c.h.bf16 %v9682_v49  ;;  %v11592_v40 = vunpack.c.l.bf16 %v9747_v0  ;;  %v9784_v15 = vpack.c.bf16 %v3444_v16, %v3443_v26 }
 0x84c   :  { %7008 = vmatprep.mubr.bf16.mxu1 %v9756_v48  ;;  %7056 = vmatprep.mubr.bf16.mxu0 %v9756_v48  ;;  %v11591_v44 = vunpack.c.h.bf16 %v9747_v0  ;;  %v3415_v47 = vmul.f32 %v11584_v36, %v3383_v17  ;;  %v11594_v26 = vunpack.c.h.bf16 %v9766_v31  ;;  %v3385_v16 = vmul.f32 %v9697_v33, %v9564_v43 }
 0x84d   :  { %v3414_v23 = vmul.f32 %v11750_v27, %v3382_v37  ;;  %v3416_v37 = vmul.f32 %v11583_v12, %v3384_v9  ;;  %7009 = vmatmul.mubr.bf16.vlgmr.msra.gmra.mrb[128].mxu1 %v9770_v39  ;;  %7057 = vmatmul.mubr.bf16.vlgmr.msra.gmra.mrb[160].mxu0 %v9770_v39  ;;  %v11599_v27 = vunpack.c.l.bf16 %v9766_v31  ;;  %v3386_v17 = vmul.f32 %v9697_v33, %v9569_v56 }
 0x84e   :  { %7012 = vmatprep.mubr.bf16.mxu1 %v9784_v15  ;;  %7060 = vmatprep.mubr.bf16.mxu0 %v9784_v15  ;;  %v11598_v9 = vunpack.c.l.bf16 %v9780_v25  ;;  %v9803_v12 = vstv %s9768_s26  ;;  %v3445_v36 = vadd.f32 %v11589_v14, %v3413_v1  ;;  %v11595_v43 = vunpack.c.h.bf16 %v9780_v25  ;;  %v9822_v1 = vld [vmem:[%s11523_s8 + $0x30] sm:$0xff]  }
 0x84f   :  { %v3446_v45 = vadd.f32 %v11588_v57, %v3414_v23  ;;  %v3447_v56 = vadd.f32 %v11592_v40, %v3415_v47  ;;  %v3448_v13 = vadd.f32 %v11591_v44, %v3416_v37  ;;  %v3387_v23 = vmul.f32 %v9697_v33, %v9574_v63  ;;  %v9837_v44 = vld [vmem:[%s11522_s7 + $0x38] sm:$0xff]  }
 0x850   :  { %v3388_v57 = vmul.f32 %v9697_v33, %v9579_v51  ;;  %v11597_v14 = vunpack.c.l.bf16 %v9812_v3  ;;  %v11596_v55 = vunpack.c.h.bf16 %v9812_v3  ;;  %v3417_v47 = vmul.f32 %v11599_v27, %v3385_v16 }
 0x851   :  { %v3418_v37 = vmul.f32 %v11594_v26, %v3386_v17  ;;  %v9839_v40 = vpack.c.bf16 %v3446_v45, %v3445_v36  ;;  %v11605_v63 = vunpack.c.l.bf16 %v9822_v1  ;;  %v9844_v51 = vsub.f32 %v9426_v46, %v9803_v12 }
 0x852   :  { %v9848_v50 = vsub.f32 %v9429_v8, %v9803_v12  ;;  %v9850_v16 = vpack.c.bf16 %v3448_v13, %v3447_v56  ;;  %v11604_v17 = vunpack.c.h.bf16 %v9822_v1  ;;  %v3419_v26 = vmul.f32 %v11598_v9, %v3387_v23  ;;  %v9872_v56 = vld [vmem:[%s11523_s8 + $0x38] sm:$0xff]  }
 0x853   :  { %v3420_v45 = vmul.f32 %v11595_v43, %v3388_v57  ;;  %v11603_v46 = vunpack.c.l.bf16 %v9837_v44  ;;  %v3449_v8 = vadd.f32 %v11597_v14, %v3417_v47  ;;  %v3450_v13 = vadd.f32 %v11596_v55, %v3418_v37 }
 0x854   :  { %v11602_v36 = vunpack.c.h.bf16 %v9837_v44  ;;  %v3389_v57 = vmul.f32 %v9697_v33, %v9584_v6  ;;  %v3390_v23 = vmul.f32 %v9697_v33, %v9589_v19  ;;  %v9878_v43 = vsub.f32 %v9433_v11, %v9803_v12 }
 0x855   :  { %7013 = vmatmul.mubr.bf16.gmra.mrb[132].mxu1 %v9839_v40  ;;  %7061 = vmatmul.mubr.bf16.gmra.mrb[164].mxu0 %v9839_v40  ;;  %v3513_v47 = vmul.f32 %v9844_v51, %v9844_v51  ;;  %v3514_v37 = vmul.f32 %v9848_v50, %v9848_v50  ;;  %v3451_v6 = vadd.f32 %v11605_v63, %v3419_v26  ;;  %v11601_v11 = vunpack.c.l.bf16 %v9872_v56 }
 0x856   :  { %7016 = vmatprep.mubr.bf16.mxu1 %v9850_v16  ;;  %7064 = vmatprep.mubr.bf16.mxu0 %v9850_v16  ;;  %v3452_v55 = vadd.f32 %v11604_v17, %v3420_v45  ;;  %v9890_v14 = vsub.f32 %v9441_v30, %v9803_v12  ;;  %v9892_v19 = vpack.c.bf16 %v3450_v13, %v3449_v8  ;;  %v11600_v33 = vunpack.c.h.bf16 %v9872_v56 }
 0x857   :  { %v3421_v9 = vmul.f32 %v11603_v46, %v3389_v57  ;;  %v3422_v27 = vmul.f32 %v11602_v36, %v3390_v23  ;;  %v9902_v26 = vsub.f32 %v9448_v22, %v9803_v12  ;;  %v3515_v30 = vmul.f32 %v9878_v43, %v9878_v43 }
 0x858   :  { %v3529_v45 = vadd.f32 %v3514_v37, %v3513_v47  ;;  %v9906_v8 = vpack.c.bf16 %v3452_v55, %v3451_v6  ;;  %v9912_v13 = vsub.f32 %v9454_v24, %v9803_v12  ;;  %v3516_v57 = vmul.f32 %v9890_v14, %v9890_v14 }
 0x859   :  { %v3453_v22 = vadd.f32 %v11601_v11, %v3421_v9  ;;  %v3454_v55 = vadd.f32 %v11600_v33, %v3422_v27  ;;  %v9924_v47 = vsub.f32 %v9458_v29, %v9803_v12  ;;  %v3517_v24 = vmul.f32 %v9902_v26, %v9902_v26 }
 0x85a   :  { %v3530_v23 = vadd.f32 %v3529_v45, %v3515_v30  ;;  %v9930_v6 = vsub.f32 %v9465_v53, %v9803_v12  ;;  %v3518_v30 = vmul.f32 %v9912_v13, %v9912_v13  ;;  %v9938_v27 = vsub.f32 %v9472_v62, %v9803_v12 }
 0x85b   :  { %v9934_v9 = vpack.c.bf16 %v3454_v55, %v3453_v22  ;;  %v3519_v29 = vmul.f32 %v9924_v47, %v9924_v47  ;;  %v9946_v53 = vsub.f32 %v9478_v32, %v9803_v12  ;;  %v9952_v62 = vsub.f32 %v9482_v21, %v9803_v12 }
 0x85c   :  { %v3531_v37 = vadd.f32 %v3530_v23, %v3516_v57  ;;  %v3520_v57 = vmul.f32 %v9930_v6, %v9930_v6  ;;  %v3521_v22 = vmul.f32 %v9938_v27, %v9938_v27 }
 0x85d   :  { %7017 = vmatmul.mubr.bf16.gmra.mrb[136].mxu1 %v9892_v19  ;;  %7065 = vmatmul.mubr.bf16.gmra.mrb[168].mxu0 %v9892_v19  ;;  %v3522_v32 = vmul.f32 %v9946_v53, %v9946_v53  ;;  %v3523_v21 = vmul.f32 %v9952_v62, %v9952_v62 }
 0x85e   :  { %7020 = vmatprep.mubr.bf16.mxu1 %v9906_v8  ;;  %7068 = vmatprep.mubr.bf16.mxu0 %v9906_v8  ;;  %v3532_v45 = vadd.f32 %v3531_v37, %v3517_v24  ;;  %v9958_v24 = vsub.f32 %v9491_v7, %v9803_v12 }
 0x860   :  { %v3533_v33 = vadd.f32 %v3532_v45, %v3518_v30  ;;  %v9964_v30 = vsub.f32 %v9497_v28, %v9803_v12  ;;  %v9970_v45 = vsub.f32 %v9503_v58, %v9803_v12  ;;  %v3524_v7 = vmul.f32 %v9958_v24, %v9958_v24 }
 0x862   :  { %v3534_v23 = vadd.f32 %v3533_v33, %v3519_v29  ;;  %v3525_v28 = vmul.f32 %v9964_v30, %v9964_v30  ;;  %v3526_v58 = vmul.f32 %v9970_v45, %v9970_v45 }
 0x864   :  { %v3535_v55 = vadd.f32 %v3534_v23, %v3520_v57  ;;  %v9976_v57 = vsub.f32 %v9506_v35, %v9803_v12 }
 0x865   :  { %7021 = vmatmul.mubr.bf16.gmra.mrb[140].mxu1 %v9934_v9  ;;  %7069 = vmatmul.mubr.bf16.gmra.mrb[172].mxu0 %v9934_v9 }
 0x866   :  { %v3536_v37 = vadd.f32 %v3535_v55, %v3521_v22  ;;  %v9982_v22 = vsub.f32 %v9510_v41, %v9803_v12  ;;  %v7491_v41 = vld [vmem:[%s11521_s9 + $0x88] sm:$0xff]   ;;  %v7492_v12 = vld [vmem:[%s11521_s9 + $0x90] sm:$0xff]  }
 0x868   :  { %v3537_v33 = vadd.f32 %v3536_v37, %v3522_v32  ;;  %v3527_v32 = vmul.f32 %v9976_v57, %v9976_v57  ;;  %v3528_v35 = vmul.f32 %v9982_v22, %v9982_v22 }
 0x86a   :  { %v3538_v29 = vadd.f32 %v3537_v33, %v3523_v21 }
 0x86c   :  { %v3539_v23 = vadd.f32 %v3538_v29, %v3524_v7  ;;  %v7490_v7 = vld [vmem:[%s11521_s9 + $0x80] sm:$0xff]  }
 0x86d   :  { %7088 = vmatprep.subr.bf16.mxu1 %v7490_v7 }
 0x86e   :  { %v3540_v55 = vadd.f32 %v3539_v23, %v3525_v28  ;;  %7089 = vmatpush3.bf16.msra.mxu1 %v7490_v7 }
 0x86f   :  { %7090 = vmatprep.subr.bf16.mxu1 %v7491_v41 }
 0x870   :  { %v3541_v37 = vadd.f32 %v3540_v55, %v3526_v58  ;;  %v7493_v58 = vld [vmem:[%s11521_s9 + $0x98] sm:$0xff]  }
 0x872   :  { %v3542_v21 = vadd.f32 %v3541_v37, %v3527_v32  ;;  %7091 = vmatpush3.bf16.msra.mxu1 %v7491_v41 }
 0x873   :  { %7092 = vmatprep.subr.bf16.mxu1 %v7492_v12 }
 0x874   :  { %v3543_v33 = vadd.f32 %v3542_v21, %v3528_v35  ;;  %v7494_v21 = vld [vmem:[%s11521_s9 + $0xa0] sm:$0xff]  }
 0x876   :  { %3544 = vadd.xlane.f32.xlu1 %v3543_v33  ;;  %7093 = vmatpush3.bf16.msra.mxu1 %v7492_v12  ;;  %v7495_v33 = vld [vmem:[%s11521_s9 + $0xa8] sm:$0xff]  }
 0x877   :  { %7094 = vmatprep.subr.bf16.mxu1 %v7493_v58 }
 0x87a   :  { %7095 = vmatpush3.bf16.msra.mxu1 %v7493_v58 }
 0x87b   :  { %7096 = vmatprep.subr.bf16.mxu1 %v7494_v21 }
 0x87e   :  { %7097 = vmatpush3.bf16.msra.mxu1 %v7494_v21 }
 0x87f   :  { %7098 = vmatprep.subr.bf16.mxu1 %v7495_v33 }
 0x882   :  { %7099 = vmatpush3.bf16.msra.mxu1 %v7495_v33 }
 0x903   :  { %v3545_v29 = vpop.xlane.xlu1 %3544 }
 0x904   :  { %v3546_v28 = vrot.slane %v3545_v29, 4 }
 0x906   :  { %v3547_v23 = vadd.f32 %v3546_v28, %v3545_v29 }
 0x908   :  { %v3548_v55 = vrot.slane %v3547_v23, 2 }
 0x90a   :  { %v3549_v32 = vadd.f32 %v3548_v55, %v3547_v23 }
 0x90c   :  { %v3550_v37 = vrot.slane %v3549_v32, 1 }
 0x90e   :  { %v3551_v35 = vadd.f32 %v3550_v37, %v3549_v32 }
 0x910   :  { %7348 = vpush %v3551_v35  ;;  %v7496_v35 = vld [vmem:[%s11521_s9 + $0xb0] sm:$0xff]  }
 0x911   :  { %7100 = vmatprep.subr.bf16.mxu1 %v7496_v35 }
 0x912   :  { %7101 = vmatpush3.bf16.msra.mxu1 %v7496_v35 }
 0x920   :  { %v7010_v7 = vpop.f32.mrb[128].mxu1  ;;  %v7058_v41 = vpop.f32.mrb[160].mxu0 }
 0x921   :  { %v10008_v12 = vpop.f32.mrb[129].mxu1  ;;  %v10010_v29 = vpop.f32.mrb[161].mxu0  ;;  %v3885_v58 = vrot.slane %v7010_v7, 7 }
 0x922   :  { %11751 = vst [vmem:[#allocation10_spill] sm:$0xff] %v10008_v12  ;;  %11752 = vst [vmem:[#allocation11_spill] sm:$0xff] %v10010_v29  ;;  %v7011_v28 = vpop.f32.mrb[130].mxu1  ;;  %v7059_v23 = vpop.f32.mrb[162].mxu0  ;;  %v11609_v21 = vrot.slane %v10008_v12, 7 }
 0x923   :  { %v3886_v55 = vrot.slane %v7011_v28, 7  ;;  %v3759_v32 = vpop.f32.mrb[131].mxu1  ;;  %v4064_v37 = vpop.f32.mrb[163].mxu0 }
 0x924   :  { %v3884_v11 = vrot.slane %v3759_v32, 7 }
 0x925   :  { %v3943_v36 = vsel %vm1201_vm1, %v3885_v58, %v3886_v55 }
 0x926   :  { %v10018_v46 = vadd.f32 %v7059_v23, %v3943_v36  ;;  %v3944_v17 = vsel %vm1201_vm1, %v3884_v11, %v3885_v58  ;;  %v3945_v7 = vsel %vm1201_vm1, %v11609_v21, %v3884_v11  ;;  %v7497_v11 = vld [vmem:[%s11521_s9 + $0xb8] sm:$0xff]   ;;  %s3553_s9 = smul.f32 8192.0, %s9768_s26 }
 0x927   :  { %v10026_v28 = vadd.f32 %v7058_v41, %v3944_v17  ;;  %v10028_v63 = vadd.f32 %v4064_v37, %v3945_v7  ;;  %7102 = vmatprep.subr.bf16.mxu1 %v7497_v11 }
 0x928   :  { %11754 = vst [vmem:[#allocation13_spill] sm:$0xff] %v10018_v46  ;;  %v7014_v32 = vpop.f32.mrb[132].mxu1  ;;  %v7062_v60 = vpop.f32.mrb[164].mxu0  ;;  %7103 = vmatpush3.bf16.msra.mxu1 %v7497_v11  ;;  %s3554_s1 = smul.f32 %s3553_s9, %s9768_s26 }
 0x929   :  { %11755 = vst [vmem:[#allocation14_spill] sm:$0xff] %v10026_v28  ;;  %11756 = vst [vmem:[#allocation16_spill] sm:$0xff] %v10028_v63  ;;  %v3772_v61 = vpop.f32.mrb[133].mxu1  ;;  %v4077_v42 = vpop.f32.mrb[165].mxu0  ;;  %v3889_v38 = vrot.slane %v7014_v32, 7 }
 0x92a   :  { %v3887_v4 = vrot.slane %v3772_v61, 7  ;;  %v7015_v36 = vpop.f32.mrb[134].mxu1  ;;  %v7063_v23 = vpop.f32.mrb[166].mxu0 }
 0x92b   :  { %v3890_v46 = vrot.slane %v7015_v36, 7  ;;  %v3775_v58 = vpop.f32.mrb[135].mxu1  ;;  %v4080_v29 = vpop.f32.mrb[167].mxu0 }
 0x92c   :  { %v3942_v17 = vsel %vm1201_vm1, %v3886_v55, %v3887_v4  ;;  %v3888_v41 = vrot.slane %v3775_v58, 7 }
 0x92d   :  { %v10035_v37 = vadd.f32 %v4077_v42, %v3942_v17  ;;  %v3939_v35 = vsel %vm1201_vm1, %v3889_v38, %v3890_v46 }
 0x92e   :  { %v10039_v61 = vadd.f32 %v7063_v23, %v3939_v35  ;;  %v3940_v7 = vsel %vm1201_vm1, %v3888_v41, %v3889_v38  ;;  %v3941_v32 = vsel %vm1201_vm1, %v3887_v4, %v3888_v41 }
 0x92f   :  { %11757 = vst [vmem:[#allocation15_spill] sm:$0xff] %v10035_v37  ;;  %v10045_v36 = vadd.f32 %v7062_v60, %v3940_v7  ;;  %v10047_v21 = vadd.f32 %v4080_v29, %v3941_v32 }
 0x930   :  { %11758 = vst [vmem:[#allocation20_spill] sm:$0xff] %v10039_v61  ;;  %v7018_v55 = vpop.f32.mrb[136].mxu1  ;;  %v7066_v42 = vpop.f32.mrb[168].mxu0 }
 0x931   :  { %v3788_v58 = vpop.f32.mrb[137].mxu1  ;;  %v4093_v17 = vpop.f32.mrb[169].mxu0  ;;  %v3893_v23 = vrot.slane %v7018_v55, 7 }
 0x932   :  { %v3891_v37 = vrot.slane %v3788_v58, 7  ;;  %v7019_v63 = vpop.f32.mrb[138].mxu1  ;;  %v7067_v28 = vpop.f32.mrb[170].mxu0 }
 0x933   :  { %v3894_v35 = vrot.slane %v7019_v63, 7  ;;  %v3791_v61 = vpop.f32.mrb[139].mxu1  ;;  %v4096_v12 = vpop.f32.mrb[171].mxu0 }
 0x934   :  { %v3938_v38 = vsel %vm1201_vm1, %v3890_v46, %v3891_v37  ;;  %v3892_v4 = vrot.slane %v3791_v61, 7 }
 0x935   :  { %v10051_v11 = vadd.f32 %v4093_v17, %v3938_v38  ;;  %v3935_v60 = vsel %vm1201_vm1, %v3893_v23, %v3894_v35 }
 0x936   :  { %v10055_v29 = vadd.f32 %v7067_v28, %v3935_v60  ;;  %v3936_v41 = vsel %vm1201_vm1, %v3892_v4, %v3893_v23  ;;  %v3937_v7 = vsel %vm1201_vm1, %v3891_v37, %v3892_v4 }
 0x937   :  { %11759 = vst [vmem:[#allocation17_spill] sm:$0xff] %v10051_v11  ;;  %v10061_v63 = vadd.f32 %v7066_v42, %v3936_v41  ;;  %v10063_v32 = vadd.f32 %v4096_v12, %v3937_v7 }
 0x938   :  { %11760 = vst [vmem:[#allocation18_spill] sm:$0xff] %v10055_v29  ;;  %v7022_v55 = vpop.f32.mrb[140].mxu1  ;;  %v7070_v46 = vpop.f32.mrb[172].mxu0 }
 0x939   :  { %v3804_v61 = vpop.f32.mrb[141].mxu1  ;;  %v4109_v58 = vpop.f32.mrb[173].mxu0  ;;  %v3897_v60 = vrot.slane %v7022_v55, 7 }
 0x93a   :  { %v3895_v17 = vrot.slane %v3804_v61, 7  ;;  %v10065_v38 = vpop.f32.mrb[142].mxu1  ;;  %v7071_v28 = vpop.f32.mrb[174].mxu0 }
 0x93b   :  { %v11611_v23 = vrot.slane %v10065_v38, 7  ;;  %v3807_v29 = vpop.f32.mrb[143].mxu1  ;;  %v4112_v11 = vpop.f32.mrb[175].mxu0 }
 0x93c   :  { %v3934_v37 = vsel %vm1201_vm1, %v3894_v35, %v3895_v17  ;;  %v3896_v12 = vrot.slane %v3807_v29, 7 }
 0x93d   :  { %v10070_v42 = vadd.f32 %v4109_v58, %v3934_v37  ;;  %v3931_v4 = vsel %vm1201_vm1, %v3897_v60, %v11611_v23 }
 0x93e   :  { %v10076_v41 = vadd.f32 %v7071_v28, %v3931_v4  ;;  %v3932_v7 = vsel %vm1201_vm1, %v3896_v12, %v3897_v60  ;;  %v3933_v55 = vsel %vm1201_vm1, %v3895_v17, %v3896_v12  ;;  %v11763_v4 = vunpack.c.l.bf16 %v9650_v34 }
 0x93f   :  { %v10083_v61 = vadd.f32 %v7070_v46, %v3932_v7  ;;  %v10085_v35 = vadd.f32 %v4112_v11, %v3933_v55  ;;  %v11764_v55 = vunpack.c.h.bf16 %v9650_v34 }
 0x940   :  { %11761 = vst [vmem:[#allocation19_spill] sm:$0xff] %v10076_v41 }
 0x941   :  { %11762 = vst [vmem:[#allocation21_spill] sm:$0xff] %v10085_v35  ;;  %s7349_s17 = spop %7348 }
 0x942   :  { %s3555_s18 = ssub.f32 %s7349_s17, %s3554_s1 }
 0x944   :  { %s3556_s19 = smul.f32 0.00012207031, %s3555_s18 }
 0x946   :  { %s3557_s7 = sadd.f32 1e-06, %s3556_s19 }
 0x948   :  { %v3558_v29 = vstv %s3557_s7 }
 0x949   :  { %7536 = vrsqrt.f32 %v3558_v29 }
 0x953   :  { %v7537_v58 = vpop.eup %7536 }
 0x954   :  { %7350 = vpush %v7537_v58  ;;  %v11765_v58 = vunpack.c.l.bf16 %v9660_v18 }
 0x985   :  { %s7351_s20 = spop %7350 }
 0x986   :  { %v3561_v28 = vstv %s7351_s20 }
 0x987   :  { %v3562_v60 = vmul.f32 %v3561_v28, %v9844_v51  ;;  %v3563_v17 = vmul.f32 %v3561_v28, %v9848_v50  ;;  %v3564_v46 = vmul.f32 %v3561_v28, %v9878_v43  ;;  %v3565_v11 = vmul.f32 %v3561_v28, %v9890_v14 }
 0x988   :  { %v3566_v37 = vmul.f32 %v3561_v28, %v9902_v26  ;;  %v3567_v12 = vmul.f32 %v3561_v28, %v9912_v13  ;;  %v11766_v51 = vunpack.c.h.bf16 %v9660_v18  ;;  %v11767_v43 = vunpack.c.l.bf16 %v9670_v2 }
 0x989   :  { %v3578_v7 = vmul.f32 %v11763_v4, %v3562_v60  ;;  %v3579_v29 = vmul.f32 %v11764_v55, %v3563_v17  ;;  %v3580_v23 = vmul.f32 %v11765_v58, %v3564_v46  ;;  %v11768_v14 = vunpack.c.h.bf16 %v9670_v2 }
 0x98a   :  { %v3581_v50 = vmul.f32 %v11766_v51, %v3565_v11  ;;  %v3582_v41 = vmul.f32 %v11767_v43, %v3566_v37  ;;  %v3568_v13 = vmul.f32 %v3561_v28, %v9924_v47  ;;  %v3569_v35 = vmul.f32 %v3561_v28, %v9930_v6 }
 0x98b   :  { %v3583_v26 = vmul.f32 %v11768_v14, %v3567_v12  ;;  %v11769_v60 = vunpack.c.l.bf16 %v9655_v54  ;;  %v11770_v17 = vunpack.c.h.bf16 %v9655_v54  ;;  %v11771_v46 = vunpack.c.l.bf16 %v9665_v10 }
 0x98c   :  { %v11772_v11 = vunpack.c.h.bf16 %v9665_v10  ;;  %v11773_v37 = vunpack.c.l.bf16 %v9677_v5  ;;  %v11774_v12 = vunpack.c.h.bf16 %v9677_v5  ;;  %v3570_v51 = vmul.f32 %v3561_v28, %v9938_v27 }
 0x98d   :  { %v3594_v34 = vadd.f32 %v11769_v60, %v3578_v7  ;;  %v3595_v4 = vadd.f32 %v11770_v17, %v3579_v29  ;;  %v3596_v18 = vadd.f32 %v11771_v46, %v3580_v23  ;;  %v3571_v7 = vmul.f32 %v3561_v28, %v9946_v53 }
 0x98e   :  { %v3597_v55 = vadd.f32 %v11772_v11, %v3581_v50  ;;  %v3598_v2 = vadd.f32 %v11773_v37, %v3582_v41  ;;  %v3599_v47 = vadd.f32 %v11774_v12, %v3583_v26  ;;  %v11775_v54 = vunpack.c.l.bf16 %v9682_v49 }
 0x98f   :  { %v3610_v58 = vpack.c.bf16 %v3595_v4, %v3594_v34  ;;  %v11776_v23 = vunpack.c.h.bf16 %v9682_v49  ;;  %v11777_v41 = vunpack.c.l.bf16 %v9695_v59  ;;  %v11778_v5 = vunpack.c.h.bf16 %v9695_v59 }
 0x990   :  { %v3611_v6 = vpack.c.bf16 %v3597_v55, %v3596_v18  ;;  %v3584_v29 = vmul.f32 %v11775_v54, %v3568_v13  ;;  %v3612_v10 = vpack.c.bf16 %v3599_v47, %v3598_v2  ;;  %v11779_v27 = vunpack.c.l.bf16 %v9725_v52 }
 0x991   :  { %v3585_v43 = vmul.f32 %v11776_v23, %v3569_v35  ;;  %7024 = vmatprep.mubr.bf16.mxu1 %v3610_v58  ;;  %7072 = vmatprep.mubr.bf16.mxu0 %v3610_v58  ;;  %v3586_v50 = vmul.f32 %v11777_v41, %v3570_v51  ;;  %v3587_v14 = vmul.f32 %v11778_v5, %v3571_v7  ;;  %v11780_v26 = vunpack.c.h.bf16 %v9725_v52 }
 0x992   :  { %7025 = vmatmul.mubr.bf16.gmra.mrb[144].mxu1 %v3611_v6  ;;  %7073 = vmatmul.mubr.bf16.gmra.mrb[176].mxu0 %v3611_v6  ;;  %v3600_v53 = vadd.f32 %v11779_v27, %v3584_v29  ;;  %v3572_v35 = vmul.f32 %v3561_v28, %v9952_v62  ;;  %v3573_v13 = vmul.f32 %v3561_v28, %v9958_v24  ;;  %v11781_v60 = vunpack.c.l.bf16 %v9747_v0 }
 0x993   :  { %7028 = vmatprep.mubr.bf16.mxu1 %v3612_v10  ;;  %7076 = vmatprep.mubr.bf16.mxu0 %v3612_v10  ;;  %v3601_v49 = vadd.f32 %v11780_v26, %v3585_v43  ;;  %v11782_v59 = vunpack.c.h.bf16 %v9747_v0  ;;  %v3574_v4 = vmul.f32 %v3561_v28, %v9964_v30  ;;  %v3575_v46 = vmul.f32 %v3561_v28, %v9970_v45 }
 0x994   :  { %v3602_v34 = vadd.f32 %v11781_v60, %v3586_v50  ;;  %v11783_v11 = vunpack.c.l.bf16 %v9766_v31  ;;  %v11784_v52 = vunpack.c.h.bf16 %v9766_v31  ;;  %v11785_v24 = vunpack.c.l.bf16 %v9780_v25 }
 0x995   :  { %v3603_v17 = vadd.f32 %v11782_v59, %v3587_v14  ;;  %v3613_v18 = vpack.c.bf16 %v3601_v49, %v3600_v53  ;;  %v11786_v12 = vunpack.c.h.bf16 %v9780_v25  ;;  %v11787_v0 = vunpack.c.l.bf16 %v9812_v3 }
 0x996   :  { %v3588_v55 = vmul.f32 %v11783_v11, %v3572_v35  ;;  %v3589_v37 = vmul.f32 %v11784_v52, %v3573_v13  ;;  %v3590_v2 = vmul.f32 %v11785_v24, %v3574_v4  ;;  %v11788_v45 = vunpack.c.h.bf16 %v9812_v3 }
 0x997   :  { %v3614_v62 = vpack.c.bf16 %v3603_v17, %v3602_v34  ;;  %v3591_v47 = vmul.f32 %v11786_v12, %v3575_v46  ;;  %v3576_v31 = vmul.f32 %v3561_v28, %v9976_v57  ;;  %v3577_v7 = vmul.f32 %v3561_v28, %v9982_v22 }
 0x998   :  { %v3604_v30 = vadd.f32 %v11787_v0, %v3588_v55  ;;  %v3605_v51 = vadd.f32 %v11788_v45, %v3589_v37  ;;  %v11789_v54 = vunpack.c.l.bf16 %v9822_v1  ;;  %v11790_v25 = vunpack.c.h.bf16 %v9822_v1 }
 0x999   :  { %v11791_v41 = vunpack.c.l.bf16 %v9837_v44  ;;  %v11792_v5 = vunpack.c.h.bf16 %v9837_v44  ;;  %v11793_v3 = vunpack.c.l.bf16 %v9872_v56  ;;  %v11794_v22 = vunpack.c.h.bf16 %v9872_v56 }
 0x99a   :  { %7029 = vmatmul.mubr.bf16.gmra.mrb[148].mxu1 %v3613_v18  ;;  %7077 = vmatmul.mubr.bf16.gmra.mrb[180].mxu0 %v3613_v18  ;;  %v3606_v29 = vadd.f32 %v11789_v54, %v3590_v2  ;;  %v3607_v23 = vadd.f32 %v11790_v25, %v3591_v47  ;;  %v3615_v43 = vpack.c.bf16 %v3605_v51, %v3604_v30 }
 0x99b   :  { %7032 = vmatprep.mubr.bf16.mxu1 %v3614_v62  ;;  %7080 = vmatprep.mubr.bf16.mxu0 %v3614_v62  ;;  %v3592_v50 = vmul.f32 %v11791_v41, %v3576_v31  ;;  %v3593_v14 = vmul.f32 %v11792_v5, %v3577_v7 }
 0x99c   :  { %v3616_v27 = vpack.c.bf16 %v3607_v23, %v3606_v29 }
 0x99d   :  { %v3608_v57 = vadd.f32 %v11793_v3, %v3592_v50  ;;  %v3609_v28 = vadd.f32 %v11794_v22, %v3593_v14 }
 0x99f   :  { %v3617_v1 = vpack.c.bf16 %v3609_v28, %v3608_v57 }
 0x9a2   :  { %7033 = vmatmul.mubr.bf16.gmra.mrb[152].mxu1 %v3615_v43  ;;  %7081 = vmatmul.mubr.bf16.gmra.mrb[184].mxu0 %v3615_v43 }
 0x9a3   :  { %7036 = vmatprep.mubr.bf16.mxu1 %v3616_v27  ;;  %7084 = vmatprep.mubr.bf16.mxu0 %v3616_v27 }
 0x9aa   :  { %7037 = vmatmul.mubr.bf16.gmra.mrb[156].mxu1 %v3617_v1  ;;  %7085 = vmatmul.mubr.bf16.gmra.mrb[188].mxu0 %v3617_v1 }
 0x9ab   :  { %7104 = vmatprep.mubr.bf16.mxu1 %v9756_v48 }
 0x9b2   :  { %7105 = vmatmul.mubr.bf16.vlgmr.msra.gmra.mrb[160].mxu1 %v9770_v39 }
 0x9b3   :  { %7108 = vmatprep.mubr.bf16.mxu1 %v9784_v15 }
 0x9ba   :  { %7109 = vmatmul.mubr.bf16.gmra.mrb[164].mxu1 %v9839_v40 }
 0x9bb   :  { %7112 = vmatprep.mubr.bf16.mxu1 %v9850_v16 }
 0x9c2   :  { %7113 = vmatmul.mubr.bf16.gmra.mrb[168].mxu1 %v9892_v19 }
 0x9c3   :  { %7116 = vmatprep.mubr.bf16.mxu1 %v9906_v8 }
 0x9ca   :  { %7117 = vmatmul.mubr.bf16.gmra.mrb[172].mxu1 %v9934_v9  ;;  %v11795_v9 = vrot.slane %v10065_v38, 7 }
 0x9cb   :  { %7120 = vmatprep.mubr.bf16.mxu1 %v3610_v58 }
 0x9d2   :  { %7121 = vmatmul.mubr.bf16.gmra.mrb[176].mxu1 %v3611_v6 }
 0x9d3   :  { %7124 = vmatprep.mubr.bf16.mxu1 %v3612_v10 }
 0x9da   :  { %7125 = vmatmul.mubr.bf16.gmra.mrb[180].mxu1 %v3613_v18 }
 0x9db   :  { %7128 = vmatprep.mubr.bf16.mxu1 %v3614_v62 }
 0x9e2   :  { %7129 = vmatmul.mubr.bf16.gmra.mrb[184].mxu1 %v3615_v43 }
 0x9e3   :  { %7132 = vmatprep.mubr.bf16.mxu1 %v3616_v27 }
 0x9ea   :  { %7133 = vmatmul.mubr.bf16.gmra.mrb[188].mxu1 %v3617_v1 }
 0xa65   :  { %v7026_v48 = vpop.f32.mrb[144].mxu1  ;;  %v7074_v39 = vpop.f32.mrb[176].mxu0 }
 0xa66   :  { %v3820_v15 = vpop.f32.mrb[145].mxu1  ;;  %v4125_v40 = vpop.f32.mrb[177].mxu0  ;;  %v3901_v19 = vrot.slane %v7026_v48, 7 }
 0xa67   :  { %v3899_v44 = vrot.slane %v3820_v15, 7  ;;  %v7027_v16 = vpop.f32.mrb[146].mxu1  ;;  %v7075_v56 = vpop.f32.mrb[178].mxu0 }
 0xa68   :  { %v3902_v53 = vrot.slane %v7027_v16, 7  ;;  %v3823_v8 = vpop.f32.mrb[147].mxu1  ;;  %v4128_v26 = vpop.f32.mrb[179].mxu0 }
 0xa69   :  { %v3930_v58 = vsel %vm1201_vm1, %v11795_v9, %v3899_v44  ;;  %v3900_v6 = vrot.slane %v3823_v8, 7 }
 0xa6a   :  { %v3963_v10 = vmul.f32 %v11746_v20, %v3930_v58  ;;  %v3927_v49 = vsel %vm1201_vm1, %v3901_v19, %v3902_v53 }
 0xa6b   :  { %v10183_v35 = vadd.f32 %v7075_v56, %v3927_v49  ;;  %v3928_v13 = vsel %vm1201_vm1, %v3900_v6, %v3901_v19  ;;  %v3929_v60 = vsel %vm1201_vm1, %v3899_v44, %v3900_v6 }
 0xa6c   :  { %v10189_v34 = vadd.f32 %v4125_v40, %v3963_v10  ;;  %v10191_v38 = vadd.f32 %v7074_v39, %v3928_v13  ;;  %v10193_v59 = vadd.f32 %v4128_v26, %v3929_v60 }
 0xa6d   :  { %v7030_v17 = vpop.f32.mrb[148].mxu1  ;;  %v7078_v4 = vpop.f32.mrb[180].mxu0 }
 0xa6e   :  { %v3836_v46 = vpop.f32.mrb[149].mxu1  ;;  %v4141_v18 = vpop.f32.mrb[181].mxu0  ;;  %v3905_v37 = vrot.slane %v7030_v17, 7 }
 0xa6f   :  { %v3903_v11 = vrot.slane %v3836_v46, 7  ;;  %v7031_v55 = vpop.f32.mrb[150].mxu1  ;;  %v7079_v52 = vpop.f32.mrb[182].mxu0  ;;  %v11796_v46 = vld [vmem:[#allocation10_spill] sm:$0xff] }
 0xa70   :  { %v3906_v62 = vrot.slane %v7031_v55, 7  ;;  %v3839_v24 = vpop.f32.mrb[151].mxu1  ;;  %v4144_v2 = vpop.f32.mrb[183].mxu0 }
 0xa71   :  { %v3926_v12 = vsel %vm1201_vm1, %v3902_v53, %v3903_v11  ;;  %v3904_v47 = vrot.slane %v3839_v24, 7 }
 0xa72   :  { %v10197_v0 = vadd.f32 %v4141_v18, %v3926_v12  ;;  %v3923_v30 = vsel %vm1201_vm1, %v3905_v37, %v3906_v62  ;;  %v11797_v18 = vrot.slane %v11796_v46, 7  ;;  %v11802_v46 = vld [vmem:[#allocation13_spill] sm:$0xff] }
 0xa73   :  { %v10201_v45 = vadd.f32 %v7079_v52, %v3923_v30  ;;  %v3924_v51 = vsel %vm1201_vm1, %v3904_v47, %v3905_v37  ;;  %v3925_v31 = vsel %vm1201_vm1, %v3903_v11, %v3904_v47  ;;  %v11798_v52 = vld [vmem:[#allocation6_spill] sm:$0xff] }
 0xa74   :  { %v10207_v7 = vadd.f32 %v7078_v4, %v3924_v51  ;;  %v10209_v54 = vadd.f32 %v4144_v2, %v3925_v31  ;;  %v11799_v51 = vld [vmem:[#allocation11_spill] sm:$0xff] }
 0xa75   :  { %v7034_v29 = vpop.f32.mrb[152].mxu1  ;;  %v7082_v25 = vpop.f32.mrb[184].mxu0 }
 0xa76   :  { %v3852_v23 = vpop.f32.mrb[153].mxu1  ;;  %v4157_v43 = vpop.f32.mrb[185].mxu0  ;;  %v3909_v14 = vrot.slane %v7034_v29, 7 }
 0xa77   :  { %v3907_v41 = vrot.slane %v3852_v23, 7  ;;  %v7035_v50 = vpop.f32.mrb[154].mxu1  ;;  %v7083_v5 = vpop.f32.mrb[186].mxu0 }
 0xa78   :  { %v3910_v27 = vrot.slane %v7035_v50, 7  ;;  %v3855_v3 = vpop.f32.mrb[155].mxu1  ;;  %v4160_v57 = vpop.f32.mrb[187].mxu0 }
 0xa79   :  { %v3922_v22 = vsel %vm1201_vm1, %v3906_v62, %v3907_v41  ;;  %v3908_v28 = vrot.slane %v3855_v3, 7 }
 0xa7a   :  { %v10213_v1 = vadd.f32 %v4157_v43, %v3922_v22  ;;  %v3919_v48 = vsel %vm1201_vm1, %v3909_v14, %v3910_v27 }
 0xa7b   :  { %v10217_v39 = vadd.f32 %v7083_v5, %v3919_v48  ;;  %v3920_v15 = vsel %vm1201_vm1, %v3908_v28, %v3909_v14  ;;  %v3921_v40 = vsel %vm1201_vm1, %v3907_v41, %v3908_v28 }
 0xa7c   :  { %v10223_v44 = vadd.f32 %v7082_v25, %v3920_v15  ;;  %v10225_v16 = vadd.f32 %v4160_v57, %v3921_v40  ;;  %v10258_v57 = vld [vmem:[%s11524_s10] ss:$0 sm:$0xff] }
 0xa7d   :  { %v7038_v56 = vpop.f32.mrb[156].mxu1  ;;  %v7086_v19 = vpop.f32.mrb[188].mxu0  ;;  %v11801_v15 = vld [vmem:[#allocation16_spill] sm:$0xff] }
 0xa7e   :  { %v3868_v53 = vpop.f32.mrb[157].mxu1  ;;  %v4173_v8 = vpop.f32.mrb[189].mxu0  ;;  %v3913_v6 = vrot.slane %v7038_v56, 7 }
 0xa7f   :  { %v3911_v26 = vrot.slane %v3868_v53, 7  ;;  %v7039_v9 = vpop.f32.mrb[158].mxu1  ;;  %v7087_v58 = vpop.f32.mrb[190].mxu0 }
 0xa80   :  { %v3914_v10 = vrot.slane %v7039_v9, 7  ;;  %v3871_v49 = vpop.f32.mrb[159].mxu1  ;;  %v4176_v13 = vpop.f32.mrb[191].mxu0 }
 0xa81   :  { %v3918_v60 = vsel %vm1201_vm1, %v3910_v27, %v3911_v26  ;;  %v3912_v17 = vrot.slane %v3871_v49, 7  ;;  %v11800_v27 = vld [vmem:[#allocation14_spill] sm:$0xff] }
 0xa82   :  { %v10229_v4 = vadd.f32 %v4173_v8, %v3918_v60  ;;  %v3946_v11 = vsel %vm1201_vm1, %v3914_v10, %v11797_v18  ;;  %v3915_v55 = vsel %vm1201_vm1, %v3913_v6, %v3914_v10 }
 0xa83   :  { %v3947_v37 = vmul.f32 %v11798_v52, %v3946_v11  ;;  %v10238_v62 = vadd.f32 %v7087_v58, %v3915_v55  ;;  %v3916_v24 = vsel %vm1201_vm1, %v3912_v17, %v3913_v6  ;;  %v3917_v2 = vsel %vm1201_vm1, %v3911_v26, %v3912_v17 }
 0xa84   :  { %v10244_v12 = vadd.f32 %v7086_v19, %v3916_v24  ;;  %v10246_v47 = vadd.f32 %v4176_v13, %v3917_v2 }
 0xa85   :  { %v7106_v30 = vpop.f32.mrb[160].mxu1  ;;  %v4062_v31 = vadd.f32 %v11799_v51, %v3947_v37  ;;  %v11803_v51 = vld [vmem:[#allocation15_spill] sm:$0xff] }
 0xa86   :  { %v10249_v29 = vpop.f32.mrb[161].mxu1  ;;  %v4415_v23 = vrot.slane %v7106_v30, 1 }
 0xa87   :  { %v7107_v25 = vpop.f32.mrb[162].mxu1  ;;  %v4413_v50 = vrot.slane %v10249_v29, 1 }
 0xa88   :  { %v4416_v43 = vrot.slane %v7107_v25, 1  ;;  %v4289_v41 = vpop.f32.mrb[163].mxu1 }
 0xa89   :  { %v4414_v5 = vrot.slane %v4289_v41, 1 }
 0xa8a   :  { %v4473_v14 = vsel %vm1788_vm4, %v4415_v23, %v4416_v43 }
 0xa8b   :  { %v4511_v3 = vadd.f32 %v4473_v14, %v11800_v27  ;;  %v4474_v22 = vsel %vm1788_vm4, %v4414_v5, %v4415_v23  ;;  %v4475_v28 = vsel %vm1788_vm4, %v4413_v50, %v4414_v5 }
 0xa8c   :  { %v4509_v48 = vadd.f32 %v4475_v28, %v4062_v31  ;;  %v4510_v40 = vadd.f32 %v4474_v22, %v11801_v15 }
 0xa8d   :  { %v7110_v56 = vpop.f32.mrb[164].mxu1  ;;  %v10278_v17 = vadd.f32 %v10258_v57, %v4511_v3 }
 0xa8e   :  { %v10268_v19 = vadd.f32 %v10258_v57, %v4509_v48  ;;  %v10271_v53 = vadd.f32 %v10258_v57, %v4510_v40  ;;  %v4302_v8 = vpop.f32.mrb[165].mxu1  ;;  %v4419_v6 = vrot.slane %v7110_v56, 1 }
 0xa8f   :  { %v4417_v26 = vrot.slane %v4302_v8, 1  ;;  %v7111_v9 = vpop.f32.mrb[166].mxu1  ;;  %v11804_v8 = vld [vmem:[#allocation20_spill] sm:$0xff] }
 0xa90   :  { %v4612_v58 = vadd.f32 %v10271_v53, %v10268_v19  ;;  %v4420_v10 = vrot.slane %v7111_v9, 1  ;;  %v4305_v49 = vpop.f32.mrb[167].mxu1 }
 0xa91   :  { %v4472_v13 = vsel %vm1788_vm4, %v4416_v43, %v4417_v26  ;;  %v4418_v60 = vrot.slane %v4305_v49, 1 }
 0xa92   :  { %v4512_v18 = vadd.f32 %v4472_v13, %v11802_v46  ;;  %v4469_v11 = vsel %vm1788_vm4, %v4419_v6, %v4420_v10  ;;  %v4613_v30 = vadd.f32 %v4612_v58, %v10278_v17 }
 0xa93   :  { %v4515_v55 = vadd.f32 %v4469_v11, %v10045_v36  ;;  %v4470_v37 = vsel %vm1788_vm4, %v4418_v60, %v4419_v6  ;;  %v4471_v24 = vsel %vm1788_vm4, %v4417_v26, %v4418_v60  ;;  %v11805_v60 = vld [vmem:[#allocation17_spill] sm:$0xff] }
 0xa94   :  { %v10289_v2 = vadd.f32 %v10258_v57, %v4512_v18  ;;  %v4513_v31 = vadd.f32 %v4471_v24, %v11803_v51  ;;  %v4514_v25 = vadd.f32 %v4470_v37, %v10047_v21 }
 0xa95   :  { %v7114_v23 = vpop.f32.mrb[168].mxu1  ;;  %v10305_v40 = vadd.f32 %v10258_v57, %v4515_v55 }
 0xa96   :  { %v4614_v43 = vadd.f32 %v4613_v30, %v10289_v2  ;;  %v10296_v36 = vadd.f32 %v10258_v57, %v4513_v31  ;;  %v4318_v41 = vpop.f32.mrb[169].mxu1  ;;  %v10299_v27 = vadd.f32 %v10258_v57, %v4514_v25  ;;  %v4423_v22 = vrot.slane %v7114_v23, 1 }
 0xa97   :  { %v4421_v5 = vrot.slane %v4318_v41, 1  ;;  %v7115_v14 = vpop.f32.mrb[170].mxu1 }
 0xa98   :  { %v4615_v3 = vadd.f32 %v4614_v43, %v10296_v36  ;;  %v4424_v28 = vrot.slane %v7115_v14, 1  ;;  %v4321_v48 = vpop.f32.mrb[171].mxu1 }
 0xa99   :  { %v4468_v21 = vsel %vm1788_vm4, %v4420_v10, %v4421_v5  ;;  %v4422_v15 = vrot.slane %v4321_v48, 1 }
 0xa9a   :  { %v4616_v56 = vadd.f32 %v4615_v3, %v10299_v27  ;;  %v4516_v26 = vadd.f32 %v4468_v21, %v11804_v8  ;;  %v4465_v9 = vsel %vm1788_vm4, %v4423_v22, %v4424_v28  ;;  %v11806_v3 = vld [vmem:[#allocation18_spill] sm:$0xff] }
 0xa9b   :  { %v4519_v58 = vadd.f32 %v4465_v9, %v10061_v63  ;;  %v4466_v6 = vsel %vm1788_vm4, %v4422_v15, %v4423_v22  ;;  %v4467_v49 = vsel %vm1788_vm4, %v4421_v5, %v4422_v15 }
 0xa9c   :  { %v10317_v10 = vadd.f32 %v10258_v57, %v4516_v26  ;;  %v4617_v13 = vadd.f32 %v4616_v56, %v10305_v40  ;;  %v4517_v46 = vadd.f32 %v4467_v49, %v11805_v60  ;;  %v4518_v18 = vadd.f32 %v4466_v6, %v10063_v32  ;;  %v11807_v26 = vld [vmem:[#allocation21_spill] sm:$0xff] }
 0xa9d   :  { %v7118_v11 = vpop.f32.mrb[172].mxu1  ;;  %v10333_v5 = vadd.f32 %v10258_v57, %v4519_v58 }
 0xa9e   :  { %v4618_v55 = vadd.f32 %v4617_v13, %v10317_v10  ;;  %v10324_v63 = vadd.f32 %v10258_v57, %v4517_v46  ;;  %v4334_v37 = vpop.f32.mrb[173].mxu1  ;;  %v10327_v51 = vadd.f32 %v10258_v57, %v4518_v18  ;;  %v4427_v25 = vrot.slane %v7118_v11, 1 }
 0xa9f   :  { %v4425_v24 = vrot.slane %v4334_v37, 1  ;;  %v7119_v30 = vpop.f32.mrb[174].mxu1 }
 0xaa0   :  { %v4619_v31 = vadd.f32 %v4618_v55, %v10324_v63  ;;  %v4428_v23 = vrot.slane %v7119_v30, 1  ;;  %v4337_v43 = vpop.f32.mrb[175].mxu1 }
 0xaa1   :  { %v4464_v32 = vsel %vm1788_vm4, %v4424_v28, %v4425_v24  ;;  %v4426_v41 = vrot.slane %v4337_v43, 1 }
 0xaa2   :  { %v4620_v14 = vadd.f32 %v4619_v31, %v10327_v51  ;;  %v4520_v22 = vadd.f32 %v4464_v32, %v11806_v3  ;;  %v4461_v48 = vsel %vm1788_vm4, %v4427_v25, %v4428_v23  ;;  %v11808_v31 = vld [vmem:[#allocation7_spill] sm:$0xff] }
 0xaa3   :  { %v4523_v21 = vadd.f32 %v4461_v48, %v10083_v61  ;;  %v4462_v15 = vsel %vm1788_vm4, %v4426_v41, %v4427_v25  ;;  %v4463_v56 = vsel %vm1788_vm4, %v4425_v24, %v4426_v41  ;;  %v11809_v48 = vld [vmem:[#allocation19_spill] sm:$0xff] }
 0xaa4   :  { %v10345_v28 = vadd.f32 %v10258_v57, %v4520_v22  ;;  %v4521_v8 = vadd.f32 %v4463_v56, %v10070_v42  ;;  %v4522_v9 = vadd.f32 %v4462_v15, %v11807_v26  ;;  %v4621_v58 = vadd.f32 %v4620_v14, %v10333_v5 }
 0xaa5   :  { %v7122_v6 = vpop.f32.mrb[176].mxu1  ;;  %v10373_v56 = vadd.f32 %v10258_v57, %v4523_v21 }
 0xaa6   :  { %v10351_v49 = vadd.f32 %v10258_v57, %v4521_v8  ;;  %v4350_v61 = vpop.f32.mrb[177].mxu1  ;;  %v4622_v13 = vadd.f32 %v4621_v58, %v10345_v28  ;;  %v4431_v18 = vrot.slane %v7122_v6, 1  ;;  %v10355_v37 = vadd.f32 %v10258_v57, %v4522_v9 }
 0xaa7   :  { %v4429_v60 = vrot.slane %v4350_v61, 1  ;;  %v7123_v46 = vpop.f32.mrb[178].mxu1 }
 0xaa8   :  { %v4432_v11 = vrot.slane %v7123_v46, 1  ;;  %v4353_v55 = vpop.f32.mrb[179].mxu1  ;;  %v4623_v42 = vadd.f32 %v4622_v13, %v10351_v49 }
 0xaa9   :  { %v4460_v24 = vsel %vm1788_vm4, %v4428_v23, %v4429_v60  ;;  %v4430_v30 = vrot.slane %v4353_v55, 1 }
 0xaaa   :  { %v4492_v25 = vmul.f32 %v11808_v31, %v4460_v24  ;;  %v4457_v43 = vsel %vm1788_vm4, %v4431_v18, %v4432_v11  ;;  %v4624_v32 = vadd.f32 %v4623_v42, %v10355_v37 }
 0xaab   :  { %v4527_v41 = vadd.f32 %v4457_v43, %v10191_v38  ;;  %v4458_v14 = vsel %vm1788_vm4, %v4430_v30, %v4431_v18  ;;  %v4459_v3 = vsel %vm1788_vm4, %v4429_v60, %v4430_v30 }
 0xaac   :  { %v4525_v22 = vadd.f32 %v4459_v3, %v10189_v34  ;;  %v4526_v23 = vadd.f32 %v4458_v14, %v10193_v59  ;;  %v4524_v15 = vadd.f32 %v4492_v25, %v11809_v48  ;;  %v4625_v34 = vadd.f32 %v4624_v32, %v10373_v56 }
 0xaad   :  { %v7126_v8 = vpop.f32.mrb[180].mxu1  ;;  %v10391_v42 = vadd.f32 %v10258_v57, %v4527_v41 }
 0xaae   :  { %v10376_v26 = vadd.f32 %v10258_v57, %v4525_v22  ;;  %v10379_v38 = vadd.f32 %v10258_v57, %v4526_v23  ;;  %v4366_v9 = vpop.f32.mrb[181].mxu1  ;;  %v10382_v58 = vadd.f32 %v10258_v57, %v4524_v15  ;;  %v4435_v21 = vrot.slane %v7126_v8, 1 }
 0xaaf   :  { %v4433_v6 = vrot.slane %v4366_v9, 1  ;;  %v7127_v59 = vpop.f32.mrb[182].mxu1 }
 0xab0   :  { %v4799_v61 = vadd.f32 %v10379_v38, %v10376_v26  ;;  %v4436_v13 = vrot.slane %v7127_v59, 1  ;;  %v4369_v60 = vpop.f32.mrb[183].mxu1  ;;  %v4626_v46 = vadd.f32 %v4625_v34, %v10382_v58 }
 0xab1   :  { %v4456_v18 = vsel %vm1788_vm4, %v4432_v11, %v4433_v6  ;;  %v4434_v55 = vrot.slane %v4369_v60, 1 }
 0xab2   :  { %v4528_v24 = vadd.f32 %v4456_v18, %v10183_v35  ;;  %v4453_v30 = vsel %vm1788_vm4, %v4435_v21, %v4436_v13  ;;  %4627 = vadd.xlane.f32.xlu0 %v4626_v46  ;;  %v4800_v41 = vadd.f32 %v4799_v61, %v10391_v42 }
 0xab3   :  { %v4531_v25 = vadd.f32 %v4453_v30, %v10207_v7  ;;  %v4454_v43 = vsel %vm1788_vm4, %v4434_v55, %v4435_v21  ;;  %v4455_v32 = vsel %vm1788_vm4, %v4433_v6, %v4434_v55 }
 0xab4   :  { %v10402_v11 = vadd.f32 %v10258_v57, %v4528_v24  ;;  %v4529_v14 = vadd.f32 %v4455_v32, %v10197_v0  ;;  %v4530_v35 = vadd.f32 %v4454_v43, %v10209_v54 }
 0xab5   :  { %v7130_v3 = vpop.f32.mrb[184].mxu1  ;;  %v10418_v61 = vadd.f32 %v10258_v57, %v4531_v25 }
 0xab6   :  { %v4801_v22 = vadd.f32 %v4800_v41, %v10402_v11  ;;  %v10409_v7 = vadd.f32 %v10258_v57, %v4529_v14  ;;  %v4382_v23 = vpop.f32.mrb[185].mxu1  ;;  %v10412_v8 = vadd.f32 %v10258_v57, %v4530_v35  ;;  %v4439_v34 = vrot.slane %v7130_v3, 1 }
 0xab7   :  { %v4437_v48 = vrot.slane %v4382_v23, 1  ;;  %v7131_v15 = vpop.f32.mrb[186].mxu1 }
 0xab8   :  { %v4802_v9 = vadd.f32 %v4801_v22, %v10409_v7  ;;  %v4440_v6 = vrot.slane %v7131_v15, 1  ;;  %v4385_v59 = vpop.f32.mrb[187].mxu1 }
 0xab9   :  { %v4452_v0 = vsel %vm1788_vm4, %v4436_v13, %v4437_v48  ;;  %v4438_v54 = vrot.slane %v4385_v59, 1 }
 0xaba   :  { %v4803_v21 = vadd.f32 %v4802_v9, %v10412_v8  ;;  %v4532_v60 = vadd.f32 %v4452_v0, %v10201_v45  ;;  %v4449_v46 = vsel %vm1788_vm4, %v4439_v34, %v4440_v6 }
 0xabb   :  { %v4535_v18 = vadd.f32 %v4449_v46, %v10223_v44  ;;  %v4450_v55 = vsel %vm1788_vm4, %v4438_v54, %v4439_v34  ;;  %v4451_v24 = vsel %vm1788_vm4, %v4437_v48, %v4438_v54 }
 0xabc   :  { %v10430_v13 = vadd.f32 %v10258_v57, %v4532_v60  ;;  %v4804_v30 = vadd.f32 %v4803_v21, %v10418_v61  ;;  %v4533_v25 = vadd.f32 %v4451_v24, %v10213_v1  ;;  %v4534_v45 = vadd.f32 %v4450_v55, %v10225_v16  ;;  %v11810_v21 = vld [vmem:[#allocation8_spill] sm:$0xff] }
 0xabd   :  { %v7134_v43 = vpop.f32.mrb[188].mxu1  ;;  %v10444_v1 = vadd.f32 %v10258_v57, %v4535_v18 }
 0xabe   :  { %v4805_v32 = vadd.f32 %v4804_v30, %v10430_v13  ;;  %v10437_v44 = vadd.f32 %v10258_v57, %v4533_v25  ;;  %v4398_v41 = vpop.f32.mrb[189].mxu1  ;;  %v10440_v3 = vadd.f32 %v10258_v57, %v4534_v45  ;;  %v4443_v23 = vrot.slane %v7134_v43, 1 }
 0xabf   :  { %v4441_v14 = vrot.slane %v4398_v41, 1  ;;  %v7135_v35 = vpop.f32.mrb[190].mxu1 }
 0xac0   :  { %v4806_v22 = vadd.f32 %v4805_v32, %v10437_v44  ;;  %v4444_v48 = vrot.slane %v7135_v35, 1  ;;  %v4401_v15 = vpop.f32.mrb[191].mxu1 }
 0xac1   :  { %v4448_v16 = vsel %vm1788_vm4, %v4440_v6, %v4441_v14  ;;  %v4442_v9 = vrot.slane %v4401_v15, 1 }
 0xac2   :  { %v4807_v34 = vadd.f32 %v4806_v22, %v10440_v3  ;;  %v4536_v59 = vadd.f32 %v4448_v16, %v10217_v39  ;;  %v4445_v0 = vsel %vm1788_vm4, %v4443_v23, %v4444_v48  ;;  %v4476_v54 = vsel %vm1788_vm4, %v4444_v48, %v4413_v50 }
 0xac3   :  { %v4508_v60 = vmul.f32 %v11810_v21, %v4476_v54  ;;  %v4539_v46 = vadd.f32 %v4445_v0, %v10244_v12  ;;  %v4446_v6 = vsel %vm1788_vm4, %v4442_v9, %v4443_v23  ;;  %v4447_v18 = vsel %vm1788_vm4, %v4441_v14, %v4442_v9 }
 0xac4   :  { %v10463_v39 = vadd.f32 %v10258_v57, %v4536_v59  ;;  %v4537_v55 = vadd.f32 %v4447_v18, %v10229_v4  ;;  %v4538_v29 = vadd.f32 %v4446_v6, %v10246_v47  ;;  %v4808_v24 = vadd.f32 %v4807_v34, %v10444_v1 }
 0xac5   :  { %v4540_v50 = vadd.f32 %v4508_v60, %v10238_v62  ;;  %v10478_v43 = vadd.f32 %v10258_v57, %v4539_v46 }
 0xac6   :  { %v10470_v30 = vadd.f32 %v10258_v57, %v4537_v55  ;;  %v4809_v12 = vadd.f32 %v4808_v24, %v10463_v39  ;;  %v10474_v25 = vadd.f32 %v10258_v57, %v4538_v29 }
 0xac7   :  { %v10482_v47 = vadd.f32 %v10258_v57, %v4540_v50 }
 0xac8   :  { %v4810_v45 = vadd.f32 %v4809_v12, %v10470_v30 }
 0xaca   :  { %v4811_v4 = vadd.f32 %v4810_v45, %v10474_v25 }
 0xacc   :  { %v4812_v62 = vadd.f32 %v4811_v4, %v10478_v43 }
 0xace   :  { %v4813_v32 = vadd.f32 %v4812_v62, %v10482_v47 }
 0xad0   :  { %4814 = vadd.xlane.f32.xlu0 %v4813_v32 }
 0xb3f   :  { %v4628_v41 = vpop.xlane.xlu0 %4627 }
 0xb40   :  { %v4629_v14 = vrot.slane %v4628_v41, 4 }
 0xb42   :  { %v4630_v35 = vadd.f32 %v4629_v14, %v4628_v41 }
 0xb44   :  { %v4631_v22 = vrot.slane %v4630_v35, 2 }
 0xb46   :  { %v4632_v23 = vadd.f32 %v4631_v22, %v4630_v35 }
 0xb48   :  { %v4633_v48 = vrot.slane %v4632_v23, 1 }
 0xb4a   :  { %v4634_v15 = vadd.f32 %v4633_v48, %v4632_v23 }
 0xb4c   :  { %7352 = vpush %v4634_v15 }
 0xb7d   :  { %s7353_s10 = spop %7352 }
 0xb7e   :  { %s10486_s5 = smul.f32 8.138021e-05, %s7353_s10 }
 0xb80   :  { %v4637_v16 = vstv %s10486_s5  ;;  %s4694_s6 = smul.f32 4096.0, %s10486_s5 }
 0xb81   :  { %v10490_v57 = vsub.f32 %v10268_v19, %v4637_v16  ;;  %v10493_v9 = vsub.f32 %v10271_v53, %v4637_v16  ;;  %v10496_v34 = vsub.f32 %v10278_v17, %v4637_v16  ;;  %v10503_v54 = vsub.f32 %v10289_v2, %v4637_v16 }
 0xb82   :  { %v10506_v60 = vsub.f32 %v10296_v36, %v4637_v16  ;;  %v10511_v46 = vsub.f32 %v10299_v27, %v4637_v16  ;;  %v10516_v18 = vsub.f32 %v10305_v40, %v4637_v16  ;;  %v10521_v36 = vsub.f32 %v10317_v10, %v4637_v16  ;;  %s4695_s23 = smul.f32 %s4694_s6, %s10486_s5 }
 0xb83   :  { %v4654_v59 = vmul.f32 %v10490_v57, %v10490_v57  ;;  %v4655_v0 = vmul.f32 %v10493_v9, %v10493_v9  ;;  %v4656_v19 = vmul.f32 %v10496_v34, %v10496_v34  ;;  %v4657_v17 = vmul.f32 %v10503_v54, %v10503_v54 }
 0xb84   :  { %v4658_v2 = vmul.f32 %v10506_v60, %v10506_v60  ;;  %v4659_v29 = vmul.f32 %v10511_v46, %v10511_v46  ;;  %v10526_v27 = vsub.f32 %v10324_v63, %v4637_v16  ;;  %v4660_v50 = vmul.f32 %v10516_v18, %v10516_v18 }
 0xb85   :  { %v4670_v53 = vadd.f32 %v4655_v0, %v4654_v59  ;;  %v10531_v40 = vsub.f32 %v10327_v51, %v4637_v16  ;;  %v4661_v45 = vmul.f32 %v10521_v36, %v10521_v36  ;;  %v10536_v10 = vsub.f32 %v10333_v5, %v4637_v16 }
 0xb86   :  { %v4662_v62 = vmul.f32 %v10526_v27, %v10526_v27  ;;  %v10541_v63 = vsub.f32 %v10345_v28, %v4637_v16  ;;  %v10546_v51 = vsub.f32 %v10351_v49, %v4637_v16  ;;  %v10551_v5 = vsub.f32 %v10355_v37, %v4637_v16 }
 0xb87   :  { %v4671_v6 = vadd.f32 %v4670_v53, %v4656_v19  ;;  %v4663_v41 = vmul.f32 %v10531_v40, %v10531_v40  ;;  %v4664_v35 = vmul.f32 %v10536_v10, %v10536_v10  ;;  %v10556_v28 = vsub.f32 %v10373_v56, %v4637_v16 }
 0xb88   :  { %v4665_v23 = vmul.f32 %v10541_v63, %v10541_v63  ;;  %v4666_v15 = vmul.f32 %v10546_v51, %v10546_v51  ;;  %v10561_v49 = vsub.f32 %v10382_v58, %v4637_v16  ;;  %v4667_v0 = vmul.f32 %v10551_v5, %v10551_v5  ;;  %v7499_v58 = vld [vmem:[%s11525_s13 + $0x40] sm:$0xff]   ;;  %v7500_v16 = vld [vmem:[%s11525_s13 + $0x8] sm:$0xff]  }
 0xb89   :  { %v4672_v55 = vadd.f32 %v4671_v6, %v4657_v17  ;;  %v4668_v37 = vmul.f32 %v10556_v28, %v10556_v28  ;;  %7184 = vmatprep.subr.bf16.mxu1 %v7499_v58 }
 0xb8a   :  { %v4669_v17 = vmul.f32 %v10561_v49, %v10561_v49  ;;  %7185 = vmatpush3.bf16.msra.mxu1 %v7499_v58 }
 0xb8b   :  { %v4673_v24 = vadd.f32 %v4672_v55, %v4658_v2  ;;  %v7498_v2 = vld [vmem:[%s11525_s13] sm:$0xff]   ;;  %v7501_v55 = vld [vmem:[%s11525_s13 + $0x48] sm:$0xff]  }
 0xb8c   :  { %7136 = vmatprep.subr.bf16.mxu0 %v7498_v2  ;;  %7186 = vmatprep.subr.bf16.mxu1 %v7501_v55 }
 0xb8d   :  { %v4674_v12 = vadd.f32 %v4673_v24, %v4659_v29  ;;  %7137 = vmatpush3.bf16.msra.mxu0 %v7498_v2  ;;  %v7502_v29 = vld [vmem:[%s11525_s13 + $0x10] sm:$0xff]  }
 0xb8e   :  { %7138 = vmatprep.subr.bf16.mxu0 %v7500_v16  ;;  %v7503_v24 = vld [vmem:[%s11525_s13 + $0x50] sm:$0xff]   ;;  %7187 = vmatpush3.bf16.msra.mxu1 %v7501_v55 }
 0xb8f   :  { %v4675_v4 = vadd.f32 %v4674_v12, %v4660_v50  ;;  %v7504_v50 = vld [vmem:[%s11525_s13 + $0x18] sm:$0xff]   ;;  %7188 = vmatprep.subr.bf16.mxu1 %v7503_v24 }
 0xb90   :  { %v7505_v12 = vld [vmem:[%s11525_s13 + $0x58] sm:$0xff]  }
 0xb91   :  { %v4676_v32 = vadd.f32 %v4675_v4, %v4661_v45  ;;  %7139 = vmatpush3.bf16.msra.mxu0 %v7500_v16  ;;  %v7506_v45 = vld [vmem:[%s11525_s13 + $0x20] sm:$0xff]  }
 0xb92   :  { %7140 = vmatprep.subr.bf16.mxu0 %v7502_v29  ;;  %v7507_v4 = vld [vmem:[%s11525_s13 + $0x60] sm:$0xff]   ;;  %7189 = vmatpush3.bf16.msra.mxu1 %v7503_v24 }
 0xb93   :  { %v4677_v14 = vadd.f32 %v4676_v32, %v4662_v62  ;;  %7190 = vmatprep.subr.bf16.mxu1 %v7505_v12  ;;  %v7508_v62 = vld [vmem:[%s11525_s13 + $0x28] sm:$0xff]   ;;  %v10622_v24 = vld [vmem:[%s11526_s11] sm:$0xff]  }
 0xb94   :  { %v7509_v32 = vld [vmem:[%s11525_s13 + $0x68] sm:$0xff]  }
 0xb95   :  { %v4678_v22 = vadd.f32 %v4677_v14, %v4663_v41  ;;  %7141 = vmatpush3.bf16.msra.mxu0 %v7502_v29 }
 0xb96   :  { %7142 = vmatprep.subr.bf16.mxu0 %v7504_v50  ;;  %7191 = vmatpush3.bf16.msra.mxu1 %v7505_v12  ;;  %v10632_v12 = vld [vmem:[%s11526_s11 + $0x8] sm:$0xff]  }
 0xb97   :  { %v4679_v48 = vadd.f32 %v4678_v22, %v4664_v35  ;;  %7192 = vmatprep.subr.bf16.mxu1 %v7507_v4 }
 0xb99   :  { %v4680_v59 = vadd.f32 %v4679_v48, %v4665_v23  ;;  %7143 = vmatpush3.bf16.msra.mxu0 %v7504_v50  ;;  %v7510_v23 = vld [vmem:[%s11525_s13 + $0x30] sm:$0xff]   ;;  %v10627_v50 = vld [vmem:[%s11527_s12] sm:$0xff]  }
 0xb9a   :  { %7144 = vmatprep.subr.bf16.mxu0 %v7506_v45  ;;  %7193 = vmatpush3.bf16.msra.mxu1 %v7507_v4  ;;  %v7511_v48 = vld [vmem:[%s11525_s13 + $0x70] sm:$0xff]  }
 0xb9b   :  { %v4681_v19 = vadd.f32 %v4680_v59, %v4666_v15  ;;  %7194 = vmatprep.subr.bf16.mxu1 %v7509_v32  ;;  %v7512_v15 = vld [vmem:[%s11525_s13 + $0x38] sm:$0xff]   ;;  %v10642_v4 = vld [vmem:[%s11526_s11 + $0x10] sm:$0xff]  }
 0xb9d   :  { %v4682_v53 = vadd.f32 %v4681_v19, %v4667_v0  ;;  %7145 = vmatpush3.bf16.msra.mxu0 %v7506_v45  ;;  %v7513_v0 = vld [vmem:[%s11525_s13 + $0x78] sm:$0xff]   ;;  %v10637_v45 = vld [vmem:[%s11527_s12 + $0x8] sm:$0xff]  }
 0xb9e   :  { %7146 = vmatprep.subr.bf16.mxu0 %v7508_v62  ;;  %7195 = vmatpush3.bf16.msra.mxu1 %v7509_v32  ;;  %v11613_v32 = vunpack.c.h.bf16 %v10622_v24 }
 0xb9f   :  { %v4683_v56 = vadd.f32 %v4682_v53, %v4668_v37  ;;  %7196 = vmatprep.subr.bf16.mxu1 %v7511_v48  ;;  %v4815_v53 = vpop.xlane.xlu0 %4814 }
 0xba1   :  { %v4684_v6 = vadd.f32 %v4683_v56, %v4669_v17  ;;  %7147 = vmatpush3.bf16.msra.mxu0 %v7508_v62  ;;  %v4816_v17 = vrot.slane %v4815_v53, 4  ;;  %v11640_v62 = vunpack.c.l.bf16 %v10622_v24 }
 0xba2   :  { %7148 = vmatprep.subr.bf16.mxu0 %v7510_v23  ;;  %7197 = vmatpush3.bf16.msra.mxu1 %v7511_v48  ;;  %v11627_v48 = vunpack.c.h.bf16 %v10632_v12 }
 0xba3   :  { %4685 = vadd.xlane.f32.xlu1 %v4684_v6  ;;  %7198 = vmatprep.subr.bf16.mxu1 %v7513_v0  ;;  %v4817_v56 = vadd.f32 %v4816_v17, %v4815_v53 }
 0xba5   :  { %7149 = vmatpush3.bf16.msra.mxu0 %v7510_v23  ;;  %v4818_v6 = vrot.slane %v4817_v56, 2  ;;  %v11612_v23 = vunpack.c.l.bf16 %v10632_v12 }
 0xba6   :  { %7150 = vmatprep.subr.bf16.mxu0 %v7512_v15  ;;  %7199 = vmatpush3.bf16.msra.mxu1 %v7513_v0  ;;  %v11624_v0 = vunpack.c.l.bf16 %v10642_v4 }
 0xba7   :  { %v4819_v58 = vadd.f32 %v4818_v6, %v4817_v56 }
 0xba9   :  { %7151 = vmatpush3.bf16.msra.mxu0 %v7512_v15  ;;  %v4820_v16 = vrot.slane %v4819_v58, 1  ;;  %v11616_v15 = vunpack.c.l.bf16 %v10637_v45 }
 0xbab   :  { %v4821_v29 = vadd.f32 %v4820_v16, %v4819_v58 }
 0xc30   :  { %v4686_v41 = vpop.xlane.xlu1 %4685 }
 0xc31   :  { %v4687_v14 = vrot.slane %v4686_v41, 4 }
 0xc33   :  { %v4688_v35 = vadd.f32 %v4687_v14, %v4686_v41  ;;  %v10649_v41 = vld [vmem:[%s11527_s12 + $0x10] sm:$0xff]   ;;  %v10654_v14 = vld [vmem:[%s11526_s11 + $0x18] sm:$0xff]  }
 0xc35   :  { %v4689_v22 = vrot.slane %v4688_v35, 2 }
 0xc37   :  { %v4690_v59 = vadd.f32 %v4689_v22, %v4688_v35  ;;  %v11617_v35 = vunpack.c.l.bf16 %v10627_v50  ;;  %v11615_v22 = vunpack.c.h.bf16 %v10627_v50 }
 0xc39   :  { %v4691_v19 = vrot.slane %v4690_v59, 1 }
 0xc3b   :  { %v4692_v37 = vadd.f32 %v4691_v19, %v4690_v59  ;;  %v11621_v59 = vunpack.c.h.bf16 %v10637_v45  ;;  %v11614_v19 = vunpack.c.h.bf16 %v10642_v4 }
 0xc3d   :  { %7354 = vpush %v4692_v37  ;;  %v10667_v37 = vld [vmem:[%s11526_s11 + $0x20] sm:$0xff]  }
 0xc3e   :  { %v11619_v56 = vunpack.c.l.bf16 %v10667_v37 }
 0xc6e   :  { %s7355_s27 = spop %7354 }
 0xc6f   :  { %s4696_s0 = ssub.f32 %s7355_s27, %s4695_s23 }
 0xc71   :  { %s4697_s29 = smul.f32 8.138021e-05, %s4696_s0 }
 0xc73   :  { %s4698_s2 = sadd.f32 1e-06, %s4697_s29 }
 0xc75   :  { %v4699_v2 = vstv %s4698_s2 }
 0xc76   :  { %7538 = vrsqrt.f32 %v4699_v2 }
 0xc80   :  { %v7539_v55 = vpop.eup %7538 }
 0xc81   :  { %7356 = vpush %v7539_v55 }
 0xc82   :  { %7358 = vpush %v4821_v29  ;;  %v11620_v29 = vunpack.c.h.bf16 %v10649_v41 }
 0xcb2   :  { %s7357_s22 = spop %7356 }
 0xcb3   :  { %v10669_v53 = vstv %s7357_s22  ;;  %s7359_s6 = spop %7358 }
 0xcb4   :  { %v4703_v2 = vmul.f32 %v10669_v53, %v10490_v57  ;;  %v4704_v58 = vmul.f32 %v10669_v53, %v10493_v9  ;;  %v4705_v16 = vmul.f32 %v10669_v53, %v10496_v34  ;;  %v4706_v55 = vmul.f32 %v10669_v53, %v10503_v54  ;;  %v10697_v54 = vld [vmem:[%s11527_s12 + $0x18] sm:$0xff]   ;;  %s10740_s2 = smul.f32 8.138021e-05, %s7359_s6 }
 0xcb5   :  { %v4707_v17 = vmul.f32 %v10669_v53, %v10506_v60  ;;  %v4708_v6 = vmul.f32 %v10669_v53, %v10511_v46  ;;  %v4709_v60 = vmul.f32 %v10669_v53, %v10516_v18 }
 0xcb6   :  { %v4735_v57 = vmul.f32 %v11640_v62, %v4703_v2  ;;  %v4736_v9 = vmul.f32 %v11613_v32, %v4704_v58  ;;  %v4737_v34 = vmul.f32 %v11612_v23, %v4705_v16  ;;  %v4738_v46 = vmul.f32 %v11627_v48, %v4706_v55 }
 0xcb7   :  { %v4739_v2 = vmul.f32 %v11624_v0, %v4707_v17  ;;  %v4740_v58 = vmul.f32 %v11614_v19, %v4708_v6  ;;  %v4710_v16 = vmul.f32 %v10669_v53, %v10521_v36  ;;  %v11618_v55 = vunpack.c.h.bf16 %v10667_v37  ;;  %v10719_v17 = vld [vmem:[%s11527_s12 + $0x20] sm:$0xff]  }
 0xcb8   :  { %v4767_v23 = vadd.f32 %v11617_v35, %v4735_v57  ;;  %v4768_v32 = vadd.f32 %v11615_v22, %v4736_v9  ;;  %v4769_v18 = vadd.f32 %v11616_v15, %v4737_v34  ;;  %v4770_v36 = vadd.f32 %v11621_v59, %v4738_v46  ;;  %v10738_v46 = vld [vmem:[%s11526_s11 + $0x28] sm:$0xff]  }
 0xcb9   :  { %v11811_v6 = vunpack.c.l.bf16 %v10649_v41  ;;  %v4772_v57 = vadd.f32 %v11620_v29, %v4740_v58  ;;  %v11623_v9 = vunpack.c.l.bf16 %v10697_v54  ;;  %v11622_v34 = vunpack.c.h.bf16 %v10697_v54  ;;  %v10784_v29 = vld [vmem:[%s11527_s12 + $0x28] sm:$0xff]  }
 0xcba   :  { %v10728_v22 = vpack.c.bf16 %v4768_v32, %v4767_v23  ;;  %v4711_v15 = vmul.f32 %v10669_v53, %v10526_v27  ;;  %v4712_v35 = vmul.f32 %v10669_v53, %v10531_v40  ;;  %v11812_v32 = vunpack.c.l.bf16 %v10654_v14  ;;  %v10752_v40 = vld [vmem:[%s11526_s11 + $0x30] sm:$0xff]  }
 0xcbb   :  { %v4771_v19 = vadd.f32 %v11811_v6, %v4739_v2  ;;  %v10742_v2 = vpack.c.bf16 %v4770_v36, %v4769_v18  ;;  %v11813_v58 = vunpack.c.h.bf16 %v10654_v14  ;;  %v11626_v27 = vunpack.c.l.bf16 %v10719_v17 }
 0xcbc   :  { %v4741_v23 = vmul.f32 %v11812_v32, %v4709_v60  ;;  %7152 = vmatprep.mubr.bf16.mxu0 %v10728_v22  ;;  %7200 = vmatprep.mubr.bf16.mxu1 %v10728_v22  ;;  %v11625_v36 = vunpack.c.h.bf16 %v10719_v17  ;;  %v4743_v60 = vmul.f32 %v11619_v56, %v4711_v15  ;;  %v11633_v32 = vunpack.c.l.bf16 %v10738_v46 }
 0xcbd   :  { %v4742_v6 = vmul.f32 %v11813_v58, %v4710_v16  ;;  %v10756_v18 = vpack.c.bf16 %v4772_v57, %v4771_v19  ;;  %v4744_v16 = vmul.f32 %v11618_v55, %v4712_v35  ;;  %7153 = vmatmul.mubr.bf16.vlgmr.msra.gmra.mrb[192].mxu0 %v10742_v2  ;;  %7201 = vmatmul.mubr.bf16.vlgmr.msra.gmra.mrb[192].mxu1 %v10742_v2  ;;  %v11628_v19 = vunpack.c.h.bf16 %v10738_v46 }
 0xcbe   :  { %v4713_v57 = vmul.f32 %v10669_v53, %v10536_v10  ;;  %v4714_v15 = vmul.f32 %v10669_v53, %v10541_v63  ;;  %v11632_v35 = vunpack.c.l.bf16 %v10752_v40  ;;  %v10775_v58 = vstv %s10740_s2 }
 0xcbf   :  { %7156 = vmatprep.mubr.bf16.mxu0 %v10756_v18  ;;  %7204 = vmatprep.mubr.bf16.mxu1 %v10756_v18  ;;  %v4773_v55 = vadd.f32 %v11623_v9, %v4741_v23  ;;  %v4774_v56 = vadd.f32 %v11622_v34, %v4742_v6  ;;  %v11629_v10 = vunpack.c.h.bf16 %v10752_v40  ;;  %v4775_v63 = vadd.f32 %v11626_v27, %v4743_v60  ;;  %v10794_v23 = vld [vmem:[%s11527_s12 + $0x30] sm:$0xff]  }
 0xcc0   :  { %v4776_v59 = vadd.f32 %v11625_v36, %v4744_v16  ;;  %v4715_v6 = vmul.f32 %v10669_v53, %v10546_v51  ;;  %v4716_v34 = vmul.f32 %v10669_v53, %v10551_v5  ;;  %v11631_v9 = vunpack.c.l.bf16 %v10784_v29  ;;  %v10809_v36 = vld [vmem:[%s11526_s11 + $0x38] sm:$0xff]  }
 0xcc1   :  { %v11630_v0 = vunpack.c.h.bf16 %v10784_v29  ;;  %v4745_v60 = vmul.f32 %v11633_v32, %v4713_v57  ;;  %v4746_v16 = vmul.f32 %v11628_v19, %v4714_v15  ;;  %v10811_v27 = vpack.c.bf16 %v4774_v56, %v4773_v55 }
 0xcc2   :  { %v11639_v51 = vunpack.c.l.bf16 %v10794_v23  ;;  %v10816_v5 = vsub.f32 %v10376_v26, %v10775_v58  ;;  %v10820_v48 = vsub.f32 %v10379_v38, %v10775_v58  ;;  %v10822_v57 = vpack.c.bf16 %v4776_v59, %v4775_v63  ;;  %v10844_v63 = vld [vmem:[%s11527_s12 + $0x38] sm:$0xff]  }
 0xcc3   :  { %v11638_v15 = vunpack.c.h.bf16 %v10794_v23  ;;  %v4747_v19 = vmul.f32 %v11632_v35, %v4715_v6  ;;  %v4748_v56 = vmul.f32 %v11629_v10, %v4716_v34  ;;  %v11637_v26 = vunpack.c.l.bf16 %v10809_v36 }
 0xcc4   :  { %v4777_v38 = vadd.f32 %v11631_v9, %v4745_v60  ;;  %v4778_v59 = vadd.f32 %v11630_v0, %v4746_v16  ;;  %v11636_v55 = vunpack.c.h.bf16 %v10809_v36  ;;  %v4717_v34 = vmul.f32 %v10669_v53, %v10556_v28 }
 0xcc5   :  { %7157 = vmatmul.mubr.bf16.gmra.mrb[196].mxu0 %v10811_v27  ;;  %7205 = vmatmul.mubr.bf16.gmra.mrb[196].mxu1 %v10811_v27  ;;  %v4718_v6 = vmul.f32 %v10669_v53, %v10561_v49  ;;  %v10850_v10 = vsub.f32 %v10391_v42, %v10775_v58  ;;  %v4841_v60 = vmul.f32 %v10816_v5, %v10816_v5  ;;  %v11635_v42 = vunpack.c.l.bf16 %v10844_v63 }
 0xcc6   :  { %7160 = vmatprep.mubr.bf16.mxu0 %v10822_v57  ;;  %7208 = vmatprep.mubr.bf16.mxu1 %v10822_v57  ;;  %v4842_v16 = vmul.f32 %v10820_v48, %v10820_v48  ;;  %v4779_v28 = vadd.f32 %v11639_v51, %v4747_v19  ;;  %v4780_v0 = vadd.f32 %v11638_v15, %v4748_v56  ;;  %v11634_v53 = vunpack.c.h.bf16 %v10844_v63 }
 0xcc7   :  { %v10862_v9 = vsub.f32 %v10402_v11, %v10775_v58  ;;  %v10864_v49 = vpack.c.bf16 %v4778_v59, %v4777_v38  ;;  %v4749_v35 = vmul.f32 %v11637_v26, %v4717_v34  ;;  %v4750_v32 = vmul.f32 %v11636_v55, %v4718_v6 }
 0xcc8   :  { %v10874_v19 = vsub.f32 %v10409_v7, %v10775_v58  ;;  %v4843_v11 = vmul.f32 %v10850_v10, %v10850_v10  ;;  %v4857_v56 = vadd.f32 %v4842_v16, %v4841_v60  ;;  %v10878_v38 = vpack.c.bf16 %v4780_v0, %v4779_v28 }
 0xcc9   :  { %v10884_v59 = vsub.f32 %v10412_v8, %v10775_v58  ;;  %v4844_v34 = vmul.f32 %v10862_v9, %v10862_v9  ;;  %v4781_v7 = vadd.f32 %v11635_v42, %v4749_v35  ;;  %v4782_v0 = vadd.f32 %v11634_v53, %v4750_v32 }
 0xcca   :  { %v4858_v6 = vadd.f32 %v4857_v56, %v4843_v11  ;;  %v10896_v60 = vsub.f32 %v10418_v61, %v10775_v58  ;;  %v4845_v8 = vmul.f32 %v10874_v19, %v10874_v19  ;;  %v10902_v28 = vsub.f32 %v10430_v13, %v10775_v58 }
 0xccb   :  { %v4846_v11 = vmul.f32 %v10884_v59, %v10884_v59  ;;  %v10906_v35 = vpack.c.bf16 %v4782_v0, %v4781_v7  ;;  %v10910_v32 = vsub.f32 %v10437_v44, %v10775_v58  ;;  %v10918_v13 = vsub.f32 %v10440_v3, %v10775_v58 }
 0xccc   :  { %v4859_v16 = vadd.f32 %v4858_v6, %v4844_v34  ;;  %v4847_v61 = vmul.f32 %v10896_v60, %v10896_v60  ;;  %v4848_v34 = vmul.f32 %v10902_v28, %v10902_v28  ;;  %v10924_v44 = vsub.f32 %v10444_v1, %v10775_v58 }
 0xccd   :  { %7161 = vmatmul.mubr.bf16.gmra.mrb[200].mxu0 %v10864_v49  ;;  %7209 = vmatmul.mubr.bf16.gmra.mrb[200].mxu1 %v10864_v49  ;;  %v4849_v7 = vmul.f32 %v10910_v32, %v10910_v32  ;;  %v4850_v3 = vmul.f32 %v10918_v13, %v10918_v13 }
 0xcce   :  { %7164 = vmatprep.mubr.bf16.mxu0 %v10878_v38  ;;  %7212 = vmatprep.mubr.bf16.mxu1 %v10878_v38  ;;  %v4860_v56 = vadd.f32 %v4859_v16, %v4845_v8  ;;  %v10930_v8 = vsub.f32 %v10463_v39, %v10775_v58  ;;  %v4851_v1 = vmul.f32 %v10924_v44, %v10924_v44 }
 0xcd0   :  { %v4861_v53 = vadd.f32 %v4860_v56, %v4846_v11  ;;  %v10936_v11 = vsub.f32 %v10470_v30, %v10775_v58  ;;  %v10942_v56 = vsub.f32 %v10474_v25, %v10775_v58  ;;  %v4852_v39 = vmul.f32 %v10930_v8, %v10930_v8 }
 0xcd2   :  { %v4862_v6 = vadd.f32 %v4861_v53, %v4847_v61  ;;  %v4853_v30 = vmul.f32 %v10936_v11, %v10936_v11  ;;  %v4854_v25 = vmul.f32 %v10942_v56, %v10942_v56 }
 0xcd4   :  { %v4863_v0 = vadd.f32 %v4862_v6, %v4848_v34  ;;  %v10948_v34 = vsub.f32 %v10478_v43, %v10775_v58 }
 0xcd5   :  { %7165 = vmatmul.mubr.bf16.gmra.mrb[204].mxu0 %v10906_v35  ;;  %7213 = vmatmul.mubr.bf16.gmra.mrb[204].mxu1 %v10906_v35 }
 0xcd6   :  { %v4864_v16 = vadd.f32 %v4863_v0, %v4849_v7  ;;  %v10954_v7 = vsub.f32 %v10482_v47, %v10775_v58  ;;  %v7515_v47 = vld [vmem:[%s11525_s13 + $0x88] sm:$0xff]   ;;  %v7516_v58 = vld [vmem:[%s11525_s13 + $0x90] sm:$0xff]  }
 0xcd8   :  { %v4865_v53 = vadd.f32 %v4864_v16, %v4850_v3  ;;  %v4855_v3 = vmul.f32 %v10948_v34, %v10948_v34  ;;  %v4856_v43 = vmul.f32 %v10954_v7, %v10954_v7 }
 0xcda   :  { %v4866_v61 = vadd.f32 %v4865_v53, %v4851_v1 }
 0xcdc   :  { %v4867_v6 = vadd.f32 %v4866_v61, %v4852_v39  ;;  %v7514_v39 = vld [vmem:[%s11525_s13 + $0x80] sm:$0xff]  }
 0xcdd   :  { %7232 = vmatprep.subr.bf16.mxu0 %v7514_v39 }
 0xcde   :  { %v4868_v0 = vadd.f32 %v4867_v6, %v4853_v30  ;;  %7233 = vmatpush3.bf16.msra.mxu0 %v7514_v39 }
 0xcdf   :  { %7234 = vmatprep.subr.bf16.mxu0 %v7515_v47 }
 0xce0   :  { %v4869_v16 = vadd.f32 %v4868_v0, %v4854_v25  ;;  %v7517_v25 = vld [vmem:[%s11525_s13 + $0x98] sm:$0xff]  }
 0xce2   :  { %v4870_v1 = vadd.f32 %v4869_v16, %v4855_v3  ;;  %7235 = vmatpush3.bf16.msra.mxu0 %v7515_v47 }
 0xce3   :  { %7236 = vmatprep.subr.bf16.mxu0 %v7516_v58 }
 0xce4   :  { %v4871_v53 = vadd.f32 %v4870_v1, %v4856_v43  ;;  %v7518_v1 = vld [vmem:[%s11525_s13 + $0xa0] sm:$0xff]  }
 0xce6   :  { %4872 = vadd.xlane.f32.xlu1 %v4871_v53  ;;  %7237 = vmatpush3.bf16.msra.mxu0 %v7516_v58  ;;  %v7519_v53 = vld [vmem:[%s11525_s13 + $0xa8] sm:$0xff]  }
 0xce7   :  { %7238 = vmatprep.subr.bf16.mxu0 %v7517_v25 }
 0xcea   :  { %7239 = vmatpush3.bf16.msra.mxu0 %v7517_v25 }
 0xceb   :  { %7240 = vmatprep.subr.bf16.mxu0 %v7518_v1 }
 0xcee   :  { %7241 = vmatpush3.bf16.msra.mxu0 %v7518_v1 }
 0xcef   :  { %7242 = vmatprep.subr.bf16.mxu0 %v7519_v53 }
 0xcf2   :  { %7243 = vmatpush3.bf16.msra.mxu0 %v7519_v53 }
 0xd73   :  { %v4873_v61 = vpop.xlane.xlu1 %4872 }
 0xd74   :  { %v4874_v30 = vrot.slane %v4873_v61, 4 }
 0xd76   :  { %v4875_v6 = vadd.f32 %v4874_v30, %v4873_v61 }
 0xd78   :  { %v4876_v0 = vrot.slane %v4875_v6, 2 }
 0xd7a   :  { %v4877_v3 = vadd.f32 %v4876_v0, %v4875_v6 }
 0xd7c   :  { %v4878_v16 = vrot.slane %v4877_v3, 1 }
 0xd7e   :  { %v4879_v43 = vadd.f32 %v4878_v16, %v4877_v3 }
 0xd80   :  { %7360 = vpush %v4879_v43  ;;  %v7520_v43 = vld [vmem:[%s11525_s13 + $0xb0] sm:$0xff]  }
 0xd81   :  { %7244 = vmatprep.subr.bf16.mxu0 %v7520_v43 }
 0xd82   :  { %7245 = vmatpush3.bf16.msra.mxu0 %v7520_v43 }
 0xd90   :  { %v7154_v39 = vpop.f32.mrb[192].mxu0  ;;  %v7202_v47 = vpop.f32.mrb[192].mxu1 }
 0xd91   :  { %v10980_v58 = vpop.f32.mrb[193].mxu0  ;;  %v10982_v61 = vpop.f32.mrb[193].mxu1  ;;  %v5213_v25 = vrot.slane %v7154_v39, 7 }
 0xd92   :  { %11814 = vst [vmem:[#allocation22_spill] sm:$0xff] %v10980_v58  ;;  %11815 = vst [vmem:[#allocation23_spill] sm:$0xff] %v10982_v61  ;;  %v7155_v30 = vpop.f32.mrb[194].mxu0  ;;  %v7203_v6 = vpop.f32.mrb[194].mxu1  ;;  %v11641_v1 = vrot.slane %v10980_v58, 7 }
 0xd93   :  { %v5214_v0 = vrot.slane %v7155_v30, 7  ;;  %v5087_v3 = vpop.f32.mrb[195].mxu0  ;;  %v5392_v16 = vpop.f32.mrb[195].mxu1 }
 0xd94   :  { %v5212_v42 = vrot.slane %v5087_v3, 7 }
 0xd95   :  { %v5271_v53 = vsel %vm1201_vm1, %v5213_v25, %v5214_v0 }
 0xd96   :  { %v10990_v55 = vadd.f32 %v7203_v6, %v5271_v53  ;;  %v5272_v26 = vsel %vm1201_vm1, %v5212_v42, %v5213_v25  ;;  %v5273_v39 = vsel %vm1201_vm1, %v11641_v1, %v5212_v42  ;;  %v7521_v42 = vld [vmem:[%s11525_s13 + $0xb8] sm:$0xff]   ;;  %s4881_s13 = smul.f32 4096.0, %s10740_s2 }
 0xd97   :  { %v10998_v30 = vadd.f32 %v7202_v47, %v5272_v26  ;;  %v11000_v15 = vadd.f32 %v5392_v16, %v5273_v39  ;;  %7246 = vmatprep.subr.bf16.mxu0 %v7521_v42 }
 0xd98   :  { %11816 = vst [vmem:[#allocation24_spill] sm:$0xff] %v10990_v55  ;;  %v7158_v3 = vpop.f32.mrb[196].mxu0  ;;  %v7206_v51 = vpop.f32.mrb[196].mxu1  ;;  %7247 = vmatpush3.bf16.msra.mxu0 %v7521_v42  ;;  %s4882_s9 = smul.f32 %s4881_s13, %s10740_s2 }
 0xd99   :  { %11817 = vst [vmem:[#allocation25_spill] sm:$0xff] %v10998_v30  ;;  %11818 = vst [vmem:[#allocation26_spill] sm:$0xff] %v11000_v15  ;;  %v5100_v62 = vpop.f32.mrb[197].mxu0  ;;  %v5405_v21 = vpop.f32.mrb[197].mxu1  ;;  %v5217_v55 = vrot.slane %v7158_v3, 7 }
 0xd9a   :  { %v5215_v31 = vrot.slane %v5100_v62, 7  ;;  %v7159_v6 = vpop.f32.mrb[198].mxu0  ;;  %v7207_v53 = vpop.f32.mrb[198].mxu1 }
 0xd9b   :  { %v5218_v61 = vrot.slane %v7159_v6, 7  ;;  %v5103_v25 = vpop.f32.mrb[199].mxu0  ;;  %v5408_v52 = vpop.f32.mrb[199].mxu1 }
 0xd9c   :  { %v5270_v26 = vsel %vm1201_vm1, %v5214_v0, %v5215_v31  ;;  %v5216_v47 = vrot.slane %v5103_v25, 7 }
 0xd9d   :  { %v11007_v16 = vadd.f32 %v5405_v21, %v5270_v26  ;;  %v5267_v43 = vsel %vm1201_vm1, %v5217_v55, %v5218_v61 }
 0xd9e   :  { %v11011_v62 = vadd.f32 %v7207_v53, %v5267_v43  ;;  %v5268_v39 = vsel %vm1201_vm1, %v5216_v47, %v5217_v55  ;;  %v5269_v3 = vsel %vm1201_vm1, %v5215_v31, %v5216_v47 }
 0xd9f   :  { %11819 = vst [vmem:[#allocation27_spill] sm:$0xff] %v11007_v16  ;;  %v11017_v6 = vadd.f32 %v7206_v51, %v5268_v39  ;;  %v11019_v1 = vadd.f32 %v5408_v52, %v5269_v3 }
 0xda0   :  { %11820 = vst [vmem:[#allocation31_spill] sm:$0xff] %v11011_v62  ;;  %v7162_v0 = vpop.f32.mrb[200].mxu0  ;;  %v7210_v21 = vpop.f32.mrb[200].mxu1 }
 0xda1   :  { %v5116_v25 = vpop.f32.mrb[201].mxu0  ;;  %v5421_v26 = vpop.f32.mrb[201].mxu1  ;;  %v5221_v53 = vrot.slane %v7162_v0, 7 }
 0xda2   :  { %v5219_v16 = vrot.slane %v5116_v25, 7  ;;  %v7163_v15 = vpop.f32.mrb[202].mxu0  ;;  %v7211_v30 = vpop.f32.mrb[202].mxu1 }
 0xda3   :  { %v5222_v43 = vrot.slane %v7163_v15, 7  ;;  %v5119_v62 = vpop.f32.mrb[203].mxu0  ;;  %v5424_v58 = vpop.f32.mrb[203].mxu1 }
 0xda4   :  { %v5266_v55 = vsel %vm1201_vm1, %v5218_v61, %v5219_v16  ;;  %v5220_v31 = vrot.slane %v5119_v62, 7 }
 0xda5   :  { %v11023_v42 = vadd.f32 %v5421_v26, %v5266_v55  ;;  %v5263_v52 = vsel %vm1201_vm1, %v5221_v53, %v5222_v43 }
 0xda6   :  { %v11027_v51 = vadd.f32 %v7211_v30, %v5263_v52  ;;  %v5264_v47 = vsel %vm1201_vm1, %v5220_v31, %v5221_v53  ;;  %v5265_v39 = vsel %vm1201_vm1, %v5219_v16, %v5220_v31 }
 0xda7   :  { %11821 = vst [vmem:[#allocation28_spill] sm:$0xff] %v11023_v42  ;;  %v11033_v15 = vadd.f32 %v7210_v21, %v5264_v47  ;;  %v11035_v3 = vadd.f32 %v5424_v58, %v5265_v39 }
 0xda8   :  { %11822 = vst [vmem:[#allocation29_spill] sm:$0xff] %v11027_v51  ;;  %v7166_v0 = vpop.f32.mrb[204].mxu0  ;;  %v7214_v61 = vpop.f32.mrb[204].mxu1 }
 0xda9   :  { %v5132_v62 = vpop.f32.mrb[205].mxu0  ;;  %v5437_v25 = vpop.f32.mrb[205].mxu1  ;;  %v5225_v52 = vrot.slane %v7166_v0, 7 }
 0xdaa   :  { %v5223_v26 = vrot.slane %v5132_v62, 7  ;;  %v11037_v55 = vpop.f32.mrb[206].mxu0  ;;  %v7215_v30 = vpop.f32.mrb[206].mxu1 }
 0xdab   :  { %v11643_v53 = vrot.slane %v11037_v55, 7  ;;  %v5135_v51 = vpop.f32.mrb[207].mxu0  ;;  %v5440_v42 = vpop.f32.mrb[207].mxu1 }
 0xdac   :  { %v5262_v16 = vsel %vm1201_vm1, %v5222_v43, %v5223_v26  ;;  %v5224_v58 = vrot.slane %v5135_v51, 7 }
 0xdad   :  { %v11042_v21 = vadd.f32 %v5437_v25, %v5262_v16  ;;  %v5259_v31 = vsel %vm1201_vm1, %v5225_v52, %v11643_v53 }
 0xdae   :  { %v11048_v47 = vadd.f32 %v7215_v30, %v5259_v31  ;;  %v5260_v39 = vsel %vm1201_vm1, %v5224_v58, %v5225_v52  ;;  %v5261_v0 = vsel %vm1201_vm1, %v5223_v26, %v5224_v58  ;;  %v7522_v30 = vld [vmem:[%s11528_s14] sm:$0xff]  }
 0xdaf   :  { %v11055_v62 = vadd.f32 %v7214_v61, %v5260_v39  ;;  %v11057_v43 = vadd.f32 %v5440_v42, %v5261_v0  ;;  %v7523_v61 = vld [vmem:[%s11528_s14 + $0x8] sm:$0xff]   ;;  %7280 = vmatprep.subr.bf16.mxu1 %v7522_v30  ;;  %v11825_v0 = vunpack.c.l.bf16 %v10622_v24 }
 0xdb0   :  { %11823 = vst [vmem:[#allocation30_spill] sm:$0xff] %v11048_v47  ;;  %7281 = vmatpush3.bf16.msra.mxu1 %v7522_v30 }
 0xdb1   :  { %11824 = vst [vmem:[#allocation32_spill] sm:$0xff] %v11057_v43  ;;  %s7361_s1 = spop %7360  ;;  %7282 = vmatprep.subr.bf16.mxu1 %v7523_v61 }
 0xdb2   :  { %s4883_s5 = ssub.f32 %s7361_s1, %s4882_s9 }
 0xdb4   :  { %s4884_s17 = smul.f32 8.138021e-05, %s4883_s5  ;;  %7283 = vmatpush3.bf16.msra.mxu1 %v7523_v61  ;;  %v11827_v61 = vunpack.c.l.bf16 %v10632_v12 }
 0xdb6   :  { %s4885_s18 = sadd.f32 1e-06, %s4884_s17 }
 0xdb8   :  { %v4886_v51 = vstv %s4885_s18 }
 0xdb9   :  { %7540 = vrsqrt.f32 %v4886_v51 }
 0xdc3   :  { %v7541_v25 = vpop.eup %7540 }
 0xdc4   :  { %7362 = vpush %v7541_v25  ;;  %v11826_v25 = vunpack.c.h.bf16 %v10622_v24 }
 0xdf5   :  { %s7363_s2 = spop %7362 }
 0xdf6   :  { %v4889_v42 = vstv %s7363_s2 }
 0xdf7   :  { %v4890_v26 = vmul.f32 %v4889_v42, %v10816_v5  ;;  %v4891_v52 = vmul.f32 %v4889_v42, %v10820_v48  ;;  %v4892_v16 = vmul.f32 %v4889_v42, %v10850_v10  ;;  %v4893_v58 = vmul.f32 %v4889_v42, %v10862_v9 }
 0xdf8   :  { %v4894_v31 = vmul.f32 %v4889_v42, %v10874_v19  ;;  %v4895_v39 = vmul.f32 %v4889_v42, %v10884_v59  ;;  %v11828_v5 = vunpack.c.h.bf16 %v10632_v12  ;;  %v11829_v10 = vunpack.c.l.bf16 %v10642_v4 }
 0xdf9   :  { %v4906_v51 = vmul.f32 %v11825_v0, %v4890_v26  ;;  %v4907_v30 = vmul.f32 %v11826_v25, %v4891_v52  ;;  %v4908_v53 = vmul.f32 %v11827_v61, %v4892_v16  ;;  %v11830_v9 = vunpack.c.h.bf16 %v10642_v4 }
 0xdfa   :  { %v4909_v48 = vmul.f32 %v11828_v5, %v4893_v58  ;;  %v4910_v47 = vmul.f32 %v11829_v10, %v4894_v31  ;;  %v4896_v59 = vmul.f32 %v4889_v42, %v10896_v60  ;;  %v4897_v43 = vmul.f32 %v4889_v42, %v10902_v28 }
 0xdfb   :  { %v4911_v19 = vmul.f32 %v11830_v9, %v4895_v39  ;;  %v11831_v26 = vunpack.c.l.bf16 %v10627_v50  ;;  %v11832_v52 = vunpack.c.h.bf16 %v10627_v50  ;;  %v11833_v16 = vunpack.c.l.bf16 %v10637_v45 }
 0xdfc   :  { %v11834_v58 = vunpack.c.h.bf16 %v10637_v45  ;;  %v11835_v31 = vunpack.c.l.bf16 %v10649_v41  ;;  %v11836_v39 = vunpack.c.h.bf16 %v10649_v41  ;;  %v4898_v5 = vmul.f32 %v4889_v42, %v10910_v32 }
 0xdfd   :  { %v4922_v24 = vadd.f32 %v11831_v26, %v4906_v51  ;;  %v4923_v0 = vadd.f32 %v11832_v52, %v4907_v30  ;;  %v4924_v12 = vadd.f32 %v11833_v16, %v4908_v53  ;;  %v4899_v51 = vmul.f32 %v4889_v42, %v10918_v13 }
 0xdfe   :  { %v4925_v25 = vadd.f32 %v11834_v58, %v4909_v48  ;;  %v4926_v4 = vadd.f32 %v11835_v31, %v4910_v47  ;;  %v4927_v60 = vadd.f32 %v11836_v39, %v4911_v19  ;;  %v11837_v50 = vunpack.c.l.bf16 %v10654_v14 }
 0xdff   :  { %v4938_v61 = vpack.c.bf16 %v4923_v0, %v4922_v24  ;;  %v11838_v53 = vunpack.c.h.bf16 %v10654_v14  ;;  %v11839_v47 = vunpack.c.l.bf16 %v10667_v37  ;;  %v11840_v41 = vunpack.c.h.bf16 %v10667_v37 }
 0xe00   :  { %v4939_v28 = vpack.c.bf16 %v4925_v25, %v4924_v12  ;;  %v4912_v30 = vmul.f32 %v11837_v50, %v4896_v59  ;;  %v4940_v45 = vpack.c.bf16 %v4927_v60, %v4926_v4  ;;  %v11841_v32 = vunpack.c.l.bf16 %v10697_v54 }
 0xe01   :  { %v4913_v10 = vmul.f32 %v11838_v53, %v4897_v43  ;;  %7168 = vmatprep.mubr.bf16.mxu0 %v4938_v61  ;;  %7216 = vmatprep.mubr.bf16.mxu1 %v4938_v61  ;;  %v4914_v48 = vmul.f32 %v11839_v47, %v4898_v5  ;;  %v4915_v9 = vmul.f32 %v11840_v41, %v4899_v51  ;;  %v11842_v19 = vunpack.c.h.bf16 %v10697_v54 }
 0xe02   :  { %7169 = vmatmul.mubr.bf16.gmra.mrb[208].mxu0 %v4939_v28  ;;  %7217 = vmatmul.mubr.bf16.gmra.mrb[208].mxu1 %v4939_v28  ;;  %v4928_v13 = vadd.f32 %v11841_v32, %v4912_v30  ;;  %v4900_v43 = vmul.f32 %v4889_v42, %v10924_v44  ;;  %v4901_v59 = vmul.f32 %v4889_v42, %v10930_v8  ;;  %v11843_v26 = vunpack.c.l.bf16 %v10719_v17 }
 0xe03   :  { %7172 = vmatprep.mubr.bf16.mxu0 %v4940_v45  ;;  %7220 = vmatprep.mubr.bf16.mxu1 %v4940_v45  ;;  %v4929_v14 = vadd.f32 %v11842_v19, %v4913_v10  ;;  %v11844_v37 = vunpack.c.h.bf16 %v10719_v17  ;;  %v4902_v0 = vmul.f32 %v4889_v42, %v10936_v11  ;;  %v4903_v16 = vmul.f32 %v4889_v42, %v10942_v56 }
 0xe04   :  { %v4930_v24 = vadd.f32 %v11843_v26, %v4914_v48  ;;  %v11845_v58 = vunpack.c.l.bf16 %v10738_v46  ;;  %v11846_v54 = vunpack.c.h.bf16 %v10738_v46  ;;  %v11847_v8 = vunpack.c.l.bf16 %v10752_v40 }
 0xe05   :  { %v4931_v52 = vadd.f32 %v11844_v37, %v4915_v9  ;;  %v4941_v12 = vpack.c.bf16 %v4929_v14, %v4928_v13  ;;  %v11848_v39 = vunpack.c.h.bf16 %v10752_v40  ;;  %v11849_v17 = vunpack.c.l.bf16 %v10784_v29 }
 0xe06   :  { %v4916_v25 = vmul.f32 %v11845_v58, %v4900_v43  ;;  %v4917_v31 = vmul.f32 %v11846_v54, %v4901_v59  ;;  %v4918_v4 = vmul.f32 %v11847_v8, %v4902_v0  ;;  %v11850_v56 = vunpack.c.h.bf16 %v10784_v29 }
 0xe07   :  { %v4942_v44 = vpack.c.bf16 %v4931_v52, %v4930_v24  ;;  %v4919_v60 = vmul.f32 %v11848_v39, %v4903_v16  ;;  %v4904_v46 = vmul.f32 %v4889_v42, %v10948_v34  ;;  %v4905_v51 = vmul.f32 %v4889_v42, %v10954_v7 }
 0xe08   :  { %v4932_v11 = vadd.f32 %v11849_v17, %v4916_v25  ;;  %v4933_v5 = vadd.f32 %v11850_v56, %v4917_v31  ;;  %v11851_v50 = vunpack.c.l.bf16 %v10794_v23  ;;  %v11852_v40 = vunpack.c.h.bf16 %v10794_v23 }
 0xe09   :  { %v11853_v47 = vunpack.c.l.bf16 %v10809_v36  ;;  %v11854_v41 = vunpack.c.h.bf16 %v10809_v36  ;;  %v11855_v29 = vunpack.c.l.bf16 %v10844_v63  ;;  %v11856_v7 = vunpack.c.h.bf16 %v10844_v63  ;;  %v7528_v36 = vld [vmem:[%s11528_s14 + $0x30] sm:$0xff]  }
 0xe0a   :  { %7173 = vmatmul.mubr.bf16.gmra.mrb[212].mxu0 %v4941_v12  ;;  %7221 = vmatmul.mubr.bf16.gmra.mrb[212].mxu1 %v4941_v12  ;;  %v4934_v30 = vadd.f32 %v11851_v50, %v4918_v4  ;;  %v4935_v53 = vadd.f32 %v11852_v40, %v4919_v60  ;;  %v4943_v10 = vpack.c.bf16 %v4933_v5, %v4932_v11  ;;  %v11857_v59 = vrot.slane %v11037_v55, 7 }
 0xe0b   :  { %7176 = vmatprep.mubr.bf16.mxu0 %v4942_v44  ;;  %7224 = vmatprep.mubr.bf16.mxu1 %v4942_v44  ;;  %v4920_v48 = vmul.f32 %v11853_v47, %v4904_v46  ;;  %v4921_v9 = vmul.f32 %v11854_v41, %v4905_v51 }
 0xe0c   :  { %v4944_v32 = vpack.c.bf16 %v4935_v53, %v4934_v30 }
 0xe0d   :  { %v4936_v34 = vadd.f32 %v11855_v29, %v4920_v48  ;;  %v4937_v42 = vadd.f32 %v11856_v7, %v4921_v9 }
 0xe0f   :  { %v4945_v23 = vpack.c.bf16 %v4937_v42, %v4936_v34 }
 0xe12   :  { %7177 = vmatmul.mubr.bf16.gmra.mrb[216].mxu0 %v4943_v10  ;;  %7225 = vmatmul.mubr.bf16.gmra.mrb[216].mxu1 %v4943_v10 }
 0xe13   :  { %7180 = vmatprep.mubr.bf16.mxu0 %v4944_v32  ;;  %7228 = vmatprep.mubr.bf16.mxu1 %v4944_v32 }
 0xe1a   :  { %7181 = vmatmul.mubr.bf16.gmra.mrb[220].mxu0 %v4945_v23  ;;  %7229 = vmatmul.mubr.bf16.gmra.mrb[220].mxu1 %v4945_v23 }
 0xe1b   :  { %7248 = vmatprep.mubr.bf16.mxu0 %v10728_v22  ;;  %v7524_v22 = vld [vmem:[%s11528_s14 + $0x10] sm:$0xff]  }
 0xe1c   :  { %7284 = vmatprep.subr.bf16.mxu1 %v7524_v22 }
 0xe1d   :  { %7285 = vmatpush3.bf16.msra.mxu1 %v7524_v22 }
 0xe22   :  { %7249 = vmatmul.mubr.bf16.vlgmr.msra.gmra.mrb[224].mxu0 %v10742_v2  ;;  %v7525_v2 = vld [vmem:[%s11528_s14 + $0x18] sm:$0xff]  }
 0xe23   :  { %7252 = vmatprep.mubr.bf16.mxu0 %v10756_v18  ;;  %7286 = vmatprep.subr.bf16.mxu1 %v7525_v2  ;;  %v7527_v18 = vld [vmem:[%s11528_s14 + $0x28] sm:$0xff]  }
 0xe24   :  { %7287 = vmatpush3.bf16.msra.mxu1 %v7525_v2 }
 0xe2a   :  { %7253 = vmatmul.mubr.bf16.gmra.mrb[228].mxu0 %v10811_v27  ;;  %v7526_v27 = vld [vmem:[%s11528_s14 + $0x20] sm:$0xff]  }
 0xe2b   :  { %7256 = vmatprep.mubr.bf16.mxu0 %v10822_v57  ;;  %7288 = vmatprep.subr.bf16.mxu1 %v7526_v27  ;;  %v7529_v57 = vld [vmem:[%s11528_s14 + $0x38] sm:$0xff]  }
 0xe2c   :  { %7289 = vmatpush3.bf16.msra.mxu1 %v7526_v27 }
 0xe2d   :  { %7290 = vmatprep.subr.bf16.mxu1 %v7527_v18 }
 0xe30   :  { %7291 = vmatpush3.bf16.msra.mxu1 %v7527_v18 }
 0xe31   :  { %7292 = vmatprep.subr.bf16.mxu1 %v7528_v36 }
 0xe32   :  { %7257 = vmatmul.mubr.bf16.gmra.mrb[232].mxu0 %v10864_v49 }
 0xe33   :  { %7260 = vmatprep.mubr.bf16.mxu0 %v10878_v38 }
 0xe34   :  { %7293 = vmatpush3.bf16.msra.mxu1 %v7528_v36 }
 0xe35   :  { %7294 = vmatprep.subr.bf16.mxu1 %v7529_v57 }
 0xe38   :  { %7295 = vmatpush3.bf16.msra.mxu1 %v7529_v57 }
 0xe3a   :  { %7261 = vmatmul.mubr.bf16.gmra.mrb[236].mxu0 %v10906_v35 }
 0xe3b   :  { %7264 = vmatprep.mubr.bf16.mxu0 %v4938_v61 }
 0xe42   :  { %7265 = vmatmul.mubr.bf16.gmra.mrb[240].mxu0 %v4939_v28 }
 0xe43   :  { %7268 = vmatprep.mubr.bf16.mxu0 %v4940_v45 }
 0xe4a   :  { %7269 = vmatmul.mubr.bf16.gmra.mrb[244].mxu0 %v4941_v12 }
 0xe4b   :  { %7272 = vmatprep.mubr.bf16.mxu0 %v4942_v44 }
 0xe52   :  { %7273 = vmatmul.mubr.bf16.gmra.mrb[248].mxu0 %v4943_v10 }
 0xe53   :  { %7276 = vmatprep.mubr.bf16.mxu0 %v4944_v32 }
 0xe5a   :  { %7277 = vmatmul.mubr.bf16.gmra.mrb[252].mxu0 %v4945_v23 }
 0xed5   :  { %v7170_v63 = vpop.f32.mrb[208].mxu0  ;;  %v7218_v49 = vpop.f32.mrb[208].mxu1 }
 0xed6   :  { %v5148_v38 = vpop.f32.mrb[209].mxu0  ;;  %v5453_v35 = vpop.f32.mrb[209].mxu1  ;;  %v5229_v13 = vrot.slane %v7170_v63, 7 }
 0xed7   :  { %v5227_v61 = vrot.slane %v5148_v38, 7  ;;  %v7171_v28 = vpop.f32.mrb[210].mxu0  ;;  %v7219_v45 = vpop.f32.mrb[210].mxu1 }
 0xed8   :  { %v5230_v19 = vrot.slane %v7171_v28, 7  ;;  %v5151_v14 = vpop.f32.mrb[211].mxu0  ;;  %v5456_v43 = vpop.f32.mrb[211].mxu1 }
 0xed9   :  { %v5258_v26 = vsel %vm1201_vm1, %v11857_v59, %v5227_v61  ;;  %v5228_v24 = vrot.slane %v5151_v14, 7 }
 0xeda   :  { %v5291_v37 = vmul.f32 %v11746_v20, %v5258_v26  ;;  %v5255_v52 = vsel %vm1201_vm1, %v5229_v13, %v5230_v19 }
 0xedb   :  { %v11179_v0 = vadd.f32 %v7219_v45, %v5255_v52  ;;  %v5256_v16 = vsel %vm1201_vm1, %v5228_v24, %v5229_v13  ;;  %v5257_v12 = vsel %vm1201_vm1, %v5227_v61, %v5228_v24 }
 0xedc   :  { %v11185_v58 = vadd.f32 %v5453_v35, %v5291_v37  ;;  %v11187_v55 = vadd.f32 %v7218_v49, %v5256_v16  ;;  %v11189_v25 = vadd.f32 %v5456_v43, %v5257_v12 }
 0xedd   :  { %v7174_v54 = vpop.f32.mrb[212].mxu0  ;;  %v7222_v31 = vpop.f32.mrb[212].mxu1 }
 0xede   :  { %v5164_v20 = vpop.f32.mrb[213].mxu0  ;;  %v5469_v44 = vpop.f32.mrb[213].mxu1  ;;  %v5233_v60 = vrot.slane %v7174_v54, 7 }
 0xedf   :  { %v5231_v8 = vrot.slane %v5164_v20, 7  ;;  %v7175_v4 = vpop.f32.mrb[214].mxu0  ;;  %v7223_v39 = vpop.f32.mrb[214].mxu1 }
 0xee0   :  { %v5234_v17 = vrot.slane %v7175_v4, 7  ;;  %v5167_v11 = vpop.f32.mrb[215].mxu0  ;;  %v5472_v56 = vpop.f32.mrb[215].mxu1  ;;  %v11860_v4 = vld [vmem:[#allocation6_spill] sm:$0xff] }
 0xee1   :  { %v5254_v5 = vsel %vm1201_vm1, %v5230_v19, %v5231_v8  ;;  %v5232_v46 = vrot.slane %v5167_v11, 7 }
 0xee2   :  { %v11193_v51 = vadd.f32 %v5469_v44, %v5254_v5  ;;  %v5251_v50 = vsel %vm1201_vm1, %v5233_v60, %v5234_v17 }
 0xee3   :  { %v11197_v30 = vadd.f32 %v7223_v39, %v5251_v50  ;;  %v5252_v40 = vsel %vm1201_vm1, %v5232_v46, %v5233_v60  ;;  %v5253_v53 = vsel %vm1201_vm1, %v5231_v8, %v5232_v46  ;;  %v11861_v50 = vld [vmem:[#allocation23_spill] sm:$0xff] }
 0xee4   :  { %v11203_v10 = vadd.f32 %v7222_v31, %v5252_v40  ;;  %v11205_v47 = vadd.f32 %v5472_v56, %v5253_v53  ;;  %v11858_v31 = vld [vmem:[#allocation22_spill] sm:$0xff] }
 0xee5   :  { %v7178_v48 = vpop.f32.mrb[216].mxu0  ;;  %v7226_v41 = vpop.f32.mrb[216].mxu1  ;;  %v11859_v20 = vrot.slane %v11858_v31, 7 }
 0xee6   :  { %v5180_v9 = vpop.f32.mrb[217].mxu0  ;;  %v5485_v32 = vpop.f32.mrb[217].mxu1  ;;  %v5237_v42 = vrot.slane %v7178_v48, 7 }
 0xee7   :  { %v5235_v29 = vrot.slane %v5180_v9, 7  ;;  %v7179_v34 = vpop.f32.mrb[218].mxu0  ;;  %v7227_v7 = vpop.f32.mrb[218].mxu1 }
 0xee8   :  { %v5238_v23 = vrot.slane %v7179_v34, 7  ;;  %v5183_v22 = vpop.f32.mrb[219].mxu0  ;;  %v5488_v2 = vpop.f32.mrb[219].mxu1 }
 0xee9   :  { %v5250_v27 = vsel %vm1201_vm1, %v5234_v17, %v5235_v29  ;;  %v5236_v18 = vrot.slane %v5183_v22, 7 }
 0xeea   :  { %v11209_v36 = vadd.f32 %v5485_v32, %v5250_v27  ;;  %v5247_v57 = vsel %vm1201_vm1, %v5237_v42, %v5238_v23 }
 0xeeb   :  { %v11213_v63 = vadd.f32 %v7227_v7, %v5247_v57  ;;  %v5248_v49 = vsel %vm1201_vm1, %v5236_v18, %v5237_v42  ;;  %v5249_v38 = vsel %vm1201_vm1, %v5235_v29, %v5236_v18  ;;  %v11862_v42 = vld [vmem:[#allocation25_spill] sm:$0xff]  ;;  %v11863_v18 = vld [vmem:[#allocation26_spill] sm:$0xff] }
 0xeec   :  { %v11219_v35 = vadd.f32 %v7226_v41, %v5248_v49  ;;  %v11221_v61 = vadd.f32 %v5488_v2, %v5249_v38 }
 0xeed   :  { %v7182_v28 = vpop.f32.mrb[220].mxu0  ;;  %v7230_v45 = vpop.f32.mrb[220].mxu1 }
 0xeee   :  { %v5196_v13 = vpop.f32.mrb[221].mxu0  ;;  %v5501_v19 = vpop.f32.mrb[221].mxu1  ;;  %v5241_v26 = vrot.slane %v7182_v28, 7 }
 0xeef   :  { %v5239_v14 = vrot.slane %v5196_v13, 7  ;;  %v7183_v43 = vpop.f32.mrb[222].mxu0  ;;  %v7231_v59 = vpop.f32.mrb[222].mxu1 }
 0xef0   :  { %v5242_v24 = vrot.slane %v7183_v43, 7  ;;  %v5199_v37 = vpop.f32.mrb[223].mxu0  ;;  %v5504_v52 = vpop.f32.mrb[223].mxu1 }
 0xef1   :  { %v5246_v16 = vsel %vm1201_vm1, %v5238_v23, %v5239_v14  ;;  %v5240_v12 = vrot.slane %v5199_v37, 7 }
 0xef2   :  { %v11225_v54 = vadd.f32 %v5501_v19, %v5246_v16  ;;  %v5274_v44 = vsel %vm1201_vm1, %v5242_v24, %v11859_v20  ;;  %v5243_v8 = vsel %vm1201_vm1, %v5241_v26, %v5242_v24  ;;  %v11864_v24 = vld [vmem:[#allocation24_spill] sm:$0xff] }
 0xef3   :  { %v5275_v39 = vmul.f32 %v11860_v4, %v5274_v44  ;;  %v11234_v60 = vadd.f32 %v7231_v59, %v5243_v8  ;;  %v5244_v17 = vsel %vm1201_vm1, %v5240_v12, %v5241_v26  ;;  %v5245_v11 = vsel %vm1201_vm1, %v5239_v14, %v5240_v12  ;;  %v11865_v44 = vld [vmem:[#allocation27_spill] sm:$0xff] }
 0xef4   :  { %v11240_v56 = vadd.f32 %v7230_v45, %v5244_v17  ;;  %v11242_v5 = vadd.f32 %v5504_v52, %v5245_v11 }
 0xef5   :  { %v7250_v46 = vpop.f32.mrb[224].mxu0  ;;  %v5390_v40 = vadd.f32 %v11861_v50, %v5275_v39 }
 0xef6   :  { %v11245_v53 = vpop.f32.mrb[225].mxu0  ;;  %v5743_v41 = vrot.slane %v7250_v46, 1 }
 0xef7   :  { %v7251_v48 = vpop.f32.mrb[226].mxu0  ;;  %v5741_v29 = vrot.slane %v11245_v53, 1 }
 0xef8   :  { %v5744_v9 = vrot.slane %v7251_v48, 1  ;;  %v5617_v32 = vpop.f32.mrb[227].mxu0 }
 0xef9   :  { %v5742_v34 = vrot.slane %v5617_v32, 1 }
 0xefa   :  { %v5801_v7 = vsel %vm1788_vm4, %v5743_v41, %v5744_v9 }
 0xefb   :  { %v5839_v23 = vadd.f32 %v5801_v7, %v11862_v42  ;;  %v5802_v22 = vsel %vm1788_vm4, %v5742_v34, %v5743_v41  ;;  %v5803_v2 = vsel %vm1788_vm4, %v5741_v29, %v5742_v34  ;;  %v11866_v34 = vld [vmem:[#allocation31_spill] sm:$0xff] }
 0xefc   :  { %v5837_v27 = vadd.f32 %v5803_v2, %v5390_v40  ;;  %v5838_v57 = vadd.f32 %v5802_v22, %v11863_v18  ;;  %v11867_v2 = vld [vmem:[#allocation28_spill] sm:$0xff] }
 0xefd   :  { %v7254_v49 = vpop.f32.mrb[228].mxu0 }
 0xefe   :  { %v5630_v38 = vpop.f32.mrb[229].mxu0  ;;  %v5869_v28 = vpack.c.bf16 %v5838_v57, %v5837_v27  ;;  %v5747_v19 = vrot.slane %v7254_v49, 1 }
 0xeff   :  { %v5745_v45 = vrot.slane %v5630_v38, 1  ;;  %v7255_v13 = vpop.f32.mrb[230].mxu0 }
 0xf00   :  { %v5748_v14 = vrot.slane %v7255_v13, 1  ;;  %v5633_v43 = vpop.f32.mrb[231].mxu0  ;;  %7296 = vmatprep.mubr.bf16.mxu1 %v5869_v28 }
 0xf01   :  { %v5800_v59 = vsel %vm1788_vm4, %v5744_v9, %v5745_v45  ;;  %v5746_v26 = vrot.slane %v5633_v43, 1 }
 0xf02   :  { %v5840_v37 = vadd.f32 %v5800_v59, %v11864_v24  ;;  %v5797_v52 = vsel %vm1788_vm4, %v5747_v19, %v5748_v14 }
 0xf03   :  { %v5798_v16 = vsel %vm1788_vm4, %v5746_v26, %v5747_v19  ;;  %v5799_v12 = vsel %vm1788_vm4, %v5745_v45, %v5746_v26  ;;  %v5843_v31 = vadd.f32 %v5797_v52, %v11017_v6  ;;  %v11868_v26 = vld [vmem:[#allocation29_spill] sm:$0xff] }
 0xf04   :  { %v5870_v20 = vpack.c.bf16 %v5840_v37, %v5839_v23  ;;  %v5841_v8 = vadd.f32 %v5799_v12, %v11865_v44  ;;  %v5842_v4 = vadd.f32 %v5798_v16, %v11019_v1 }
 0xf05   :  { %v7258_v39 = vpop.f32.mrb[232].mxu0 }
 0xf06   :  { %v5646_v17 = vpop.f32.mrb[233].mxu0  ;;  %7297 = vmatmul.mubr.bf16.vlgmr.msra.gmra.mrb[224].mxu1 %v5870_v20  ;;  %v5871_v11 = vpack.c.bf16 %v5842_v4, %v5841_v8  ;;  %v5751_v40 = vrot.slane %v7258_v39, 1 }
 0xf07   :  { %v5749_v46 = vrot.slane %v5646_v17, 1  ;;  %v7259_v50 = vpop.f32.mrb[234].mxu0 }
 0xf08   :  { %v5752_v48 = vrot.slane %v7259_v50, 1  ;;  %v5649_v41 = vpop.f32.mrb[235].mxu0  ;;  %7300 = vmatprep.mubr.bf16.mxu1 %v5871_v11 }
 0xf09   :  { %v5796_v9 = vsel %vm1788_vm4, %v5748_v14, %v5749_v46  ;;  %v5750_v32 = vrot.slane %v5649_v41, 1 }
 0xf0a   :  { %v5793_v6 = vsel %vm1788_vm4, %v5751_v40, %v5752_v48  ;;  %v5844_v7 = vadd.f32 %v5796_v9, %v11866_v34  ;;  %v11871_v34 = vld [vmem:[#allocation30_spill] sm:$0xff] }
 0xf0b   :  { %v5794_v1 = vsel %vm1788_vm4, %v5750_v32, %v5751_v40  ;;  %v5795_v42 = vsel %vm1788_vm4, %v5749_v46, %v5750_v32  ;;  %v5847_v23 = vadd.f32 %v5793_v6, %v11033_v15 }
 0xf0c   :  { %v5872_v22 = vpack.c.bf16 %v5844_v7, %v5843_v31  ;;  %v5845_v27 = vadd.f32 %v5795_v42, %v11867_v2  ;;  %v5846_v18 = vadd.f32 %v5794_v1, %v11035_v3  ;;  %v11869_v31 = vld [vmem:[#allocation32_spill] sm:$0xff] }
 0xf0d   :  { %v7262_v57 = vpop.f32.mrb[236].mxu0 }
 0xf0e   :  { %v5662_v49 = vpop.f32.mrb[237].mxu0  ;;  %7301 = vmatmul.mubr.bf16.gmra.mrb[228].mxu1 %v5872_v22  ;;  %v5873_v38 = vpack.c.bf16 %v5846_v18, %v5845_v27  ;;  %v5755_v13 = vrot.slane %v7262_v57, 1 }
 0xf0f   :  { %v5753_v28 = vrot.slane %v5662_v49, 1  ;;  %v7263_v45 = vpop.f32.mrb[238].mxu0 }
 0xf10   :  { %v5756_v19 = vrot.slane %v7263_v45, 1  ;;  %v5665_v14 = vpop.f32.mrb[239].mxu0  ;;  %7304 = vmatprep.mubr.bf16.mxu1 %v5873_v38 }
 0xf11   :  { %v5792_v43 = vsel %vm1788_vm4, %v5752_v48, %v5753_v28  ;;  %v5754_v59 = vrot.slane %v5665_v14, 1 }
 0xf12   :  { %v5789_v15 = vsel %vm1788_vm4, %v5755_v13, %v5756_v19  ;;  %v5848_v24 = vadd.f32 %v5792_v43, %v11868_v26 }
 0xf13   :  { %v5790_v3 = vsel %vm1788_vm4, %v5754_v59, %v5755_v13  ;;  %v5791_v37 = vsel %vm1788_vm4, %v5753_v28, %v5754_v59  ;;  %v5851_v52 = vadd.f32 %v5789_v15, %v11055_v62  ;;  %v11870_v62 = vld [vmem:[#allocation7_spill] sm:$0xff] }
 0xf14   :  { %v5874_v16 = vpack.c.bf16 %v5848_v24, %v5847_v23  ;;  %v5849_v12 = vadd.f32 %v5791_v37, %v11042_v21  ;;  %v5850_v20 = vadd.f32 %v5790_v3, %v11869_v31 }
 0xf15   :  { %v7266_v44 = vpop.f32.mrb[240].mxu0 }
 0xf16   :  { %v5678_v8 = vpop.f32.mrb[241].mxu0  ;;  %7305 = vmatmul.mubr.bf16.gmra.mrb[232].mxu1 %v5874_v16  ;;  %v5875_v4 = vpack.c.bf16 %v5850_v20, %v5849_v12  ;;  %v5759_v11 = vrot.slane %v7266_v44, 1 }
 0xf17   :  { %v5757_v39 = vrot.slane %v5678_v8, 1  ;;  %v7267_v17 = vpop.f32.mrb[242].mxu0 }
 0xf18   :  { %v5760_v46 = vrot.slane %v7267_v17, 1  ;;  %v5681_v50 = vpop.f32.mrb[243].mxu0  ;;  %7308 = vmatprep.mubr.bf16.mxu1 %v5875_v4 }
 0xf19   :  { %v5788_v40 = vsel %vm1788_vm4, %v5756_v19, %v5757_v39  ;;  %v5758_v48 = vrot.slane %v5681_v50, 1 }
 0xf1a   :  { %v5820_v41 = vmul.f32 %v11870_v62, %v5788_v40  ;;  %v5785_v21 = vsel %vm1788_vm4, %v5759_v11, %v5760_v46 }
 0xf1b   :  { %v5786_v9 = vsel %vm1788_vm4, %v5758_v48, %v5759_v11  ;;  %v5787_v32 = vsel %vm1788_vm4, %v5757_v39, %v5758_v48  ;;  %v5855_v6 = vadd.f32 %v5785_v21, %v11187_v55 }
 0xf1c   :  { %v5852_v7 = vadd.f32 %v5820_v41, %v11871_v34  ;;  %v5853_v1 = vadd.f32 %v5787_v32, %v11185_v58  ;;  %v5854_v42 = vadd.f32 %v5786_v9, %v11189_v25  ;;  %v11872_v32 = vld [vmem:[#allocation8_spill] sm:$0xff] }
 0xf1d   :  { %v7270_v23 = vpop.f32.mrb[244].mxu0 }
 0xf1e   :  { %v5694_v22 = vpop.f32.mrb[245].mxu0  ;;  %v5876_v2 = vpack.c.bf16 %v5852_v7, %v5851_v52  ;;  %v5877_v27 = vpack.c.bf16 %v5854_v42, %v5853_v1  ;;  %v5763_v49 = vrot.slane %v7270_v23, 1 }
 0xf1f   :  { %v5761_v18 = vrot.slane %v5694_v22, 1  ;;  %v7271_v57 = vpop.f32.mrb[246].mxu0 }
 0xf20   :  { %v5764_v38 = vrot.slane %v7271_v57, 1  ;;  %v5697_v28 = vpop.f32.mrb[247].mxu0  ;;  %7309 = vmatmul.mubr.bf16.gmra.mrb[236].mxu1 %v5876_v2 }
 0xf21   :  { %v5784_v45 = vsel %vm1788_vm4, %v5760_v46, %v5761_v18  ;;  %v5762_v55 = vrot.slane %v5697_v28, 1  ;;  %7312 = vmatprep.mubr.bf16.mxu1 %v5877_v27 }
 0xf22   :  { %v5781_v58 = vsel %vm1788_vm4, %v5763_v49, %v5764_v38  ;;  %v5856_v25 = vadd.f32 %v5784_v45, %v11179_v0 }
 0xf23   :  { %v5782_v13 = vsel %vm1788_vm4, %v5762_v55, %v5763_v49  ;;  %v5783_v19 = vsel %vm1788_vm4, %v5761_v18, %v5762_v55  ;;  %v5859_v14 = vadd.f32 %v5781_v58, %v11203_v10 }
 0xf24   :  { %v5878_v43 = vpack.c.bf16 %v5856_v25, %v5855_v6  ;;  %v5857_v59 = vadd.f32 %v5783_v19, %v11193_v51  ;;  %v5858_v15 = vadd.f32 %v5782_v13, %v11205_v47 }
 0xf25   :  { %v7274_v26 = vpop.f32.mrb[248].mxu0 }
 0xf26   :  { %v5710_v24 = vpop.f32.mrb[249].mxu0  ;;  %v5879_v3 = vpack.c.bf16 %v5858_v15, %v5857_v59  ;;  %v5767_v16 = vrot.slane %v7274_v26, 1 }
 0xf27   :  { %v5765_v37 = vrot.slane %v5710_v24, 1  ;;  %v7275_v52 = vpop.f32.mrb[250].mxu0 }
 0xf28   :  { %v5768_v0 = vrot.slane %v7275_v52, 1  ;;  %v5713_v12 = vpop.f32.mrb[251].mxu0  ;;  %7313 = vmatmul.mubr.bf16.gmra.mrb[240].mxu1 %v5878_v43 }
 0xf29   :  { %v5780_v31 = vsel %vm1788_vm4, %v5764_v38, %v5765_v37  ;;  %v5766_v20 = vrot.slane %v5713_v12, 1  ;;  %7316 = vmatprep.mubr.bf16.mxu1 %v5879_v3 }
 0xf2a   :  { %v5777_v10 = vsel %vm1788_vm4, %v5767_v16, %v5768_v0  ;;  %v5860_v51 = vadd.f32 %v5780_v31, %v11197_v30 }
 0xf2b   :  { %v5778_v47 = vsel %vm1788_vm4, %v5766_v20, %v5767_v16  ;;  %v5779_v44 = vsel %vm1788_vm4, %v5765_v37, %v5766_v20  ;;  %v5863_v8 = vadd.f32 %v5777_v10, %v11219_v35 }
 0xf2c   :  { %v5880_v4 = vpack.c.bf16 %v5860_v51, %v5859_v14  ;;  %v5861_v39 = vadd.f32 %v5779_v44, %v11209_v36  ;;  %v5862_v17 = vadd.f32 %v5778_v47, %v11221_v61 }
 0xf2d   :  { %v7278_v11 = vpop.f32.mrb[252].mxu0 }
 0xf2e   :  { %v5726_v46 = vpop.f32.mrb[253].mxu0  ;;  %v5881_v50 = vpack.c.bf16 %v5862_v17, %v5861_v39  ;;  %v5771_v62 = vrot.slane %v7278_v11, 1 }
 0xf2f   :  { %v5769_v40 = vrot.slane %v5726_v46, 1  ;;  %v7279_v48 = vpop.f32.mrb[254].mxu0 }
 0xf30   :  { %v5772_v30 = vrot.slane %v7279_v48, 1  ;;  %v5729_v41 = vpop.f32.mrb[255].mxu0  ;;  %7317 = vmatmul.mubr.bf16.gmra.mrb[244].mxu1 %v5880_v4 }
 0xf31   :  { %v5776_v21 = vsel %vm1788_vm4, %v5768_v0, %v5769_v40  ;;  %v5770_v9 = vrot.slane %v5729_v41, 1  ;;  %7320 = vmatprep.mubr.bf16.mxu1 %v5881_v50 }
 0xf32   :  { %v5773_v35 = vsel %vm1788_vm4, %v5771_v62, %v5772_v30  ;;  %v5804_v36 = vsel %vm1788_vm4, %v5772_v30, %v5741_v29  ;;  %v5864_v61 = vadd.f32 %v5776_v21, %v11213_v63  ;;  %v11352_v63 = vld [vmem:[%s11529_s15] ss:$0 sm:$0xff] }
 0xf33   :  { %v5836_v6 = vmul.f32 %v11872_v32, %v5804_v36  ;;  %v5774_v34 = vsel %vm1788_vm4, %v5770_v9, %v5771_v62  ;;  %v5775_v7 = vsel %vm1788_vm4, %v5769_v40, %v5770_v9  ;;  %v5867_v1 = vadd.f32 %v5773_v35, %v11240_v56 }
 0xf34   :  { %v5865_v42 = vadd.f32 %v5775_v7, %v11225_v54  ;;  %v5866_v23 = vadd.f32 %v5774_v34, %v11242_v5  ;;  %v5882_v53 = vpack.c.bf16 %v5864_v61, %v5863_v8 }
 0xf35   :  { %v5868_v22 = vadd.f32 %v5836_v6, %v11234_v60 }
 0xf36   :  { %v5883_v29 = vpack.c.bf16 %v5866_v23, %v5865_v42 }
 0xf37   :  { %v5884_v2 = vpack.c.bf16 %v5868_v22, %v5867_v1 }
 0xf38   :  { %7321 = vmatmul.mubr.bf16.gmra.mrb[248].mxu1 %v5882_v53 }
 0xf39   :  { %7324 = vmatprep.mubr.bf16.mxu1 %v5883_v29 }
 0xf40   :  { %7325 = vmatmul.mubr.bf16.gmra.mrb[252].mxu1 %v5884_v2 }
 0xfd9   :  { %v7298_v33 = vpop.f32.mrb[224].mxu1 }
 0xfda   :  { %v5999_v56 = vadd.f32 %v7298_v33, %v11352_v63  ;;  %v5990_v27 = vpop.f32.mrb[225].mxu1 }
 0xfdb   :  { %v5991_v54 = vadd.f32 %v11352_v63, %v5990_v27  ;;  %v7299_v5 = vpop.f32.mrb[226].mxu1 }
 0xfdc   :  { %6119 = vst.msk [vmem:[%s11530_s16 + $0x10] sm:$0xff] %vm959_vm0, %v5999_v56  ;;  %v6002_v60 = vadd.f32 %v7299_v5, %v11352_v63  ;;  %v5993_v18 = vpop.f32.mrb[227].mxu1 }
 0xfdd   :  { %6117 = vst.msk [vmem:[%s11530_s16] sm:$0xff] %vm959_vm0, %v5991_v54  ;;  %v5994_v57 = vadd.f32 %v11352_v63, %v5993_v18 }
 0xfde   :  { %6120 = vst.msk [vmem:[%s11530_s16 + $0x18] sm:$0xff] %vm959_vm0, %v6002_v60 }
 0xfdf   :  { %6118 = vst.msk [vmem:[%s11530_s16 + $0x8] sm:$0xff] %vm959_vm0, %v5994_v57 }
 0xfe1   :  { %v7302_v49 = vpop.f32.mrb[228].mxu1 }
 0xfe2   :  { %v6015_v38 = vadd.f32 %v7302_v49, %v11352_v63  ;;  %v6006_v28 = vpop.f32.mrb[229].mxu1 }
 0xfe3   :  { %v6007_v45 = vadd.f32 %v11352_v63, %v6006_v28  ;;  %v7303_v55 = vpop.f32.mrb[230].mxu1 }
 0xfe4   :  { %6123 = vst.msk [vmem:[%s11530_s16 + $0x30] sm:$0xff] %vm959_vm0, %v6015_v38  ;;  %v6018_v58 = vadd.f32 %v7303_v55, %v11352_v63  ;;  %v6009_v25 = vpop.f32.mrb[231].mxu1 }
 0xfe5   :  { %6121 = vst.msk [vmem:[%s11530_s16 + $0x20] sm:$0xff] %vm959_vm0, %v6007_v45  ;;  %v6010_v13 = vadd.f32 %v11352_v63, %v6009_v25 }
 0xfe6   :  { %6124 = vst.msk [vmem:[%s11530_s16 + $0x38] sm:$0xff] %vm959_vm0, %v6018_v58 }
 0xfe7   :  { %6122 = vst.msk [vmem:[%s11530_s16 + $0x28] sm:$0xff] %vm959_vm0, %v6010_v13 }
 0xfe9   :  { %v7306_v19 = vpop.f32.mrb[232].mxu1 }
 0xfea   :  { %v6031_v14 = vadd.f32 %v7306_v19, %v11352_v63  ;;  %v6022_v43 = vpop.f32.mrb[233].mxu1 }
 0xfeb   :  { %v6023_v59 = vadd.f32 %v11352_v63, %v6022_v43  ;;  %v7307_v15 = vpop.f32.mrb[234].mxu1 }
 0xfec   :  { %6127 = vst.msk [vmem:[%s11530_s16 + $0x50] sm:$0xff] %vm959_vm0, %v6031_v14  ;;  %v6034_v26 = vadd.f32 %v7307_v15, %v11352_v63  ;;  %v6025_v24 = vpop.f32.mrb[235].mxu1 }
 0xfed   :  { %6125 = vst.msk [vmem:[%s11530_s16 + $0x40] sm:$0xff] %vm959_vm0, %v6023_v59  ;;  %v6026_v3 = vadd.f32 %v11352_v63, %v6025_v24 }
 0xfee   :  { %6128 = vst.msk [vmem:[%s11530_s16 + $0x58] sm:$0xff] %vm959_vm0, %v6034_v26 }
 0xfef   :  { %6126 = vst.msk [vmem:[%s11530_s16 + $0x48] sm:$0xff] %vm959_vm0, %v6026_v3 }
 0xff3   :  { %v7310_v37 = vpop.f32.mrb[236].mxu1 }
 0xff4   :  { %v6047_v52 = vadd.f32 %v7310_v37, %v11352_v63  ;;  %v6038_v16 = vpop.f32.mrb[237].mxu1 }
 0xff5   :  { %v6039_v0 = vadd.f32 %v11352_v63, %v6038_v16  ;;  %v7311_v12 = vpop.f32.mrb[238].mxu1 }
 0xff6   :  { %6131 = vst.msk [vmem:[%s11530_s16 + $0x70] sm:$0xff] %vm959_vm0, %v6047_v52  ;;  %v6050_v31 = vadd.f32 %v7311_v12, %v11352_v63  ;;  %v6041_v20 = vpop.f32.mrb[239].mxu1 }
 0xff7   :  { %6129 = vst.msk [vmem:[%s11530_s16 + $0x60] sm:$0xff] %vm959_vm0, %v6039_v0  ;;  %v6042_v10 = vadd.f32 %v11352_v63, %v6041_v20 }
 0xff8   :  { %6132 = vst.msk [vmem:[%s11530_s16 + $0x78] sm:$0xff] %vm959_vm0, %v6050_v31 }
 0xff9   :  { %6130 = vst.msk [vmem:[%s11530_s16 + $0x68] sm:$0xff] %vm959_vm0, %v6042_v10 }
 0xffb   :  { %v7314_v51 = vpop.f32.mrb[240].mxu1 }
 0xffc   :  { %v6063_v47 = vadd.f32 %v7314_v51, %v11352_v63  ;;  %v6054_v44 = vpop.f32.mrb[241].mxu1 }
 0xffd   :  { %v6055_v8 = vadd.f32 %v11352_v63, %v6054_v44  ;;  %v7315_v4 = vpop.f32.mrb[242].mxu1 }
 0xffe   :  { %6360 = vst.msk [vmem:[%s11530_s16 + $0x90] sm:$0xff] %vm959_vm0, %v6063_v47  ;;  %v6066_v39 = vadd.f32 %v7315_v4, %v11352_v63  ;;  %v6057_v17 = vpop.f32.mrb[243].mxu1 }
 0xfff   :  { %6358 = vst.msk [vmem:[%s11530_s16 + $0x80] sm:$0xff] %vm959_vm0, %v6055_v8  ;;  %v6058_v11 = vadd.f32 %v11352_v63, %v6057_v17 }
0x1000   :  { %6361 = vst.msk [vmem:[%s11530_s16 + $0x98] sm:$0xff] %vm959_vm0, %v6066_v39 }
0x1001   :  { %6359 = vst.msk [vmem:[%s11530_s16 + $0x88] sm:$0xff] %vm959_vm0, %v6058_v11 }
0x1003   :  { %v7318_v46 = vpop.f32.mrb[244].mxu1 }
0x1004   :  { %v6079_v50 = vadd.f32 %v7318_v46, %v11352_v63  ;;  %v6070_v40 = vpop.f32.mrb[245].mxu1 }
0x1005   :  { %v6071_v48 = vadd.f32 %v11352_v63, %v6070_v40  ;;  %v7319_v62 = vpop.f32.mrb[246].mxu1 }
0x1006   :  { %6364 = vst.msk [vmem:[%s11530_s16 + $0xb0] sm:$0xff] %vm959_vm0, %v6079_v50  ;;  %v6082_v30 = vadd.f32 %v7319_v62, %v11352_v63  ;;  %v6073_v41 = vpop.f32.mrb[247].mxu1 }
0x1007   :  { %6362 = vst.msk [vmem:[%s11530_s16 + $0xa0] sm:$0xff] %vm959_vm0, %v6071_v48  ;;  %v6074_v21 = vadd.f32 %v11352_v63, %v6073_v41 }
0x1008   :  { %6365 = vst.msk [vmem:[%s11530_s16 + $0xb8] sm:$0xff] %vm959_vm0, %v6082_v30 }
0x1009   :  { %6363 = vst.msk [vmem:[%s11530_s16 + $0xa8] sm:$0xff] %vm959_vm0, %v6074_v21 }
0x100b   :  { %v7322_v9 = vpop.f32.mrb[248].mxu1 }
0x100c   :  { %v6095_v35 = vadd.f32 %v7322_v9, %v11352_v63  ;;  %v6086_v36 = vpop.f32.mrb[249].mxu1 }
0x100d   :  { %v6087_v61 = vadd.f32 %v11352_v63, %v6086_v36  ;;  %v7323_v32 = vpop.f32.mrb[250].mxu1 }
0x100e   :  { %6368 = vst.msk [vmem:[%s11530_s16 + $0xd0] sm:$0xff] %vm959_vm0, %v6095_v35  ;;  %v6098_v6 = vadd.f32 %v7323_v32, %v11352_v63  ;;  %v6089_v34 = vpop.f32.mrb[251].mxu1 }
0x100f   :  { %6366 = vst.msk [vmem:[%s11530_s16 + $0xc0] sm:$0xff] %vm959_vm0, %v6087_v61  ;;  %v6090_v7 = vadd.f32 %v11352_v63, %v6089_v34 }
0x1010   :  { %6369 = vst.msk [vmem:[%s11530_s16 + $0xd8] sm:$0xff] %vm959_vm0, %v6098_v6 }
0x1011   :  { %6367 = vst.msk [vmem:[%s11530_s16 + $0xc8] sm:$0xff] %vm959_vm0, %v6090_v7 }
0x1013   :  { %v7326_v1 = vpop.f32.mrb[252].mxu1 }
0x1014   :  { %v6111_v42 = vadd.f32 %v7326_v1, %v11352_v63  ;;  %v6102_v23 = vpop.f32.mrb[253].mxu1 }
0x1015   :  { %v6103_v53 = vadd.f32 %v11352_v63, %v6102_v23  ;;  %v7327_v22 = vpop.f32.mrb[254].mxu1 }
0x1016   :  { %6372 = vst.msk [vmem:[%s11530_s16 + $0xf0] sm:$0xff] %vm959_vm0, %v6111_v42  ;;  %v6114_v29 = vadd.f32 %v7327_v22, %v11352_v63  ;;  %v6105_v2 = vpop.f32.mrb[255].mxu1 }
0x1017   :  { %6370 = vst.msk [vmem:[%s11530_s16 + $0xe0] sm:$0xff] %vm959_vm0, %v6103_v53  ;;  %v6106_v33 = vadd.f32 %v11352_v63, %v6105_v2 }
0x1018   :  { %6373 = vst.msk [vmem:[%s11530_s16 + $0xf8] sm:$0xff] %vm959_vm0, %v6114_v29 }
0x1019   :  { %6371 = vst.msk [vmem:[%s11530_s16 + $0xe8] sm:$0xff] %vm959_vm0, %v6106_v33 }

</bundles_post_ra>
